<compile_context>
chip_gen: v7x
topology: tpu7x:2x2x1
jax: 0.10.0
libtpu: 0.0.40
codegen_flags: <defaults>
</compile_context>

<pallas_src>
import jax
import jax.numpy as jnp
import numpy as np
from jax import lax
from jax.experimental import pallas as pl
from jax.experimental.pallas import tpu as pltpu


def _stock_lstm_kernel(x_ref,                       # (T*B, I)  time-major, batch-padded
                       wih0_ref, whh0_ref, b0_ref,  # (I,4H) (H,4H) (1,4H)
                       wih1_ref, whh1_ref, b1_ref,  # (H,4H) (H,4H) (1,4H)
                       w1_ref, bf1_ref,             # (H,64) (1,64)
                       w2_ref, bf2_ref,             # (64,32) (1,32)
                       w3_ref, bf3_ref,             # (32,1) (1,1)
                       out_ref):                    # (B,1)
    B = out_ref.shape[0]
    H = whh0_ref.shape[0]
    T = x_ref.shape[0] // B
    f32 = jnp.float32

    # --- Hoisted layer-0 input projection: one (T*B, I) @ (I, 4H) matmul, bias added once.
    gates0_in = (jnp.dot(x_ref[...], wih0_ref[...], preferred_element_type=f32)
                 + b0_ref[...])                      # (T*B, 4H)

    whh0 = whh0_ref[...]
    wih1 = wih1_ref[...]
    whh1 = whh1_ref[...]
    b1 = b1_ref[...]

    def gate_nonlin(g):
        # H == 128: each gate slice is a full 128-lane group (vreg-aligned), no lane shuffles.
        i = jax.nn.sigmoid(g[:, 0 * H:1 * H])
        f = jax.nn.sigmoid(g[:, 1 * H:2 * H])
        c_tilde = jnp.tanh(g[:, 2 * H:3 * H])
        o = jax.nn.sigmoid(g[:, 3 * H:4 * H])
        return i, f, c_tilde, o

    h0 = jnp.zeros((B, H), f32)
    c0 = jnp.zeros((B, H), f32)
    h1 = jnp.zeros((B, H), f32)
    c1 = jnp.zeros((B, H), f32)

    # Fully-unrolled time loop (T static & small); state stays in registers, slices are
    # static and sublane-aligned (B is a multiple of 8).
    for t in range(T):
        g0 = (gates0_in[t * B:(t + 1) * B, :]
              + jnp.dot(h0, whh0, preferred_element_type=f32))
        i0, f0, ct0, o0 = gate_nonlin(g0)
        c0 = f0 * c0 + i0 * ct0
        h0 = o0 * jnp.tanh(c0)

        # TODO(synk): inter-layer dropout (p=0.2) is training-only; identity at inference.
        g1 = (jnp.dot(h0, wih1, preferred_element_type=f32)
              + jnp.dot(h1, whh1, preferred_element_type=f32) + b1)
        i1, f1, ct1, o1 = gate_nonlin(g1)
        c1 = f1 * c1 + i1 * ct1
        h1 = o1 * jnp.tanh(c1)

    # --- Head: fc1 -> ReLU -> fc2 -> ReLU -> fc3 on the last hidden state of layer 1.
    y = jnp.maximum(jnp.dot(h1, w1_ref[...], preferred_element_type=f32) + bf1_ref[...], 0.0)
    y = jnp.maximum(jnp.dot(y, w2_ref[...], preferred_element_type=f32) + bf2_ref[...], 0.0)
    out_ref[...] = jnp.dot(y, w3_ref[...], preferred_element_type=f32) + bf3_ref[...]


def stock_lstm_forward(x_btI, params):
    """x_btI: (B, T, I) float32 (PyTorch batch_first). Returns (B, 1)."""
    B0, T, I = x_btI.shape

    # Pad batch to a multiple of 8 sublanes so every vector op / matmul operand is full-tile.
    B = ((B0 + 7) // 8) * 8
    x = x_btI if B == B0 else jnp.pad(x_btI, ((0, B - B0), (0, 0), (0, 0)))

    # batch_first (B,T,I) -> time-major (T,B,I) -> (T*B, I): each timestep is a contiguous,
    # sublane-aligned block of B rows for the in-kernel static slices.
    x_tb = jnp.transpose(x, (1, 0, 2)).reshape(T * B, I)

    vmem = pl.BlockSpec(memory_space=pltpu.MemorySpace.VMEM)
    out = pl.pallas_call(
        _stock_lstm_kernel,
        out_shape=jax.ShapeDtypeStruct((B, 1), jnp.float32),
        in_specs=[vmem] * 13,
        out_specs=vmem,
    )(x_tb,
      params["wih0"], params["whh0"], params["b0"],
      params["wih1"], params["whh1"], params["b1"],
      params["w1"], params["bf1"],
      params["w2"], params["bf2"],
      params["w3"], params["bf3"])
    return out[:B0]


def init_params(key, input_size, hidden_size):
    """Deterministic init, PyTorch-style uniform(-1/sqrt(H), 1/sqrt(H)).
    All weights are stored pre-transposed so the kernel computes x @ W."""
    k = 1.0 / np.sqrt(hidden_size)
    keys = jax.random.split(key, 16)
    u = lambda kk, shape: jax.random.uniform(kk, shape, jnp.float32, -k, k)
    H, I = hidden_size, input_size
    return {
        # layer 0
        "wih0": u(keys[0], (I, 4 * H)),
        "whh0": u(keys[1], (H, 4 * H)),
        "b0":   u(keys[2], (1, 4 * H)) + u(keys[3], (1, 4 * H)),   # b_ih + b_hh
        # layer 1
        "wih1": u(keys[4], (H, 4 * H)),
        "whh1": u(keys[5], (H, 4 * H)),
        "b1":   u(keys[6], (1, 4 * H)) + u(keys[7], (1, 4 * H)),
        # head
        "w1": u(keys[8], (H, 64)),  "bf1": u(keys[9], (1, 64)),
        "w2": u(keys[10], (64, 32)), "bf2": u(keys[11], (1, 32)),
        "w3": u(keys[12], (32, 1)),  "bf3": u(keys[13], (1, 1)),
    }


def reference_forward(x_btI, params):
    """Pure-JAX reference (lax.scan) with identical semantics, for verification."""
    B, T, I = x_btI.shape
    H = params["whh0"].shape[0]

    def cell(x_in, h, c, wih, whh, b):
        g = x_in @ wih + h @ whh + b
        i = jax.nn.sigmoid(g[:, 0 * H:1 * H])
        f = jax.nn.sigmoid(g[:, 1 * H:2 * H])
        gg = jnp.tanh(g[:, 2 * H:3 * H])
        o = jax.nn.sigmoid(g[:, 3 * H:4 * H])
        c_new = f * c + i * gg
        return o * jnp.tanh(c_new), c_new

    def step(carry, x_t):
        h0, c0, h1, c1 = carry
        h0, c0 = cell(x_t, h0, c0, params["wih0"], params["whh0"], params["b0"])
        h1, c1 = cell(h0, h1, c1, params["wih1"], params["whh1"], params["b1"])
        return (h0, c0, h1, c1), None

    init = tuple(jnp.zeros((B, H), jnp.float32) for _ in range(4))
    (h0, c0, h1, c1), _ = lax.scan(step, init, jnp.transpose(x_btI, (1, 0, 2)))
    y = jnp.maximum(h1 @ params["w1"] + params["bf1"], 0.0)
    y = jnp.maximum(y @ params["w2"] + params["bf2"], 0.0)
    return y @ params["w3"] + params["bf3"]


if __name__ == "__main__":
    # batch=4 (padded to 8 inside the wrapper), seq=8, input_size=8, hidden_size=128
    # (hidden_size=128 matches the PyTorch module spec).
    B, T, I, H = 4, 8, 8, 128
    key = jax.random.PRNGKey(0)
    kx, kp = jax.random.split(key)

    x = jax.random.normal(kx, (B, T, I), dtype=jnp.float32)   # (batch, seq, features)
    params = init_params(kp, input_size=I, hidden_size=H)

    out = jax.block_until_ready(jax.jit(stock_lstm_forward)(x, params))
    ref = jax.block_until_ready(reference_forward(x, params))

    np.testing.assert_allclose(np.asarray(out), np.asarray(ref), rtol=5e-4, atol=5e-5)
    assert out.shape == (B, 1)

    print("KERNEL_OK")
</pallas_src>

<mosaic_0001>
module attributes {stable_mosaic.version = 11 : i64} {
  func.func @_stock_lstm_kernel(%arg0: memref<64x8xf32, #tpu.memory_space<vmem>>, %arg1: memref<8x512xf32, #tpu.memory_space<vmem>>, %arg2: memref<128x512xf32, #tpu.memory_space<vmem>>, %arg3: memref<1x512xf32, #tpu.memory_space<vmem>>, %arg4: memref<128x512xf32, #tpu.memory_space<vmem>>, %arg5: memref<128x512xf32, #tpu.memory_space<vmem>>, %arg6: memref<1x512xf32, #tpu.memory_space<vmem>>, %arg7: memref<128x64xf32, #tpu.memory_space<vmem>>, %arg8: memref<1x64xf32, #tpu.memory_space<vmem>>, %arg9: memref<64x32xf32, #tpu.memory_space<vmem>>, %arg10: memref<1x32xf32, #tpu.memory_space<vmem>>, %arg11: memref<32x1xf32, #tpu.memory_space<vmem>>, %arg12: memref<1x1xf32, #tpu.memory_space<vmem>>, %arg13: memref<8x1xf32, #tpu.memory_space<vmem>>) attributes {dimension_semantics = [], scalar_prefetch = 0 : i64, scratch_operands = 0 : i64, tpu.core_type = #tpu.core_type<tc>} {
    %c0 = arith.constant 0 : index
    %c0_0 = arith.constant 0 : index
    %0 = vector.load %arg0[%c0, %c0_0] : memref<64x8xf32, #tpu.memory_space<vmem>>, vector<64x8xf32>
    %c0_1 = arith.constant 0 : index
    %c0_2 = arith.constant 0 : index
    %1 = vector.load %arg1[%c0_1, %c0_2] : memref<8x512xf32, #tpu.memory_space<vmem>>, vector<8x512xf32>
    %cst = arith.constant dense<0.000000e+00> : vector<64x512xf32>
    %2 = tpu.matmul %0, %1, %cst {dimension_numbers = #tpu.dot_dimension_numbers<[1], [0], [0], [1], [0, 0, 1, 1], [], []>} : vector<64x8xf32>, vector<8x512xf32>, vector<64x512xf32> -> vector<64x512xf32>
    %c0_3 = arith.constant 0 : index
    %c0_4 = arith.constant 0 : index
    %3 = vector.load %arg3[%c0_3, %c0_4] : memref<1x512xf32, #tpu.memory_space<vmem>>, vector<1x512xf32>
    %4 = vector.broadcast %3 : vector<1x512xf32> to vector<64x512xf32>
    %5 = arith.addf %2, %4 : vector<64x512xf32>
    %c0_5 = arith.constant 0 : index
    %c0_6 = arith.constant 0 : index
    %6 = vector.load %arg2[%c0_5, %c0_6] : memref<128x512xf32, #tpu.memory_space<vmem>>, vector<128x512xf32>
    %c0_7 = arith.constant 0 : index
    %c0_8 = arith.constant 0 : index
    %7 = vector.load %arg4[%c0_7, %c0_8] : memref<128x512xf32, #tpu.memory_space<vmem>>, vector<128x512xf32>
    %c0_9 = arith.constant 0 : index
    %c0_10 = arith.constant 0 : index
    %8 = vector.load %arg5[%c0_9, %c0_10] : memref<128x512xf32, #tpu.memory_space<vmem>>, vector<128x512xf32>
    %c0_11 = arith.constant 0 : index
    %c0_12 = arith.constant 0 : index
    %9 = vector.load %arg6[%c0_11, %c0_12] : memref<1x512xf32, #tpu.memory_space<vmem>>, vector<1x512xf32>
    %cst_13 = arith.constant 0.000000e+00 : f32
    %10 = vector.broadcast %cst_13 : f32 to vector<8x128xf32>
    %cst_14 = arith.constant 0.000000e+00 : f32
    %11 = vector.broadcast %cst_14 : f32 to vector<8x128xf32>
    %cst_15 = arith.constant 0.000000e+00 : f32
    %12 = vector.broadcast %cst_15 : f32 to vector<8x128xf32>
    %cst_16 = arith.constant 0.000000e+00 : f32
    %13 = vector.broadcast %cst_16 : f32 to vector<8x128xf32>
    %14 = vector.extract_strided_slice %5 {offsets = [0, 0], sizes = [8, 512], strides = [1, 1]} : vector<64x512xf32> to vector<8x512xf32>
    %cst_17 = arith.constant dense<0.000000e+00> : vector<8x512xf32>
    %15 = tpu.matmul %10, %6, %cst_17 {dimension_numbers = #tpu.dot_dimension_numbers<[1], [0], [0], [1], [0, 0, 1, 1], [], []>} : vector<8x128xf32>, vector<128x512xf32>, vector<8x512xf32> -> vector<8x512xf32>
    %16 = arith.addf %14, %15 : vector<8x512xf32>
    %17 = vector.extract_strided_slice %16 {offsets = [0, 0], sizes = [8, 128], strides = [1, 1]} : vector<8x512xf32> to vector<8x128xf32>
    %18 = arith.negf %17 : vector<8x128xf32>
    %19 = math.exp %18 : vector<8x128xf32>
    %cst_18 = arith.constant 1.000000e+00 : f32
    %20 = vector.broadcast %cst_18 : f32 to vector<8x128xf32>
    %21 = arith.addf %20, %19 : vector<8x128xf32>
    %22 = arith.divf %20, %21 : vector<8x128xf32>
    %23 = vector.extract_strided_slice %16 {offsets = [0, 128], sizes = [8, 128], strides = [1, 1]} : vector<8x512xf32> to vector<8x128xf32>
    %24 = arith.negf %23 : vector<8x128xf32>
    %25 = math.exp %24 : vector<8x128xf32>
    %cst_19 = arith.constant 1.000000e+00 : f32
    %26 = vector.broadcast %cst_19 : f32 to vector<8x128xf32>
    %27 = arith.addf %26, %25 : vector<8x128xf32>
    %28 = arith.divf %26, %27 : vector<8x128xf32>
    %29 = vector.extract_strided_slice %16 {offsets = [0, 256], sizes = [8, 128], strides = [1, 1]} : vector<8x512xf32> to vector<8x128xf32>
    %30 = math.tanh %29 : vector<8x128xf32>
    %31 = vector.extract_strided_slice %16 {offsets = [0, 384], sizes = [8, 128], strides = [1, 1]} : vector<8x512xf32> to vector<8x128xf32>
    %32 = arith.negf %31 : vector<8x128xf32>
    %33 = math.exp %32 : vector<8x128xf32>
    %cst_20 = arith.constant 1.000000e+00 : f32
    %34 = vector.broadcast %cst_20 : f32 to vector<8x128xf32>
    %35 = arith.addf %34, %33 : vector<8x128xf32>
    %36 = arith.divf %34, %35 : vector<8x128xf32>
    %37 = arith.mulf %28, %11 : vector<8x128xf32>
    %38 = arith.mulf %22, %30 : vector<8x128xf32>
    %39 = arith.addf %37, %38 : vector<8x128xf32>
    %40 = math.tanh %39 : vector<8x128xf32>
    %41 = arith.mulf %36, %40 : vector<8x128xf32>
    %cst_21 = arith.constant dense<0.000000e+00> : vector<8x512xf32>
    %42 = tpu.matmul %41, %7, %cst_21 {dimension_numbers = #tpu.dot_dimension_numbers<[1], [0], [0], [1], [0, 0, 1, 1], [], []>} : vector<8x128xf32>, vector<128x512xf32>, vector<8x512xf32> -> vector<8x512xf32>
    %cst_22 = arith.constant dense<0.000000e+00> : vector<8x512xf32>
    %43 = tpu.matmul %12, %8, %cst_22 {dimension_numbers = #tpu.dot_dimension_numbers<[1], [0], [0], [1], [0, 0, 1, 1], [], []>} : vector<8x128xf32>, vector<128x512xf32>, vector<8x512xf32> -> vector<8x512xf32>
    %44 = arith.addf %42, %43 : vector<8x512xf32>
    %45 = vector.broadcast %9 : vector<1x512xf32> to vector<8x512xf32>
    %46 = arith.addf %44, %45 : vector<8x512xf32>
    %47 = vector.extract_strided_slice %46 {offsets = [0, 0], sizes = [8, 128], strides = [1, 1]} : vector<8x512xf32> to vector<8x128xf32>
    %48 = arith.negf %47 : vector<8x128xf32>
    %49 = math.exp %48 : vector<8x128xf32>
    %cst_23 = arith.constant 1.000000e+00 : f32
    %50 = vector.broadcast %cst_23 : f32 to vector<8x128xf32>
    %51 = arith.addf %50, %49 : vector<8x128xf32>
    %52 = arith.divf %50, %51 : vector<8x128xf32>
    %53 = vector.extract_strided_slice %46 {offsets = [0, 128], sizes = [8, 128], strides = [1, 1]} : vector<8x512xf32> to vector<8x128xf32>
    %54 = arith.negf %53 : vector<8x128xf32>
    %55 = math.exp %54 : vector<8x128xf32>
    %cst_24 = arith.constant 1.000000e+00 : f32
    %56 = vector.broadcast %cst_24 : f32 to vector<8x128xf32>
    %57 = arith.addf %56, %55 : vector<8x128xf32>
    %58 = arith.divf %56, %57 : vector<8x128xf32>
    %59 = vector.extract_strided_slice %46 {offsets = [0, 256], sizes = [8, 128], strides = [1, 1]} : vector<8x512xf32> to vector<8x128xf32>
    %60 = math.tanh %59 : vector<8x128xf32>
    %61 = vector.extract_strided_slice %46 {offsets = [0, 384], sizes = [8, 128], strides = [1, 1]} : vector<8x512xf32> to vector<8x128xf32>
    %62 = arith.negf %61 : vector<8x128xf32>
    %63 = math.exp %62 : vector<8x128xf32>
    %cst_25 = arith.constant 1.000000e+00 : f32
    %64 = vector.broadcast %cst_25 : f32 to vector<8x128xf32>
    %65 = arith.addf %64, %63 : vector<8x128xf32>
    %66 = arith.divf %64, %65 : vector<8x128xf32>
    %67 = arith.mulf %58, %13 : vector<8x128xf32>
    %68 = arith.mulf %52, %60 : vector<8x128xf32>
    %69 = arith.addf %67, %68 : vector<8x128xf32>
    %70 = math.tanh %69 : vector<8x128xf32>
    %71 = arith.mulf %66, %70 : vector<8x128xf32>
    %72 = vector.extract_strided_slice %5 {offsets = [8, 0], sizes = [8, 512], strides = [1, 1]} : vector<64x512xf32> to vector<8x512xf32>
    %cst_26 = arith.constant dense<0.000000e+00> : vector<8x512xf32>
    %73 = tpu.matmul %41, %6, %cst_26 {dimension_numbers = #tpu.dot_dimension_numbers<[1], [0], [0], [1], [0, 0, 1, 1], [], []>} : vector<8x128xf32>, vector<128x512xf32>, vector<8x512xf32> -> vector<8x512xf32>
    %74 = arith.addf %72, %73 : vector<8x512xf32>
    %75 = vector.extract_strided_slice %74 {offsets = [0, 0], sizes = [8, 128], strides = [1, 1]} : vector<8x512xf32> to vector<8x128xf32>
    %76 = arith.negf %75 : vector<8x128xf32>
    %77 = math.exp %76 : vector<8x128xf32>
    %cst_27 = arith.constant 1.000000e+00 : f32
    %78 = vector.broadcast %cst_27 : f32 to vector<8x128xf32>
    %79 = arith.addf %78, %77 : vector<8x128xf32>
    %80 = arith.divf %78, %79 : vector<8x128xf32>
    %81 = vector.extract_strided_slice %74 {offsets = [0, 128], sizes = [8, 128], strides = [1, 1]} : vector<8x512xf32> to vector<8x128xf32>
    %82 = arith.negf %81 : vector<8x128xf32>
    %83 = math.exp %82 : vector<8x128xf32>
    %cst_28 = arith.constant 1.000000e+00 : f32
    %84 = vector.broadcast %cst_28 : f32 to vector<8x128xf32>
    %85 = arith.addf %84, %83 : vector<8x128xf32>
    %86 = arith.divf %84, %85 : vector<8x128xf32>
    %87 = vector.extract_strided_slice %74 {offsets = [0, 256], sizes = [8, 128], strides = [1, 1]} : vector<8x512xf32> to vector<8x128xf32>
    %88 = math.tanh %87 : vector<8x128xf32>
    %89 = vector.extract_strided_slice %74 {offsets = [0, 384], sizes = [8, 128], strides = [1, 1]} : vector<8x512xf32> to vector<8x128xf32>
    %90 = arith.negf %89 : vector<8x128xf32>
    %91 = math.exp %90 : vector<8x128xf32>
    %cst_29 = arith.constant 1.000000e+00 : f32
    %92 = vector.broadcast %cst_29 : f32 to vector<8x128xf32>
    %93 = arith.addf %92, %91 : vector<8x128xf32>
    %94 = arith.divf %92, %93 : vector<8x128xf32>
    %95 = arith.mulf %86, %39 : vector<8x128xf32>
    %96 = arith.mulf %80, %88 : vector<8x128xf32>
    %97 = arith.addf %95, %96 : vector<8x128xf32>
    %98 = math.tanh %97 : vector<8x128xf32>
    %99 = arith.mulf %94, %98 : vector<8x128xf32>
    %cst_30 = arith.constant dense<0.000000e+00> : vector<8x512xf32>
    %100 = tpu.matmul %99, %7, %cst_30 {dimension_numbers = #tpu.dot_dimension_numbers<[1], [0], [0], [1], [0, 0, 1, 1], [], []>} : vector<8x128xf32>, vector<128x512xf32>, vector<8x512xf32> -> vector<8x512xf32>
    %cst_31 = arith.constant dense<0.000000e+00> : vector<8x512xf32>
    %101 = tpu.matmul %71, %8, %cst_31 {dimension_numbers = #tpu.dot_dimension_numbers<[1], [0], [0], [1], [0, 0, 1, 1], [], []>} : vector<8x128xf32>, vector<128x512xf32>, vector<8x512xf32> -> vector<8x512xf32>
    %102 = arith.addf %100, %101 : vector<8x512xf32>
    %103 = vector.broadcast %9 : vector<1x512xf32> to vector<8x512xf32>
    %104 = arith.addf %102, %103 : vector<8x512xf32>
    %105 = vector.extract_strided_slice %104 {offsets = [0, 0], sizes = [8, 128], strides = [1, 1]} : vector<8x512xf32> to vector<8x128xf32>
    %106 = arith.negf %105 : vector<8x128xf32>
    %107 = math.exp %106 : vector<8x128xf32>
    %cst_32 = arith.constant 1.000000e+00 : f32
    %108 = vector.broadcast %cst_32 : f32 to vector<8x128xf32>
    %109 = arith.addf %108, %107 : vector<8x128xf32>
    %110 = arith.divf %108, %109 : vector<8x128xf32>
    %111 = vector.extract_strided_slice %104 {offsets = [0, 128], sizes = [8, 128], strides = [1, 1]} : vector<8x512xf32> to vector<8x128xf32>
    %112 = arith.negf %111 : vector<8x128xf32>
    %113 = math.exp %112 : vector<8x128xf32>
    %cst_33 = arith.constant 1.000000e+00 : f32
    %114 = vector.broadcast %cst_33 : f32 to vector<8x128xf32>
    %115 = arith.addf %114, %113 : vector<8x128xf32>
    %116 = arith.divf %114, %115 : vector<8x128xf32>
    %117 = vector.extract_strided_slice %104 {offsets = [0, 256], sizes = [8, 128], strides = [1, 1]} : vector<8x512xf32> to vector<8x128xf32>
    %118 = math.tanh %117 : vector<8x128xf32>
    %119 = vector.extract_strided_slice %104 {offsets = [0, 384], sizes = [8, 128], strides = [1, 1]} : vector<8x512xf32> to vector<8x128xf32>
    %120 = arith.negf %119 : vector<8x128xf32>
    %121 = math.exp %120 : vector<8x128xf32>
    %cst_34 = arith.constant 1.000000e+00 : f32
    %122 = vector.broadcast %cst_34 : f32 to vector<8x128xf32>
    %123 = arith.addf %122, %121 : vector<8x128xf32>
    %124 = arith.divf %122, %123 : vector<8x128xf32>
    %125 = arith.mulf %116, %69 : vector<8x128xf32>
    %126 = arith.mulf %110, %118 : vector<8x128xf32>
    %127 = arith.addf %125, %126 : vector<8x128xf32>
    %128 = math.tanh %127 : vector<8x128xf32>
    %129 = arith.mulf %124, %128 : vector<8x128xf32>
    %130 = vector.extract_strided_slice %5 {offsets = [16, 0], sizes = [8, 512], strides = [1, 1]} : vector<64x512xf32> to vector<8x512xf32>
    %cst_35 = arith.constant dense<0.000000e+00> : vector<8x512xf32>
    %131 = tpu.matmul %99, %6, %cst_35 {dimension_numbers = #tpu.dot_dimension_numbers<[1], [0], [0], [1], [0, 0, 1, 1], [], []>} : vector<8x128xf32>, vector<128x512xf32>, vector<8x512xf32> -> vector<8x512xf32>
    %132 = arith.addf %130, %131 : vector<8x512xf32>
    %133 = vector.extract_strided_slice %132 {offsets = [0, 0], sizes = [8, 128], strides = [1, 1]} : vector<8x512xf32> to vector<8x128xf32>
    %134 = arith.negf %133 : vector<8x128xf32>
    %135 = math.exp %134 : vector<8x128xf32>
    %cst_36 = arith.constant 1.000000e+00 : f32
    %136 = vector.broadcast %cst_36 : f32 to vector<8x128xf32>
    %137 = arith.addf %136, %135 : vector<8x128xf32>
    %138 = arith.divf %136, %137 : vector<8x128xf32>
    %139 = vector.extract_strided_slice %132 {offsets = [0, 128], sizes = [8, 128], strides = [1, 1]} : vector<8x512xf32> to vector<8x128xf32>
    %140 = arith.negf %139 : vector<8x128xf32>
    %141 = math.exp %140 : vector<8x128xf32>
    %cst_37 = arith.constant 1.000000e+00 : f32
    %142 = vector.broadcast %cst_37 : f32 to vector<8x128xf32>
    %143 = arith.addf %142, %141 : vector<8x128xf32>
    %144 = arith.divf %142, %143 : vector<8x128xf32>
    %145 = vector.extract_strided_slice %132 {offsets = [0, 256], sizes = [8, 128], strides = [1, 1]} : vector<8x512xf32> to vector<8x128xf32>
    %146 = math.tanh %145 : vector<8x128xf32>
    %147 = vector.extract_strided_slice %132 {offsets = [0, 384], sizes = [8, 128], strides = [1, 1]} : vector<8x512xf32> to vector<8x128xf32>
    %148 = arith.negf %147 : vector<8x128xf32>
    %149 = math.exp %148 : vector<8x128xf32>
    %cst_38 = arith.constant 1.000000e+00 : f32
    %150 = vector.broadcast %cst_38 : f32 to vector<8x128xf32>
    %151 = arith.addf %150, %149 : vector<8x128xf32>
    %152 = arith.divf %150, %151 : vector<8x128xf32>
    %153 = arith.mulf %144, %97 : vector<8x128xf32>
    %154 = arith.mulf %138, %146 : vector<8x128xf32>
    %155 = arith.addf %153, %154 : vector<8x128xf32>
    %156 = math.tanh %155 : vector<8x128xf32>
    %157 = arith.mulf %152, %156 : vector<8x128xf32>
    %cst_39 = arith.constant dense<0.000000e+00> : vector<8x512xf32>
    %158 = tpu.matmul %157, %7, %cst_39 {dimension_numbers = #tpu.dot_dimension_numbers<[1], [0], [0], [1], [0, 0, 1, 1], [], []>} : vector<8x128xf32>, vector<128x512xf32>, vector<8x512xf32> -> vector<8x512xf32>
    %cst_40 = arith.constant dense<0.000000e+00> : vector<8x512xf32>
    %159 = tpu.matmul %129, %8, %cst_40 {dimension_numbers = #tpu.dot_dimension_numbers<[1], [0], [0], [1], [0, 0, 1, 1], [], []>} : vector<8x128xf32>, vector<128x512xf32>, vector<8x512xf32> -> vector<8x512xf32>
    %160 = arith.addf %158, %159 : vector<8x512xf32>
    %161 = vector.broadcast %9 : vector<1x512xf32> to vector<8x512xf32>
    %162 = arith.addf %160, %161 : vector<8x512xf32>
    %163 = vector.extract_strided_slice %162 {offsets = [0, 0], sizes = [8, 128], strides = [1, 1]} : vector<8x512xf32> to vector<8x128xf32>
    %164 = arith.negf %163 : vector<8x128xf32>
    %165 = math.exp %164 : vector<8x128xf32>
    %cst_41 = arith.constant 1.000000e+00 : f32
    %166 = vector.broadcast %cst_41 : f32 to vector<8x128xf32>
    %167 = arith.addf %166, %165 : vector<8x128xf32>
    %168 = arith.divf %166, %167 : vector<8x128xf32>
    %169 = vector.extract_strided_slice %162 {offsets = [0, 128], sizes = [8, 128], strides = [1, 1]} : vector<8x512xf32> to vector<8x128xf32>
    %170 = arith.negf %169 : vector<8x128xf32>
    %171 = math.exp %170 : vector<8x128xf32>
    %cst_42 = arith.constant 1.000000e+00 : f32
    %172 = vector.broadcast %cst_42 : f32 to vector<8x128xf32>
    %173 = arith.addf %172, %171 : vector<8x128xf32>
    %174 = arith.divf %172, %173 : vector<8x128xf32>
    %175 = vector.extract_strided_slice %162 {offsets = [0, 256], sizes = [8, 128], strides = [1, 1]} : vector<8x512xf32> to vector<8x128xf32>
    %176 = math.tanh %175 : vector<8x128xf32>
    %177 = vector.extract_strided_slice %162 {offsets = [0, 384], sizes = [8, 128], strides = [1, 1]} : vector<8x512xf32> to vector<8x128xf32>
    %178 = arith.negf %177 : vector<8x128xf32>
    %179 = math.exp %178 : vector<8x128xf32>
    %cst_43 = arith.constant 1.000000e+00 : f32
    %180 = vector.broadcast %cst_43 : f32 to vector<8x128xf32>
    %181 = arith.addf %180, %179 : vector<8x128xf32>
    %182 = arith.divf %180, %181 : vector<8x128xf32>
    %183 = arith.mulf %174, %127 : vector<8x128xf32>
    %184 = arith.mulf %168, %176 : vector<8x128xf32>
    %185 = arith.addf %183, %184 : vector<8x128xf32>
    %186 = math.tanh %185 : vector<8x128xf32>
    %187 = arith.mulf %182, %186 : vector<8x128xf32>
    %188 = vector.extract_strided_slice %5 {offsets = [24, 0], sizes = [8, 512], strides = [1, 1]} : vector<64x512xf32> to vector<8x512xf32>
    %cst_44 = arith.constant dense<0.000000e+00> : vector<8x512xf32>
    %189 = tpu.matmul %157, %6, %cst_44 {dimension_numbers = #tpu.dot_dimension_numbers<[1], [0], [0], [1], [0, 0, 1, 1], [], []>} : vector<8x128xf32>, vector<128x512xf32>, vector<8x512xf32> -> vector<8x512xf32>
    %190 = arith.addf %188, %189 : vector<8x512xf32>
    %191 = vector.extract_strided_slice %190 {offsets = [0, 0], sizes = [8, 128], strides = [1, 1]} : vector<8x512xf32> to vector<8x128xf32>
    %192 = arith.negf %191 : vector<8x128xf32>
    %193 = math.exp %192 : vector<8x128xf32>
    %cst_45 = arith.constant 1.000000e+00 : f32
    %194 = vector.broadcast %cst_45 : f32 to vector<8x128xf32>
    %195 = arith.addf %194, %193 : vector<8x128xf32>
    %196 = arith.divf %194, %195 : vector<8x128xf32>
    %197 = vector.extract_strided_slice %190 {offsets = [0, 128], sizes = [8, 128], strides = [1, 1]} : vector<8x512xf32> to vector<8x128xf32>
    %198 = arith.negf %197 : vector<8x128xf32>
    %199 = math.exp %198 : vector<8x128xf32>
    %cst_46 = arith.constant 1.000000e+00 : f32
    %200 = vector.broadcast %cst_46 : f32 to vector<8x128xf32>
    %201 = arith.addf %200, %199 : vector<8x128xf32>
    %202 = arith.divf %200, %201 : vector<8x128xf32>
    %203 = vector.extract_strided_slice %190 {offsets = [0, 256], sizes = [8, 128], strides = [1, 1]} : vector<8x512xf32> to vector<8x128xf32>
    %204 = math.tanh %203 : vector<8x128xf32>
    %205 = vector.extract_strided_slice %190 {offsets = [0, 384], sizes = [8, 128], strides = [1, 1]} : vector<8x512xf32> to vector<8x128xf32>
    %206 = arith.negf %205 : vector<8x128xf32>
    %207 = math.exp %206 : vector<8x128xf32>
    %cst_47 = arith.constant 1.000000e+00 : f32
    %208 = vector.broadcast %cst_47 : f32 to vector<8x128xf32>
    %209 = arith.addf %208, %207 : vector<8x128xf32>
    %210 = arith.divf %208, %209 : vector<8x128xf32>
    %211 = arith.mulf %202, %155 : vector<8x128xf32>
    %212 = arith.mulf %196, %204 : vector<8x128xf32>
    %213 = arith.addf %211, %212 : vector<8x128xf32>
    %214 = math.tanh %213 : vector<8x128xf32>
    %215 = arith.mulf %210, %214 : vector<8x128xf32>
    %cst_48 = arith.constant dense<0.000000e+00> : vector<8x512xf32>
    %216 = tpu.matmul %215, %7, %cst_48 {dimension_numbers = #tpu.dot_dimension_numbers<[1], [0], [0], [1], [0, 0, 1, 1], [], []>} : vector<8x128xf32>, vector<128x512xf32>, vector<8x512xf32> -> vector<8x512xf32>
    %cst_49 = arith.constant dense<0.000000e+00> : vector<8x512xf32>
    %217 = tpu.matmul %187, %8, %cst_49 {dimension_numbers = #tpu.dot_dimension_numbers<[1], [0], [0], [1], [0, 0, 1, 1], [], []>} : vector<8x128xf32>, vector<128x512xf32>, vector<8x512xf32> -> vector<8x512xf32>
    %218 = arith.addf %216, %217 : vector<8x512xf32>
    %219 = vector.broadcast %9 : vector<1x512xf32> to vector<8x512xf32>
    %220 = arith.addf %218, %219 : vector<8x512xf32>
    %221 = vector.extract_strided_slice %220 {offsets = [0, 0], sizes = [8, 128], strides = [1, 1]} : vector<8x512xf32> to vector<8x128xf32>
    %222 = arith.negf %221 : vector<8x128xf32>
    %223 = math.exp %222 : vector<8x128xf32>
    %cst_50 = arith.constant 1.000000e+00 : f32
    %224 = vector.broadcast %cst_50 : f32 to vector<8x128xf32>
    %225 = arith.addf %224, %223 : vector<8x128xf32>
    %226 = arith.divf %224, %225 : vector<8x128xf32>
    %227 = vector.extract_strided_slice %220 {offsets = [0, 128], sizes = [8, 128], strides = [1, 1]} : vector<8x512xf32> to vector<8x128xf32>
    %228 = arith.negf %227 : vector<8x128xf32>
    %229 = math.exp %228 : vector<8x128xf32>
    %cst_51 = arith.constant 1.000000e+00 : f32
    %230 = vector.broadcast %cst_51 : f32 to vector<8x128xf32>
    %231 = arith.addf %230, %229 : vector<8x128xf32>
    %232 = arith.divf %230, %231 : vector<8x128xf32>
    %233 = vector.extract_strided_slice %220 {offsets = [0, 256], sizes = [8, 128], strides = [1, 1]} : vector<8x512xf32> to vector<8x128xf32>
    %234 = math.tanh %233 : vector<8x128xf32>
    %235 = vector.extract_strided_slice %220 {offsets = [0, 384], sizes = [8, 128], strides = [1, 1]} : vector<8x512xf32> to vector<8x128xf32>
    %236 = arith.negf %235 : vector<8x128xf32>
    %237 = math.exp %236 : vector<8x128xf32>
    %cst_52 = arith.constant 1.000000e+00 : f32
    %238 = vector.broadcast %cst_52 : f32 to vector<8x128xf32>
    %239 = arith.addf %238, %237 : vector<8x128xf32>
    %240 = arith.divf %238, %239 : vector<8x128xf32>
    %241 = arith.mulf %232, %185 : vector<8x128xf32>
    %242 = arith.mulf %226, %234 : vector<8x128xf32>
    %243 = arith.addf %241, %242 : vector<8x128xf32>
    %244 = math.tanh %243 : vector<8x128xf32>
    %245 = arith.mulf %240, %244 : vector<8x128xf32>
    %246 = vector.extract_strided_slice %5 {offsets = [32, 0], sizes = [8, 512], strides = [1, 1]} : vector<64x512xf32> to vector<8x512xf32>
    %cst_53 = arith.constant dense<0.000000e+00> : vector<8x512xf32>
    %247 = tpu.matmul %215, %6, %cst_53 {dimension_numbers = #tpu.dot_dimension_numbers<[1], [0], [0], [1], [0, 0, 1, 1], [], []>} : vector<8x128xf32>, vector<128x512xf32>, vector<8x512xf32> -> vector<8x512xf32>
    %248 = arith.addf %246, %247 : vector<8x512xf32>
    %249 = vector.extract_strided_slice %248 {offsets = [0, 0], sizes = [8, 128], strides = [1, 1]} : vector<8x512xf32> to vector<8x128xf32>
    %250 = arith.negf %249 : vector<8x128xf32>
    %251 = math.exp %250 : vector<8x128xf32>
    %cst_54 = arith.constant 1.000000e+00 : f32
    %252 = vector.broadcast %cst_54 : f32 to vector<8x128xf32>
    %253 = arith.addf %252, %251 : vector<8x128xf32>
    %254 = arith.divf %252, %253 : vector<8x128xf32>
    %255 = vector.extract_strided_slice %248 {offsets = [0, 128], sizes = [8, 128], strides = [1, 1]} : vector<8x512xf32> to vector<8x128xf32>
    %256 = arith.negf %255 : vector<8x128xf32>
    %257 = math.exp %256 : vector<8x128xf32>
    %cst_55 = arith.constant 1.000000e+00 : f32
    %258 = vector.broadcast %cst_55 : f32 to vector<8x128xf32>
    %259 = arith.addf %258, %257 : vector<8x128xf32>
    %260 = arith.divf %258, %259 : vector<8x128xf32>
    %261 = vector.extract_strided_slice %248 {offsets = [0, 256], sizes = [8, 128], strides = [1, 1]} : vector<8x512xf32> to vector<8x128xf32>
    %262 = math.tanh %261 : vector<8x128xf32>
    %263 = vector.extract_strided_slice %248 {offsets = [0, 384], sizes = [8, 128], strides = [1, 1]} : vector<8x512xf32> to vector<8x128xf32>
    %264 = arith.negf %263 : vector<8x128xf32>
    %265 = math.exp %264 : vector<8x128xf32>
    %cst_56 = arith.constant 1.000000e+00 : f32
    %266 = vector.broadcast %cst_56 : f32 to vector<8x128xf32>
    %267 = arith.addf %266, %265 : vector<8x128xf32>
    %268 = arith.divf %266, %267 : vector<8x128xf32>
    %269 = arith.mulf %260, %213 : vector<8x128xf32>
    %270 = arith.mulf %254, %262 : vector<8x128xf32>
    %271 = arith.addf %269, %270 : vector<8x128xf32>
    %272 = math.tanh %271 : vector<8x128xf32>
    %273 = arith.mulf %268, %272 : vector<8x128xf32>
    %cst_57 = arith.constant dense<0.000000e+00> : vector<8x512xf32>
    %274 = tpu.matmul %273, %7, %cst_57 {dimension_numbers = #tpu.dot_dimension_numbers<[1], [0], [0], [1], [0, 0, 1, 1], [], []>} : vector<8x128xf32>, vector<128x512xf32>, vector<8x512xf32> -> vector<8x512xf32>
    %cst_58 = arith.constant dense<0.000000e+00> : vector<8x512xf32>
    %275 = tpu.matmul %245, %8, %cst_58 {dimension_numbers = #tpu.dot_dimension_numbers<[1], [0], [0], [1], [0, 0, 1, 1], [], []>} : vector<8x128xf32>, vector<128x512xf32>, vector<8x512xf32> -> vector<8x512xf32>
    %276 = arith.addf %274, %275 : vector<8x512xf32>
    %277 = vector.broadcast %9 : vector<1x512xf32> to vector<8x512xf32>
    %278 = arith.addf %276, %277 : vector<8x512xf32>
    %279 = vector.extract_strided_slice %278 {offsets = [0, 0], sizes = [8, 128], strides = [1, 1]} : vector<8x512xf32> to vector<8x128xf32>
    %280 = arith.negf %279 : vector<8x128xf32>
    %281 = math.exp %280 : vector<8x128xf32>
    %cst_59 = arith.constant 1.000000e+00 : f32
    %282 = vector.broadcast %cst_59 : f32 to vector<8x128xf32>
    %283 = arith.addf %282, %281 : vector<8x128xf32>
    %284 = arith.divf %282, %283 : vector<8x128xf32>
    %285 = vector.extract_strided_slice %278 {offsets = [0, 128], sizes = [8, 128], strides = [1, 1]} : vector<8x512xf32> to vector<8x128xf32>
    %286 = arith.negf %285 : vector<8x128xf32>
    %287 = math.exp %286 : vector<8x128xf32>
    %cst_60 = arith.constant 1.000000e+00 : f32
    %288 = vector.broadcast %cst_60 : f32 to vector<8x128xf32>
    %289 = arith.addf %288, %287 : vector<8x128xf32>
    %290 = arith.divf %288, %289 : vector<8x128xf32>
    %291 = vector.extract_strided_slice %278 {offsets = [0, 256], sizes = [8, 128], strides = [1, 1]} : vector<8x512xf32> to vector<8x128xf32>
    %292 = math.tanh %291 : vector<8x128xf32>
    %293 = vector.extract_strided_slice %278 {offsets = [0, 384], sizes = [8, 128], strides = [1, 1]} : vector<8x512xf32> to vector<8x128xf32>
    %294 = arith.negf %293 : vector<8x128xf32>
    %295 = math.exp %294 : vector<8x128xf32>
    %cst_61 = arith.constant 1.000000e+00 : f32
    %296 = vector.broadcast %cst_61 : f32 to vector<8x128xf32>
    %297 = arith.addf %296, %295 : vector<8x128xf32>
    %298 = arith.divf %296, %297 : vector<8x128xf32>
    %299 = arith.mulf %290, %243 : vector<8x128xf32>
    %300 = arith.mulf %284, %292 : vector<8x128xf32>
    %301 = arith.addf %299, %300 : vector<8x128xf32>
    %302 = math.tanh %301 : vector<8x128xf32>
    %303 = arith.mulf %298, %302 : vector<8x128xf32>
    %304 = vector.extract_strided_slice %5 {offsets = [40, 0], sizes = [8, 512], strides = [1, 1]} : vector<64x512xf32> to vector<8x512xf32>
    %cst_62 = arith.constant dense<0.000000e+00> : vector<8x512xf32>
    %305 = tpu.matmul %273, %6, %cst_62 {dimension_numbers = #tpu.dot_dimension_numbers<[1], [0], [0], [1], [0, 0, 1, 1], [], []>} : vector<8x128xf32>, vector<128x512xf32>, vector<8x512xf32> -> vector<8x512xf32>
    %306 = arith.addf %304, %305 : vector<8x512xf32>
    %307 = vector.extract_strided_slice %306 {offsets = [0, 0], sizes = [8, 128], strides = [1, 1]} : vector<8x512xf32> to vector<8x128xf32>
    %308 = arith.negf %307 : vector<8x128xf32>
    %309 = math.exp %308 : vector<8x128xf32>
    %cst_63 = arith.constant 1.000000e+00 : f32
    %310 = vector.broadcast %cst_63 : f32 to vector<8x128xf32>
    %311 = arith.addf %310, %309 : vector<8x128xf32>
    %312 = arith.divf %310, %311 : vector<8x128xf32>
    %313 = vector.extract_strided_slice %306 {offsets = [0, 128], sizes = [8, 128], strides = [1, 1]} : vector<8x512xf32> to vector<8x128xf32>
    %314 = arith.negf %313 : vector<8x128xf32>
    %315 = math.exp %314 : vector<8x128xf32>
    %cst_64 = arith.constant 1.000000e+00 : f32
    %316 = vector.broadcast %cst_64 : f32 to vector<8x128xf32>
    %317 = arith.addf %316, %315 : vector<8x128xf32>
    %318 = arith.divf %316, %317 : vector<8x128xf32>
    %319 = vector.extract_strided_slice %306 {offsets = [0, 256], sizes = [8, 128], strides = [1, 1]} : vector<8x512xf32> to vector<8x128xf32>
    %320 = math.tanh %319 : vector<8x128xf32>
    %321 = vector.extract_strided_slice %306 {offsets = [0, 384], sizes = [8, 128], strides = [1, 1]} : vector<8x512xf32> to vector<8x128xf32>
    %322 = arith.negf %321 : vector<8x128xf32>
    %323 = math.exp %322 : vector<8x128xf32>
    %cst_65 = arith.constant 1.000000e+00 : f32
    %324 = vector.broadcast %cst_65 : f32 to vector<8x128xf32>
    %325 = arith.addf %324, %323 : vector<8x128xf32>
    %326 = arith.divf %324, %325 : vector<8x128xf32>
    %327 = arith.mulf %318, %271 : vector<8x128xf32>
    %328 = arith.mulf %312, %320 : vector<8x128xf32>
    %329 = arith.addf %327, %328 : vector<8x128xf32>
    %330 = math.tanh %329 : vector<8x128xf32>
    %331 = arith.mulf %326, %330 : vector<8x128xf32>
    %cst_66 = arith.constant dense<0.000000e+00> : vector<8x512xf32>
    %332 = tpu.matmul %331, %7, %cst_66 {dimension_numbers = #tpu.dot_dimension_numbers<[1], [0], [0], [1], [0, 0, 1, 1], [], []>} : vector<8x128xf32>, vector<128x512xf32>, vector<8x512xf32> -> vector<8x512xf32>
    %cst_67 = arith.constant dense<0.000000e+00> : vector<8x512xf32>
    %333 = tpu.matmul %303, %8, %cst_67 {dimension_numbers = #tpu.dot_dimension_numbers<[1], [0], [0], [1], [0, 0, 1, 1], [], []>} : vector<8x128xf32>, vector<128x512xf32>, vector<8x512xf32> -> vector<8x512xf32>
    %334 = arith.addf %332, %333 : vector<8x512xf32>
    %335 = vector.broadcast %9 : vector<1x512xf32> to vector<8x512xf32>
    %336 = arith.addf %334, %335 : vector<8x512xf32>
    %337 = vector.extract_strided_slice %336 {offsets = [0, 0], sizes = [8, 128], strides = [1, 1]} : vector<8x512xf32> to vector<8x128xf32>
    %338 = arith.negf %337 : vector<8x128xf32>
    %339 = math.exp %338 : vector<8x128xf32>
    %cst_68 = arith.constant 1.000000e+00 : f32
    %340 = vector.broadcast %cst_68 : f32 to vector<8x128xf32>
    %341 = arith.addf %340, %339 : vector<8x128xf32>
    %342 = arith.divf %340, %341 : vector<8x128xf32>
    %343 = vector.extract_strided_slice %336 {offsets = [0, 128], sizes = [8, 128], strides = [1, 1]} : vector<8x512xf32> to vector<8x128xf32>
    %344 = arith.negf %343 : vector<8x128xf32>
    %345 = math.exp %344 : vector<8x128xf32>
    %cst_69 = arith.constant 1.000000e+00 : f32
    %346 = vector.broadcast %cst_69 : f32 to vector<8x128xf32>
    %347 = arith.addf %346, %345 : vector<8x128xf32>
    %348 = arith.divf %346, %347 : vector<8x128xf32>
    %349 = vector.extract_strided_slice %336 {offsets = [0, 256], sizes = [8, 128], strides = [1, 1]} : vector<8x512xf32> to vector<8x128xf32>
    %350 = math.tanh %349 : vector<8x128xf32>
    %351 = vector.extract_strided_slice %336 {offsets = [0, 384], sizes = [8, 128], strides = [1, 1]} : vector<8x512xf32> to vector<8x128xf32>
    %352 = arith.negf %351 : vector<8x128xf32>
    %353 = math.exp %352 : vector<8x128xf32>
    %cst_70 = arith.constant 1.000000e+00 : f32
    %354 = vector.broadcast %cst_70 : f32 to vector<8x128xf32>
    %355 = arith.addf %354, %353 : vector<8x128xf32>
    %356 = arith.divf %354, %355 : vector<8x128xf32>
    %357 = arith.mulf %348, %301 : vector<8x128xf32>
    %358 = arith.mulf %342, %350 : vector<8x128xf32>
    %359 = arith.addf %357, %358 : vector<8x128xf32>
    %360 = math.tanh %359 : vector<8x128xf32>
    %361 = arith.mulf %356, %360 : vector<8x128xf32>
    %362 = vector.extract_strided_slice %5 {offsets = [48, 0], sizes = [8, 512], strides = [1, 1]} : vector<64x512xf32> to vector<8x512xf32>
    %cst_71 = arith.constant dense<0.000000e+00> : vector<8x512xf32>
    %363 = tpu.matmul %331, %6, %cst_71 {dimension_numbers = #tpu.dot_dimension_numbers<[1], [0], [0], [1], [0, 0, 1, 1], [], []>} : vector<8x128xf32>, vector<128x512xf32>, vector<8x512xf32> -> vector<8x512xf32>
    %364 = arith.addf %362, %363 : vector<8x512xf32>
    %365 = vector.extract_strided_slice %364 {offsets = [0, 0], sizes = [8, 128], strides = [1, 1]} : vector<8x512xf32> to vector<8x128xf32>
    %366 = arith.negf %365 : vector<8x128xf32>
    %367 = math.exp %366 : vector<8x128xf32>
    %cst_72 = arith.constant 1.000000e+00 : f32
    %368 = vector.broadcast %cst_72 : f32 to vector<8x128xf32>
    %369 = arith.addf %368, %367 : vector<8x128xf32>
    %370 = arith.divf %368, %369 : vector<8x128xf32>
    %371 = vector.extract_strided_slice %364 {offsets = [0, 128], sizes = [8, 128], strides = [1, 1]} : vector<8x512xf32> to vector<8x128xf32>
    %372 = arith.negf %371 : vector<8x128xf32>
    %373 = math.exp %372 : vector<8x128xf32>
    %cst_73 = arith.constant 1.000000e+00 : f32
    %374 = vector.broadcast %cst_73 : f32 to vector<8x128xf32>
    %375 = arith.addf %374, %373 : vector<8x128xf32>
    %376 = arith.divf %374, %375 : vector<8x128xf32>
    %377 = vector.extract_strided_slice %364 {offsets = [0, 256], sizes = [8, 128], strides = [1, 1]} : vector<8x512xf32> to vector<8x128xf32>
    %378 = math.tanh %377 : vector<8x128xf32>
    %379 = vector.extract_strided_slice %364 {offsets = [0, 384], sizes = [8, 128], strides = [1, 1]} : vector<8x512xf32> to vector<8x128xf32>
    %380 = arith.negf %379 : vector<8x128xf32>
    %381 = math.exp %380 : vector<8x128xf32>
    %cst_74 = arith.constant 1.000000e+00 : f32
    %382 = vector.broadcast %cst_74 : f32 to vector<8x128xf32>
    %383 = arith.addf %382, %381 : vector<8x128xf32>
    %384 = arith.divf %382, %383 : vector<8x128xf32>
    %385 = arith.mulf %376, %329 : vector<8x128xf32>
    %386 = arith.mulf %370, %378 : vector<8x128xf32>
    %387 = arith.addf %385, %386 : vector<8x128xf32>
    %388 = math.tanh %387 : vector<8x128xf32>
    %389 = arith.mulf %384, %388 : vector<8x128xf32>
    %cst_75 = arith.constant dense<0.000000e+00> : vector<8x512xf32>
    %390 = tpu.matmul %389, %7, %cst_75 {dimension_numbers = #tpu.dot_dimension_numbers<[1], [0], [0], [1], [0, 0, 1, 1], [], []>} : vector<8x128xf32>, vector<128x512xf32>, vector<8x512xf32> -> vector<8x512xf32>
    %cst_76 = arith.constant dense<0.000000e+00> : vector<8x512xf32>
    %391 = tpu.matmul %361, %8, %cst_76 {dimension_numbers = #tpu.dot_dimension_numbers<[1], [0], [0], [1], [0, 0, 1, 1], [], []>} : vector<8x128xf32>, vector<128x512xf32>, vector<8x512xf32> -> vector<8x512xf32>
    %392 = arith.addf %390, %391 : vector<8x512xf32>
    %393 = vector.broadcast %9 : vector<1x512xf32> to vector<8x512xf32>
    %394 = arith.addf %392, %393 : vector<8x512xf32>
    %395 = vector.extract_strided_slice %394 {offsets = [0, 0], sizes = [8, 128], strides = [1, 1]} : vector<8x512xf32> to vector<8x128xf32>
    %396 = arith.negf %395 : vector<8x128xf32>
    %397 = math.exp %396 : vector<8x128xf32>
    %cst_77 = arith.constant 1.000000e+00 : f32
    %398 = vector.broadcast %cst_77 : f32 to vector<8x128xf32>
    %399 = arith.addf %398, %397 : vector<8x128xf32>
    %400 = arith.divf %398, %399 : vector<8x128xf32>
    %401 = vector.extract_strided_slice %394 {offsets = [0, 128], sizes = [8, 128], strides = [1, 1]} : vector<8x512xf32> to vector<8x128xf32>
    %402 = arith.negf %401 : vector<8x128xf32>
    %403 = math.exp %402 : vector<8x128xf32>
    %cst_78 = arith.constant 1.000000e+00 : f32
    %404 = vector.broadcast %cst_78 : f32 to vector<8x128xf32>
    %405 = arith.addf %404, %403 : vector<8x128xf32>
    %406 = arith.divf %404, %405 : vector<8x128xf32>
    %407 = vector.extract_strided_slice %394 {offsets = [0, 256], sizes = [8, 128], strides = [1, 1]} : vector<8x512xf32> to vector<8x128xf32>
    %408 = math.tanh %407 : vector<8x128xf32>
    %409 = vector.extract_strided_slice %394 {offsets = [0, 384], sizes = [8, 128], strides = [1, 1]} : vector<8x512xf32> to vector<8x128xf32>
    %410 = arith.negf %409 : vector<8x128xf32>
    %411 = math.exp %410 : vector<8x128xf32>
    %cst_79 = arith.constant 1.000000e+00 : f32
    %412 = vector.broadcast %cst_79 : f32 to vector<8x128xf32>
    %413 = arith.addf %412, %411 : vector<8x128xf32>
    %414 = arith.divf %412, %413 : vector<8x128xf32>
    %415 = arith.mulf %406, %359 : vector<8x128xf32>
    %416 = arith.mulf %400, %408 : vector<8x128xf32>
    %417 = arith.addf %415, %416 : vector<8x128xf32>
    %418 = math.tanh %417 : vector<8x128xf32>
    %419 = arith.mulf %414, %418 : vector<8x128xf32>
    %420 = vector.extract_strided_slice %5 {offsets = [56, 0], sizes = [8, 512], strides = [1, 1]} : vector<64x512xf32> to vector<8x512xf32>
    %cst_80 = arith.constant dense<0.000000e+00> : vector<8x512xf32>
    %421 = tpu.matmul %389, %6, %cst_80 {dimension_numbers = #tpu.dot_dimension_numbers<[1], [0], [0], [1], [0, 0, 1, 1], [], []>} : vector<8x128xf32>, vector<128x512xf32>, vector<8x512xf32> -> vector<8x512xf32>
    %422 = arith.addf %420, %421 : vector<8x512xf32>
    %423 = vector.extract_strided_slice %422 {offsets = [0, 0], sizes = [8, 128], strides = [1, 1]} : vector<8x512xf32> to vector<8x128xf32>
    %424 = arith.negf %423 : vector<8x128xf32>
    %425 = math.exp %424 : vector<8x128xf32>
    %cst_81 = arith.constant 1.000000e+00 : f32
    %426 = vector.broadcast %cst_81 : f32 to vector<8x128xf32>
    %427 = arith.addf %426, %425 : vector<8x128xf32>
    %428 = arith.divf %426, %427 : vector<8x128xf32>
    %429 = vector.extract_strided_slice %422 {offsets = [0, 128], sizes = [8, 128], strides = [1, 1]} : vector<8x512xf32> to vector<8x128xf32>
    %430 = arith.negf %429 : vector<8x128xf32>
    %431 = math.exp %430 : vector<8x128xf32>
    %cst_82 = arith.constant 1.000000e+00 : f32
    %432 = vector.broadcast %cst_82 : f32 to vector<8x128xf32>
    %433 = arith.addf %432, %431 : vector<8x128xf32>
    %434 = arith.divf %432, %433 : vector<8x128xf32>
    %435 = vector.extract_strided_slice %422 {offsets = [0, 256], sizes = [8, 128], strides = [1, 1]} : vector<8x512xf32> to vector<8x128xf32>
    %436 = math.tanh %435 : vector<8x128xf32>
    %437 = vector.extract_strided_slice %422 {offsets = [0, 384], sizes = [8, 128], strides = [1, 1]} : vector<8x512xf32> to vector<8x128xf32>
    %438 = arith.negf %437 : vector<8x128xf32>
    %439 = math.exp %438 : vector<8x128xf32>
    %cst_83 = arith.constant 1.000000e+00 : f32
    %440 = vector.broadcast %cst_83 : f32 to vector<8x128xf32>
    %441 = arith.addf %440, %439 : vector<8x128xf32>
    %442 = arith.divf %440, %441 : vector<8x128xf32>
    %443 = arith.mulf %434, %387 : vector<8x128xf32>
    %444 = arith.mulf %428, %436 : vector<8x128xf32>
    %445 = arith.addf %443, %444 : vector<8x128xf32>
    %446 = math.tanh %445 : vector<8x128xf32>
    %447 = arith.mulf %442, %446 : vector<8x128xf32>
    %cst_84 = arith.constant dense<0.000000e+00> : vector<8x512xf32>
    %448 = tpu.matmul %447, %7, %cst_84 {dimension_numbers = #tpu.dot_dimension_numbers<[1], [0], [0], [1], [0, 0, 1, 1], [], []>} : vector<8x128xf32>, vector<128x512xf32>, vector<8x512xf32> -> vector<8x512xf32>
    %cst_85 = arith.constant dense<0.000000e+00> : vector<8x512xf32>
    %449 = tpu.matmul %419, %8, %cst_85 {dimension_numbers = #tpu.dot_dimension_numbers<[1], [0], [0], [1], [0, 0, 1, 1], [], []>} : vector<8x128xf32>, vector<128x512xf32>, vector<8x512xf32> -> vector<8x512xf32>
    %450 = arith.addf %448, %449 : vector<8x512xf32>
    %451 = vector.broadcast %9 : vector<1x512xf32> to vector<8x512xf32>
    %452 = arith.addf %450, %451 : vector<8x512xf32>
    %453 = vector.extract_strided_slice %452 {offsets = [0, 0], sizes = [8, 128], strides = [1, 1]} : vector<8x512xf32> to vector<8x128xf32>
    %454 = arith.negf %453 : vector<8x128xf32>
    %455 = math.exp %454 : vector<8x128xf32>
    %cst_86 = arith.constant 1.000000e+00 : f32
    %456 = vector.broadcast %cst_86 : f32 to vector<8x128xf32>
    %457 = arith.addf %456, %455 : vector<8x128xf32>
    %458 = arith.divf %456, %457 : vector<8x128xf32>
    %459 = vector.extract_strided_slice %452 {offsets = [0, 128], sizes = [8, 128], strides = [1, 1]} : vector<8x512xf32> to vector<8x128xf32>
    %460 = arith.negf %459 : vector<8x128xf32>
    %461 = math.exp %460 : vector<8x128xf32>
    %cst_87 = arith.constant 1.000000e+00 : f32
    %462 = vector.broadcast %cst_87 : f32 to vector<8x128xf32>
    %463 = arith.addf %462, %461 : vector<8x128xf32>
    %464 = arith.divf %462, %463 : vector<8x128xf32>
    %465 = vector.extract_strided_slice %452 {offsets = [0, 256], sizes = [8, 128], strides = [1, 1]} : vector<8x512xf32> to vector<8x128xf32>
    %466 = math.tanh %465 : vector<8x128xf32>
    %467 = vector.extract_strided_slice %452 {offsets = [0, 384], sizes = [8, 128], strides = [1, 1]} : vector<8x512xf32> to vector<8x128xf32>
    %468 = arith.negf %467 : vector<8x128xf32>
    %469 = math.exp %468 : vector<8x128xf32>
    %cst_88 = arith.constant 1.000000e+00 : f32
    %470 = vector.broadcast %cst_88 : f32 to vector<8x128xf32>
    %471 = arith.addf %470, %469 : vector<8x128xf32>
    %472 = arith.divf %470, %471 : vector<8x128xf32>
    %473 = arith.mulf %464, %417 : vector<8x128xf32>
    %474 = arith.mulf %458, %466 : vector<8x128xf32>
    %475 = arith.addf %473, %474 : vector<8x128xf32>
    %476 = math.tanh %475 : vector<8x128xf32>
    %477 = arith.mulf %472, %476 : vector<8x128xf32>
    %c0_89 = arith.constant 0 : index
    %c0_90 = arith.constant 0 : index
    %478 = vector.load %arg7[%c0_89, %c0_90] : memref<128x64xf32, #tpu.memory_space<vmem>>, vector<128x64xf32>
    %cst_91 = arith.constant dense<0.000000e+00> : vector<8x64xf32>
    %479 = tpu.matmul %477, %478, %cst_91 {dimension_numbers = #tpu.dot_dimension_numbers<[1], [0], [0], [1], [0, 0, 1, 1], [], []>} : vector<8x128xf32>, vector<128x64xf32>, vector<8x64xf32> -> vector<8x64xf32>
    %c0_92 = arith.constant 0 : index
    %c0_93 = arith.constant 0 : index
    %480 = vector.load %arg8[%c0_92, %c0_93] : memref<1x64xf32, #tpu.memory_space<vmem>>, vector<1x64xf32>
    %481 = vector.broadcast %480 : vector<1x64xf32> to vector<8x64xf32>
    %482 = arith.addf %479, %481 : vector<8x64xf32>
    %cst_94 = arith.constant 0.000000e+00 : f32
    %483 = vector.broadcast %cst_94 : f32 to vector<8x64xf32>
    %484 = arith.maximumf %482, %483 : vector<8x64xf32>
    %c0_95 = arith.constant 0 : index
    %c0_96 = arith.constant 0 : index
    %485 = vector.load %arg9[%c0_95, %c0_96] : memref<64x32xf32, #tpu.memory_space<vmem>>, vector<64x32xf32>
    %cst_97 = arith.constant dense<0.000000e+00> : vector<8x32xf32>
    %486 = tpu.matmul %484, %485, %cst_97 {dimension_numbers = #tpu.dot_dimension_numbers<[1], [0], [0], [1], [0, 0, 1, 1], [], []>} : vector<8x64xf32>, vector<64x32xf32>, vector<8x32xf32> -> vector<8x32xf32>
    %c0_98 = arith.constant 0 : index
    %c0_99 = arith.constant 0 : index
    %487 = vector.load %arg10[%c0_98, %c0_99] : memref<1x32xf32, #tpu.memory_space<vmem>>, vector<1x32xf32>
    %488 = vector.broadcast %487 : vector<1x32xf32> to vector<8x32xf32>
    %489 = arith.addf %486, %488 : vector<8x32xf32>
    %cst_100 = arith.constant 0.000000e+00 : f32
    %490 = vector.broadcast %cst_100 : f32 to vector<8x32xf32>
    %491 = arith.maximumf %489, %490 : vector<8x32xf32>
    %c0_101 = arith.constant 0 : index
    %c0_102 = arith.constant 0 : index
    %492 = vector.load %arg11[%c0_101, %c0_102] : memref<32x1xf32, #tpu.memory_space<vmem>>, vector<32x1xf32>
    %cst_103 = arith.constant dense<0.000000e+00> : vector<8x1xf32>
    %493 = tpu.matmul %491, %492, %cst_103 {dimension_numbers = #tpu.dot_dimension_numbers<[1], [0], [0], [1], [0, 0, 1, 1], [], []>} : vector<8x32xf32>, vector<32x1xf32>, vector<8x1xf32> -> vector<8x1xf32>
    %c0_104 = arith.constant 0 : index
    %c0_105 = arith.constant 0 : index
    %494 = vector.load %arg12[%c0_104, %c0_105] : memref<1x1xf32, #tpu.memory_space<vmem>>, vector<1x1xf32>
    %495 = vector.broadcast %494 : vector<1x1xf32> to vector<8x1xf32>
    %496 = arith.addf %493, %495 : vector<8x1xf32>
    %c0_106 = arith.constant 0 : index
    %c0_107 = arith.constant 0 : index
    %497 = vector.load %arg13[%c0_106, %c0_107] : memref<8x1xf32, #tpu.memory_space<vmem>>, vector<8x1xf32>
    tpu.vector_store %arg13[%c0_106, %c0_107], %496 {strides = array<i32>} : memref<8x1xf32, #tpu.memory_space<vmem>>, vector<8x1xf32>,
    return
  }
}

</mosaic_0001>

<bundles_post_ra>
// kernel: stock_lstm_forward.1
= control target key start
LH: loop header
LB: loop body
LE: loop exit
PB: predicated region body
PF: predicated region fallthrough
CT: control target
= control target key end

     0   :  { %s8509_s0 = inlined_call_operand.vmem [shape: f32[64,8], index: 0, kind: input, shape index: {}]   ;;  %s8510_s1 = inlined_call_operand.vmem [shape: f32[8,512], index: 1, kind: input, shape index: {}]   ;;  %s8511_s2 = inlined_call_operand.vmem [shape: f32[128,512], index: 2, kind: input, shape index: {}]   ;;  %s8512_s3 = inlined_call_operand.vmem [shape: f32[1,512], index: 3, kind: input, shape index: {}]   ;;  %s8513_s4 = inlined_call_operand.hbm [shape: f32[128,512], index: 4, kind: input, shape index: {}]   ;;  %s8514_s5 = inlined_call_operand.hbm [shape: f32[128,512], index: 5, kind: input, shape index: {}]   ;;  %s8515_s6 = inlined_call_operand.vmem [shape: f32[1,512], index: 6, kind: input, shape index: {}]   ;;  %s8516_s7 = inlined_call_operand.vmem [shape: f32[128,64], index: 7, kind: input, shape index: {}]   ;;  %s8517_s8 = inlined_call_operand.vmem [shape: f32[1,64], index: 8, kind: input, shape index: {}]   ;;  %s8518_s9 = inlined_call_operand.vmem [shape: f32[64,32], index: 9, kind: input, shape index: {}]   ;;  %s8519_s10 = inlined_call_operand.vmem [shape: f32[1,32], index: 10, kind: input, shape index: {}]   ;;  %s8520_s11 = inlined_call_operand.vmem [shape: f32[32,1], index: 11, kind: input, shape index: {}]   ;;  %s8521_s12 = inlined_call_operand.<no memory space> [shape: f32[1,1], index: 12, kind: input, shape index: {}]   ;;  %s8522_s13 = inlined_call_operand.vmem [shape: f32[8,1], index: 13, kind: output, shape index: {}]  }
   0x1   :  { %v18_v0 = vstv %s8521_s12 }
   0x2   :  { %19 = vst [vmem:[#allocation2] sm:$0x1] %v18_v0 }
   0x3   :  { %20 = vsyncpa [#allocation4], 0 }
   0x4   :  { %21 = vsyncpa [#allocation6], 0  ;;  %s6856_s27 = smov [#allocation3]   ;;  %s6808_s14 = scalar_lea.hbm %s8513_s4, 8192 }
   0x5   :  { %s35_s28 = sshll.u32 %s6856_s27, 4  ;;  %p6809_p0 = scmp.ne.s32.totalorder %s8513_s4, %s6808_s14  ;;  %s36_s28 = int_to_ptr.vmem [resolvable:$true] %s35_s28 }
   0x6   :  { %p6812_p1 = scmp.lt.u32.totalorder %s6808_s14, %s8513_s4 }
   0x8   :  { %p6814_p2 = pnand %p6812_p1, %p6809_p0 }
   0xa   :  { %6817 = shalt.err (!%p6814_p2)
}
   0xb   :  { %s6818_s12 = scalar_lea.vmem %s36_s28, 8192  ;;  %p6823_p4 = scmp.lt.s32.totalorder %s36_s28, %s36_s28 }
   0xc   :  { %p6819_p3 = scmp.ne.s32.totalorder %s36_s28, %s6818_s12  ;;  %p6824_p5 = scmp.lt.s32.totalorder %s6818_s12, %s6818_s12 }
   0xe   :  { %p6825_p6 = por %p6824_p5, %p6823_p4 }
  0x10   :  { %p6826_p7 = pnand %p6825_p6, %p6819_p3 }
  0x12   :  { %6829 = shalt.err (!%p6826_p7)
}
  0x13   :  { %s6857_s19 = smov 512   ;;  %s6858_s20 = smov 32  }
  0x14   :  { %41 = dma.hbm_to_vmem [thread:$0]  %s8513_s4, 8192, %s36_s28, [#allocation4], %s6857_s19, %s6857_s19, %s6858_s20  }
  0x15   :  { %s6859_s23 = smov [#allocation5]   ;;  %s6830_s27 = scalar_lea.hbm %s8514_s5, 8192 }
  0x16   :  { %s47_s24 = sshll.u32 %s6859_s23, 4  ;;  %p6831_p8 = scmp.ne.s32.totalorder %s8514_s5, %s6830_s27  ;;  %s48_s24 = int_to_ptr.vmem [resolvable:$true] %s47_s24 }
  0x17   :  { %p6834_p9 = scmp.lt.u32.totalorder %s6830_s27, %s8514_s5 }
  0x19   :  { %p6836_p10 = pnand %p6834_p9, %p6831_p8 }
  0x1b   :  { %6839 = shalt.err (!%p6836_p10)
}
  0x1c   :  { %s6840_s16 = scalar_lea.vmem %s48_s24, 8192  ;;  %p6845_p12 = scmp.lt.s32.totalorder %s48_s24, %s48_s24 }
  0x1d   :  { %p6841_p11 = scmp.ne.s32.totalorder %s48_s24, %s6840_s16  ;;  %p6846_p13 = scmp.lt.s32.totalorder %s6840_s16, %s6840_s16 }
  0x1f   :  { %p6847_p0 = por %p6846_p13, %p6845_p12 }
  0x21   :  { %p6848_p1 = pnand %p6847_p0, %p6841_p11 }
  0x23   :  { %6851 = shalt.err (!%p6848_p1)
}
  0x24   :  { %53 = dma.hbm_to_vmem [thread:$0]  %s8514_s5, 8192, %s48_s24, [#allocation6], %s6857_s19, %s6857_s19, %s6858_s20  }
  0x25   :  { %6852 = dma.done.wait [#allocation4], 8192  }
  0x26   :  { %6853 = vsyncadd [#allocation4], 4294959104 }
  0x27   :  { %6854 = dma.done.wait [#allocation6], 8192  }
  0x28   :  { %6855 = vsyncadd [#allocation6], 4294959104  ;;  %v8523_v1 = vmov 0.0   ;;  %v83_v2 = vld [vmem:[%s8510_s1 + $0x8] sm:$0xff]  ;;  %v85_v3 = vld [vmem:[%s8510_s1 + $0x18] sm:$0xff]  ;;  %vm108_vm0 = vcmask 64512  }
  0x29   :  { %197 = vmatprep.mubr.f32.mxu0 %v8523_v1  ;;  %310 = vmatprep.mubr.f32.mxu1 %v8523_v1  ;;  %v82_v4 = vld [vmem:[%s8510_s1] sm:$0xff]  ;;  %v84_v5 = vld [vmem:[%s8510_s1 + $0x10] sm:$0xff]  ;;  %v360_v7 = vld [vmem:[%s8511_s2 + $0x8] sm:$0xff]  ;;  %vm6862_vm1 = vmmov 0   ;;  %vm4538_vm2 = vcmask 523264   ;;  %vm4624_vm3 = vcmask 261120  }
  0x2a   :  { %133 = vmatprep.subr.mxu0 %v83_v2  ;;  %246 = vmatprep.subr.mxu1 %v85_v3  ;;  %v74_v6 = vld [vmem:[%s8509_s0] sm:$0xff]  ;;  %v364_v8 = vld [vmem:[%s8511_s2 + $0x28] sm:$0xff]  ;;  %v362_v9 = vld [vmem:[%s8511_s2 + $0x18] sm:$0xff]  ;;  %vm4698_vm4 = vcmask 7168  }
  0x2b   :  { %134 = vmatpush1.msra.mxu0 %v82_v4  ;;  %247 = vmatpush1.msra.mxu1 %v84_v5  ;;  %v366_v10 = vld [vmem:[%s8511_s2 + $0x38] sm:$0xff]  ;;  %v6991_v11 = vpack.c.bf16 %v364_v8, %v360_v7  ;;  %v359_v13 = vld [vmem:[%s8511_s2] sm:$0xff]  ;;  %v361_v15 = vld [vmem:[%s8511_s2 + $0x10] sm:$0xff] }
  0x2c   :  { %4706 = vmatmul.mubr.msk.f32.vlgmr.msra.gmra.mrb[0].mxu0 %vm108_vm0, %v74_v6  ;;  %4714 = vmatmul.mubr.msk.f32.vlgmr.msra.gmra.mrb[0].mxu1 %vm108_vm0, %v74_v6  ;;  %v6993_v12 = vpack.c.bf16 %v366_v10, %v362_v9  ;;  %v363_v14 = vld [vmem:[%s8511_s2 + $0x20] sm:$0xff]  ;;  %v365_v17 = vld [vmem:[%s8511_s2 + $0x30] sm:$0xff]  ;;  %v75_v18 = vld [vmem:[%s8509_s0 + $0x8] sm:$0xff] }
  0x2d   :  { %8724 = vst [vmem:[#allocation9_spill] sm:$0xff] %v6991_v11  ;;  %v7004_v16 = vpack.c.bf16 %v363_v14, %v359_v13  ;;  %203 = vmatprep.mubr.f32.mxu0 %v8523_v1  ;;  %316 = vmatprep.mubr.f32.mxu1 %v8523_v1  ;;  %v368_v19 = vld [vmem:[%s8511_s2 + $0x48] sm:$0xff]  ;;  %v7019_v20 = vpack.c.bf16 %v365_v17, %v361_v15  ;;  %v370_v22 = vld [vmem:[%s8511_s2 + $0x58] sm:$0xff]  ;;  %v367_v26 = vld [vmem:[%s8511_s2 + $0x40] sm:$0xff] }
  0x2e   :  { %8725 = vst [vmem:[#allocation10_spill] sm:$0xff] %v6993_v12  ;;  %4872 = vmatprep.subr.bf16.mxu0 %v6991_v11  ;;  %4904 = vmatprep.subr.bf16.mxu1 %v6993_v12  ;;  %v372_v21 = vld [vmem:[%s8511_s2 + $0x68] sm:$0xff]  ;;  %v374_v23 = vld [vmem:[%s8511_s2 + $0x78] sm:$0xff]  ;;  %v371_v27 = vld [vmem:[%s8511_s2 + $0x60] sm:$0xff] }
  0x2f   :  { %4874 = vmatpush1.bf16.msra.mxu0 %v7004_v16  ;;  %v7031_v24 = vpack.c.bf16 %v372_v21, %v368_v19  ;;  %v7033_v25 = vpack.c.bf16 %v374_v23, %v370_v22  ;;  %v369_v28 = vld [vmem:[%s8511_s2 + $0x50] sm:$0xff]  ;;  %4906 = vmatpush1.bf16.msra.mxu1 %v7019_v20  ;;  %v7046_v29 = vpack.c.bf16 %v371_v27, %v367_v26  ;;  %v376_v32 = vld [vmem:[%s8511_s2 + $0x88] sm:$0xff]  ;;  %v378_v35 = vld [vmem:[%s8511_s2 + $0x98] sm:$0xff] }
  0x30   :  { %4707 = vmatmul.mubr.msk.f32.gmra.mrb[2].mxu0 %vm108_vm0, %v75_v18  ;;  %v373_v30 = vld [vmem:[%s8511_s2 + $0x70] sm:$0xff]  ;;  %4715 = vmatmul.mubr.msk.f32.gmra.mrb[2].mxu1 %vm108_vm0, %v75_v18  ;;  %v380_v34 = vld [vmem:[%s8511_s2 + $0xa8] sm:$0xff]  ;;  %v382_v36 = vld [vmem:[%s8511_s2 + $0xb8] sm:$0xff] }
  0x31   :  { %v76_v31 = vld [vmem:[%s8509_s0 + $0x10] sm:$0xff]  ;;  %4876 = vmatprep.subr.bf16.mxu0 %v7031_v24  ;;  %v7059_v33 = vpack.c.bf16 %v373_v30, %v369_v28  ;;  %4908 = vmatprep.subr.bf16.mxu1 %v7033_v25  ;;  %v7072_v37 = vpack.c.bf16 %v380_v34, %v376_v32  ;;  %v7074_v38 = vpack.c.bf16 %v382_v36, %v378_v35  ;;  %v375_v39 = vld [vmem:[%s8511_s2 + $0x80] sm:$0xff]  ;;  %v77_v44 = vld [vmem:[%s8509_s0 + $0x18] sm:$0xff] }
  0x32   :  { %209 = vmatprep.mubr.f32.mxu0 %v8523_v1  ;;  %v379_v40 = vld [vmem:[%s8511_s2 + $0xa0] sm:$0xff]  ;;  %v377_v41 = vld [vmem:[%s8511_s2 + $0x90] sm:$0xff]  ;;  %322 = vmatprep.mubr.f32.mxu1 %v8523_v1  ;;  %v384_v45 = vld [vmem:[%s8511_s2 + $0xc8] sm:$0xff] }
  0x33   :  { %8726 = vst [vmem:[#allocation11_spill] sm:$0xff] %v7072_v37  ;;  %8727 = vst [vmem:[#allocation12_spill] sm:$0xff] %v7074_v38  ;;  %4878 = vmatpush1.bf16.msra.mxu0 %v7046_v29  ;;  %v7087_v42 = vpack.c.bf16 %v379_v40, %v375_v39  ;;  %v381_v43 = vld [vmem:[%s8511_s2 + $0xb0] sm:$0xff]  ;;  %4910 = vmatpush1.bf16.msra.mxu1 %v7059_v33  ;;  %v388_v47 = vld [vmem:[%s8511_s2 + $0xe8] sm:$0xff] }
  0x34   :  { %4708 = vmatmul.mubr.msk.f32.gmra.mrb[4].mxu0 %vm108_vm0, %v76_v31  ;;  %v7100_v46 = vpack.c.bf16 %v381_v43, %v377_v41  ;;  %v386_v48 = vld [vmem:[%s8511_s2 + $0xd8] sm:$0xff]  ;;  %4716 = vmatmul.mubr.msk.f32.gmra.mrb[4].mxu1 %vm108_vm0, %v76_v31  ;;  %v7113_v50 = vpack.c.bf16 %v388_v47, %v384_v45  ;;  %v383_v51 = vld [vmem:[%s8511_s2 + $0xc0] sm:$0xff]  ;;  %v385_v53 = vld [vmem:[%s8511_s2 + $0xd0] sm:$0xff] }
  0x35   :  { %8728 = vst [vmem:[#allocation13_spill] sm:$0xff] %v7087_v42  ;;  %v390_v49 = vld [vmem:[%s8511_s2 + $0xf8] sm:$0xff]  ;;  %4880 = vmatprep.subr.bf16.mxu0 %v7072_v37  ;;  %v387_v52 = vld [vmem:[%s8511_s2 + $0xe0] sm:$0xff]  ;;  %4912 = vmatprep.subr.bf16.mxu1 %v7074_v38  ;;  %v389_v55 = vld [vmem:[%s8511_s2 + $0xf0] sm:$0xff] }
  0x36   :  { %8729 = vst [vmem:[#allocation14_spill] sm:$0xff] %v7100_v46  ;;  %8730 = vst [vmem:[#allocation15_spill] sm:$0xff] %v7113_v50  ;;  %215 = vmatprep.mubr.f32.mxu0 %v8523_v1  ;;  %v7126_v54 = vpack.c.bf16 %v390_v49, %v386_v48  ;;  %v392_v56 = vld [vmem:[%s8511_s2 + $0x108] sm:$0xff]  ;;  %328 = vmatprep.mubr.f32.mxu1 %v8523_v1  ;;  %v7136_v57 = vpack.c.bf16 %v387_v52, %v383_v51  ;;  %v394_v59 = vld [vmem:[%s8511_s2 + $0x118] sm:$0xff] }
  0x37   :  { %4882 = vmatpush1.bf16.msra.mxu0 %v7087_v42  ;;  %v396_v58 = vld [vmem:[%s8511_s2 + $0x128] sm:$0xff]  ;;  %v398_v60 = vld [vmem:[%s8511_s2 + $0x138] sm:$0xff]  ;;  %4914 = vmatpush1.bf16.msra.mxu1 %v7100_v46  ;;  %v7149_v61 = vpack.c.bf16 %v389_v55, %v385_v53  ;;  %v391_v62 = vld [vmem:[%s8511_s2 + $0x100] sm:$0xff] }
  0x38   :  { %8731 = vst [vmem:[#allocation16_spill] sm:$0xff] %v7126_v54  ;;  %8732 = vst [vmem:[#allocation17_spill] sm:$0xff] %v7136_v57  ;;  %4709 = vmatmul.mubr.msk.f32.gmra.mrb[6].mxu0 %vm108_vm0, %v77_v44  ;;  %v395_v63 = vld [vmem:[%s8511_s2 + $0x120] sm:$0xff]  ;;  %4717 = vmatmul.mubr.msk.f32.gmra.mrb[6].mxu1 %vm108_vm0, %v77_v44  ;;  %v7162_v2 = vpack.c.bf16 %v396_v58, %v392_v56  ;;  %v393_v3 = vld [vmem:[%s8511_s2 + $0x110] sm:$0xff]  ;;  %v7172_v5 = vpack.c.bf16 %v398_v60, %v394_v59 }
  0x39   :  { %8733 = vst [vmem:[#allocation18_spill] sm:$0xff] %v7149_v61  ;;  %4884 = vmatprep.subr.bf16.mxu0 %v7113_v50  ;;  %v78_v0 = vld [vmem:[%s8509_s0 + $0x20] sm:$0xff]  ;;  %v397_v4 = vld [vmem:[%s8511_s2 + $0x130] sm:$0xff]  ;;  %4916 = vmatprep.subr.bf16.mxu1 %v7126_v54  ;;  %v400_v6 = vld [vmem:[%s8511_s2 + $0x148] sm:$0xff]  ;;  %v7182_v8 = vpack.c.bf16 %v395_v63, %v391_v62 }
  0x3a   :  { %8734 = vst [vmem:[#allocation19_spill] sm:$0xff] %v7162_v2  ;;  %221 = vmatprep.mubr.f32.mxu0 %v8523_v1  ;;  %8735 = vst [vmem:[#allocation20_spill] sm:$0xff] %v7172_v5  ;;  %v404_v7 = vld [vmem:[%s8511_s2 + $0x168] sm:$0xff]  ;;  %334 = vmatprep.mubr.f32.mxu1 %v8523_v1  ;;  %v402_v9 = vld [vmem:[%s8511_s2 + $0x158] sm:$0xff]  ;;  %v7192_v13 = vpack.c.bf16 %v397_v4, %v393_v3 }
  0x3b   :  { %4886 = vmatpush1.bf16.msra.mxu0 %v7136_v57  ;;  %8736 = vst [vmem:[#allocation21_spill] sm:$0xff] %v7182_v8  ;;  %v406_v10 = vld [vmem:[%s8511_s2 + $0x178] sm:$0xff]  ;;  %4918 = vmatpush1.bf16.msra.mxu1 %v7149_v61  ;;  %v399_v14 = vld [vmem:[%s8511_s2 + $0x140] sm:$0xff]  ;;  %v79_v17 = vld [vmem:[%s8509_s0 + $0x28] sm:$0xff]  ;;  %v7205_v18 = vpack.c.bf16 %v404_v7, %v400_v6 }
  0x3c   :  { %4710 = vmatmul.mubr.msk.f32.gmra.mrb[8].mxu0 %vm108_vm0, %v78_v0  ;;  %8737 = vst [vmem:[#allocation22_spill] sm:$0xff] %v7192_v13  ;;  %v403_v15 = vld [vmem:[%s8511_s2 + $0x160] sm:$0xff]  ;;  %4718 = vmatmul.mubr.msk.f32.gmra.mrb[8].mxu1 %vm108_vm0, %v78_v0  ;;  %v401_v19 = vld [vmem:[%s8511_s2 + $0x150] sm:$0xff]  ;;  %v7215_v22 = vpack.c.bf16 %v406_v10, %v402_v9  ;;  %v408_v23 = vld [vmem:[%s8511_s2 + $0x188] sm:$0xff] }
  0x3d   :  { %4888 = vmatprep.subr.bf16.mxu0 %v7162_v2  ;;  %8738 = vst [vmem:[#allocation23_spill] sm:$0xff] %v7205_v18  ;;  %v405_v21 = vld [vmem:[%s8511_s2 + $0x170] sm:$0xff]  ;;  %4920 = vmatprep.subr.bf16.mxu1 %v7172_v5  ;;  %v412_v26 = vld [vmem:[%s8511_s2 + $0x1a8] sm:$0xff]  ;;  %v7225_v27 = vpack.c.bf16 %v403_v15, %v399_v14  ;;  %v410_v28 = vld [vmem:[%s8511_s2 + $0x198] sm:$0xff] }
  0x3e   :  { %227 = vmatprep.mubr.f32.mxu0 %v8523_v1  ;;  %8739 = vst [vmem:[#allocation24_spill] sm:$0xff] %v7215_v22  ;;  %340 = vmatprep.mubr.f32.mxu1 %v8523_v1  ;;  %v414_v30 = vld [vmem:[%s8511_s2 + $0x1b8] sm:$0xff]  ;;  %v7235_v31 = vpack.c.bf16 %v405_v21, %v401_v19  ;;  %v407_v32 = vld [vmem:[%s8511_s2 + $0x180] sm:$0xff]  ;;  %v80_v35 = vld [vmem:[%s8509_s0 + $0x30] sm:$0xff]  ;;  %v7248_v36 = vpack.c.bf16 %v412_v26, %v408_v23 }
  0x3f   :  { %4890 = vmatpush1.bf16.msra.mxu0 %v7182_v8  ;;  %8740 = vst [vmem:[#allocation25_spill] sm:$0xff] %v7225_v27  ;;  %4922 = vmatpush1.bf16.msra.mxu1 %v7192_v13  ;;  %v411_v34 = vld [vmem:[%s8511_s2 + $0x1a0] sm:$0xff]  ;;  %v409_v39 = vld [vmem:[%s8511_s2 + $0x190] sm:$0xff]  ;;  %v7258_v41 = vpack.c.bf16 %v414_v30, %v410_v28  ;;  %v416_v43 = vld [vmem:[%s8511_s2 + $0x1c8] sm:$0xff] }
  0x40   :  { %4711 = vmatmul.mubr.msk.f32.gmra.mrb[10].mxu0 %vm108_vm0, %v79_v17  ;;  %8741 = vst [vmem:[#allocation26_spill] sm:$0xff] %v7235_v31  ;;  %4719 = vmatmul.mubr.msk.f32.gmra.mrb[10].mxu1 %vm108_vm0, %v79_v17  ;;  %8742 = vst [vmem:[#allocation27_spill] sm:$0xff] %v7248_v36  ;;  %v413_v40 = vld [vmem:[%s8511_s2 + $0x1b0] sm:$0xff]  ;;  %v420_v44 = vld [vmem:[%s8511_s2 + $0x1e8] sm:$0xff]  ;;  %v7268_v45 = vpack.c.bf16 %v411_v34, %v407_v32 }
  0x41   :  { %4892 = vmatprep.subr.bf16.mxu0 %v7205_v18  ;;  %4924 = vmatprep.subr.bf16.mxu1 %v7215_v22  ;;  %8743 = vst [vmem:[#allocation28_spill] sm:$0xff] %v7258_v41  ;;  %v81_v47 = vld [vmem:[%s8509_s0 + $0x38] sm:$0xff]  ;;  %v7281_v51 = vpack.c.bf16 %v413_v40, %v409_v39  ;;  %v415_v52 = vld [vmem:[%s8511_s2 + $0x1c0] sm:$0xff]  ;;  %v417_v55 = vld [vmem:[%s8511_s2 + $0x1d0] sm:$0xff]  ;;  %v7294_v56 = vpack.c.bf16 %v420_v44, %v416_v43 }
  0x42   :  { %233 = vmatprep.mubr.f32.mxu0 %v8523_v1  ;;  %346 = vmatprep.mubr.f32.mxu1 %v8523_v1  ;;  %8744 = vst [vmem:[#allocation29_spill] sm:$0xff] %v7268_v45  ;;  %v418_v48 = vld [vmem:[%s8511_s2 + $0x1d8] sm:$0xff]  ;;  %v419_v53 = vld [vmem:[%s8511_s2 + $0x1e0] sm:$0xff]  ;;  %v421_v58 = vld [vmem:[%s8511_s2 + $0x1f0] sm:$0xff] }
  0x43   :  { %4894 = vmatpush1.bf16.msra.mxu0 %v7225_v27  ;;  %v422_v49 = vld [vmem:[%s8511_s2 + $0x1f8] sm:$0xff]  ;;  %4926 = vmatpush1.bf16.msra.mxu1 %v7235_v31  ;;  %8745 = vst [vmem:[#allocation30_spill] sm:$0xff] %v7281_v51  ;;  %8746 = vst [vmem:[#allocation31_spill] sm:$0xff] %v7294_v56  ;;  %v488_v59 = vld [vmem:[#allocation5 + $0x8] sm:$0xff]  ;;  %v7305_v3 = vpack.c.bf16 %v419_v53, %v415_v52  ;;  %v7309_v4 = vpack.c.bf16 %v421_v58, %v417_v55 }
  0x44   :  { %4712 = vmatmul.mubr.msk.f32.gmra.mrb[12].mxu0 %vm108_vm0, %v80_v35  ;;  %4720 = vmatmul.mubr.msk.f32.gmra.mrb[12].mxu1 %vm108_vm0, %v80_v35  ;;  %v492_v60 = vld [vmem:[#allocation5 + $0x28] sm:$0xff]  ;;  %v7301_v62 = vpack.c.bf16 %v422_v49, %v418_v48  ;;  %v490_v63 = vld [vmem:[#allocation5 + $0x18] sm:$0xff]  ;;  %v487_v7 = vld [vmem:[#allocation5] sm:$0xff] }
  0x45   :  { %4896 = vmatprep.subr.bf16.mxu0 %v7248_v36  ;;  %4928 = vmatprep.subr.bf16.mxu1 %v7258_v41  ;;  %v494_v0 = vld [vmem:[#allocation5 + $0x38] sm:$0xff]  ;;  %8748 = vst [vmem:[#allocation33_spill] sm:$0xff] %v7305_v3  ;;  %8749 = vst [vmem:[#allocation34_spill] sm:$0xff] %v7309_v4  ;;  %v7311_v6 = vpack.c.bf16 %v492_v60, %v488_v59  ;;  %v491_v9 = vld [vmem:[#allocation5 + $0x20] sm:$0xff] }
  0x46   :  { %239 = vmatprep.mubr.f32.mxu0 %v8523_v1  ;;  %8747 = vst [vmem:[#allocation32_spill] sm:$0xff] %v7301_v62  ;;  %352 = vmatprep.mubr.f32.mxu1 %v8523_v1  ;;  %v489_v10 = vld [vmem:[#allocation5 + $0x10] sm:$0xff]  ;;  %v7315_v14 = vpack.c.bf16 %v494_v0, %v490_v63  ;;  %v496_v17 = vld [vmem:[#allocation5 + $0x48] sm:$0xff]  ;;  %v498_v21 = vld [vmem:[#allocation5 + $0x58] sm:$0xff]  ;;  %v7321_v26 = vpack.c.bf16 %v491_v9, %v487_v7 }
  0x47   :  { %4898 = vmatpush1.bf16.msra.mxu0 %v7268_v45  ;;  %4930 = vmatpush1.bf16.msra.mxu1 %v7281_v51  ;;  %8750 = vst [vmem:[#allocation35_spill] sm:$0xff] %v7311_v6  ;;  %v493_v15 = vld [vmem:[#allocation5 + $0x30] sm:$0xff]  ;;  %v500_v19 = vld [vmem:[#allocation5 + $0x68] sm:$0xff]  ;;  %v502_v23 = vld [vmem:[#allocation5 + $0x78] sm:$0xff] }
  0x48   :  { %4713 = vmatmul.mubr.msk.f32.gmra.mrb[14].mxu0 %vm108_vm0, %v81_v47  ;;  %4721 = vmatmul.mubr.msk.f32.gmra.mrb[14].mxu1 %vm108_vm0, %v81_v47  ;;  %8751 = vst [vmem:[#allocation36_spill] sm:$0xff] %v7315_v14  ;;  %8752 = vst [vmem:[#allocation37_spill] sm:$0xff] %v7321_v26  ;;  %v7325_v28 = vpack.c.bf16 %v493_v15, %v489_v10  ;;  %v7327_v30 = vpack.c.bf16 %v500_v19, %v496_v17  ;;  %v495_v32 = vld [vmem:[#allocation5 + $0x40] sm:$0xff]  ;;  %v497_v35 = vld [vmem:[#allocation5 + $0x50] sm:$0xff] }
  0x49   :  { %4900 = vmatprep.subr.bf16.mxu0 %v7294_v56  ;;  %4932 = vmatprep.subr.bf16.mxu1 %v7301_v62  ;;  %v499_v34 = vld [vmem:[#allocation5 + $0x60] sm:$0xff]  ;;  %v7330_v39 = vpack.c.bf16 %v502_v23, %v498_v21  ;;  %v501_v40 = vld [vmem:[#allocation5 + $0x70] sm:$0xff]  ;;  %v504_v43 = vld [vmem:[#allocation5 + $0x88] sm:$0xff] }
  0x4a   :  { %616 = vmatprep.mubr.f32.mxu0 %v8523_v1  ;;  %687 = vmatprep.mubr.f32.mxu1 %v8523_v1  ;;  %8753 = vst [vmem:[#allocation38_spill] sm:$0xff] %v7325_v28  ;;  %8754 = vst [vmem:[#allocation39_spill] sm:$0xff] %v7327_v30  ;;  %v508_v44 = vld [vmem:[#allocation5 + $0xa8] sm:$0xff]  ;;  %v506_v47 = vld [vmem:[#allocation5 + $0x98] sm:$0xff]  ;;  %v7335_v49 = vpack.c.bf16 %v499_v34, %v495_v32  ;;  %v7339_v52 = vpack.c.bf16 %v501_v40, %v497_v35 }
  0x4b   :  { %4902 = vmatpush1.bf16.msra.mxu0 %v7305_v3  ;;  %4934 = vmatpush1.bf16.msra.mxu1 %v7309_v4  ;;  %8755 = vst [vmem:[#allocation40_spill] sm:$0xff] %v7330_v39  ;;  %v510_v48 = vld [vmem:[#allocation5 + $0xb8] sm:$0xff]  ;;  %v7341_v53 = vpack.c.bf16 %v508_v44, %v504_v43  ;;  %v503_v55 = vld [vmem:[#allocation5 + $0x80] sm:$0xff]  ;;  %v505_v59 = vld [vmem:[#allocation5 + $0x90] sm:$0xff] }
  0x4c   :  { %4936 = vmatprep.subr.bf16.mxu0 %v7311_v6  ;;  %4968 = vmatprep.subr.bf16.mxu1 %v7315_v14  ;;  %8756 = vst [vmem:[#allocation41_spill] sm:$0xff] %v7335_v49  ;;  %8757 = vst [vmem:[#allocation42_spill] sm:$0xff] %v7339_v52  ;;  %v507_v58 = vld [vmem:[#allocation5 + $0xa0] sm:$0xff]  ;;  %v7344_v60 = vpack.c.bf16 %v510_v48, %v506_v47  ;;  %v509_v63 = vld [vmem:[#allocation5 + $0xb0] sm:$0xff] }
  0x4d   :  { %8758 = vst [vmem:[#allocation43_spill] sm:$0xff] %v7341_v53  ;;  %v512_v0 = vld [vmem:[#allocation5 + $0xc8] sm:$0xff]  ;;  %v514_v9 = vld [vmem:[#allocation5 + $0xd8] sm:$0xff]  ;;  %v7349_v15 = vpack.c.bf16 %v507_v58, %v503_v55  ;;  %v7353_v17 = vpack.c.bf16 %v509_v63, %v505_v59  ;;  %v511_v21 = vld [vmem:[#allocation5 + $0xc0] sm:$0xff] }
  0x4e   :  { %617 = vmatmul.mubr.f32.vlgmr.msra.gmra.mrb[0].mxu0 %v8523_v1  ;;  %688 = vmatmul.mubr.f32.vlgmr.msra.gmra.mrb[0].mxu1 %v8523_v1  ;;  %8759 = vst [vmem:[#allocation44_spill] sm:$0xff] %v7344_v60  ;;  %v516_v7 = vld [vmem:[#allocation5 + $0xe8] sm:$0xff]  ;;  %v518_v10 = vld [vmem:[#allocation5 + $0xf8] sm:$0xff]  ;;  %v515_v23 = vld [vmem:[#allocation5 + $0xe0] sm:$0xff] }
  0x4f   :  { %4938 = vmatpush1.bf16.msra.mxu0 %v7321_v26  ;;  %4970 = vmatpush1.bf16.msra.mxu1 %v7325_v28  ;;  %8760 = vst [vmem:[#allocation45_spill] sm:$0xff] %v7349_v15  ;;  %8761 = vst [vmem:[#allocation46_spill] sm:$0xff] %v7353_v17  ;;  %v7355_v19 = vpack.c.bf16 %v516_v7, %v512_v0  ;;  %v513_v32 = vld [vmem:[#allocation5 + $0xd0] sm:$0xff]  ;;  %v7358_v34 = vpack.c.bf16 %v518_v10, %v514_v9  ;;  %v520_v40 = vld [vmem:[#allocation5 + $0x108] sm:$0xff] }
  0x50   :  { %4940 = vmatprep.subr.bf16.mxu0 %v7327_v30  ;;  %4972 = vmatprep.subr.bf16.mxu1 %v7330_v39  ;;  %v517_v35 = vld [vmem:[#allocation5 + $0xf0] sm:$0xff]  ;;  %v524_v43 = vld [vmem:[#allocation5 + $0x128] sm:$0xff]  ;;  %v522_v44 = vld [vmem:[#allocation5 + $0x118] sm:$0xff]  ;;  %v7361_v48 = vpack.c.bf16 %v515_v23, %v511_v21 }
  0x51   :  { %786 = vmatprep.mubr.f32.mxu0 %v8523_v1  ;;  %857 = vmatprep.mubr.f32.mxu1 %v8523_v1  ;;  %8762 = vst [vmem:[#allocation47_spill] sm:$0xff] %v7355_v19  ;;  %8763 = vst [vmem:[#allocation48_spill] sm:$0xff] %v7358_v34  ;;  %v526_v47 = vld [vmem:[#allocation5 + $0x138] sm:$0xff]  ;;  %v7365_v55 = vpack.c.bf16 %v517_v35, %v513_v32  ;;  %v7367_v58 = vpack.c.bf16 %v524_v43, %v520_v40  ;;  %v519_v59 = vld [vmem:[#allocation5 + $0x100] sm:$0xff] }
  0x52   :  { %8764 = vst [vmem:[#allocation49_spill] sm:$0xff] %v7361_v48  ;;  %v523_v63 = vld [vmem:[#allocation5 + $0x120] sm:$0xff]  ;;  %v7370_v0 = vpack.c.bf16 %v526_v47, %v522_v44  ;;  %v521_v7 = vld [vmem:[#allocation5 + $0x110] sm:$0xff]  ;;  %v528_v23 = vld [vmem:[#allocation5 + $0x148] sm:$0xff] }
  0x53   :  { %4942 = vmatpush1.bf16.msra.mxu0 %v7335_v49  ;;  %4974 = vmatpush1.bf16.msra.mxu1 %v7339_v52  ;;  %8765 = vst [vmem:[#allocation50_spill] sm:$0xff] %v7365_v55  ;;  %8766 = vst [vmem:[#allocation51_spill] sm:$0xff] %v7367_v58  ;;  %v525_v9 = vld [vmem:[#allocation5 + $0x130] sm:$0xff]  ;;  %v7373_v10 = vpack.c.bf16 %v523_v63, %v519_v59  ;;  %v532_v32 = vld [vmem:[#allocation5 + $0x168] sm:$0xff] }
  0x54   :  { %4944 = vmatprep.subr.bf16.mxu0 %v7341_v53  ;;  %4976 = vmatprep.subr.bf16.mxu1 %v7344_v60  ;;  %8767 = vst [vmem:[#allocation52_spill] sm:$0xff] %v7370_v0  ;;  %v7377_v21 = vpack.c.bf16 %v525_v9, %v521_v7  ;;  %v530_v35 = vld [vmem:[#allocation5 + $0x158] sm:$0xff]  ;;  %v7382_v40 = vpack.c.bf16 %v532_v32, %v528_v23  ;;  %v527_v44 = vld [vmem:[#allocation5 + $0x140] sm:$0xff]  ;;  %v529_v7 = vld [vmem:[#allocation5 + $0x150] sm:$0xff] }
  0x55   :  { %8768 = vst [vmem:[#allocation53_spill] sm:$0xff] %v7373_v10  ;;  %v534_v43 = vld [vmem:[#allocation5 + $0x178] sm:$0xff]  ;;  %v531_v47 = vld [vmem:[#allocation5 + $0x160] sm:$0xff]  ;;  %v533_v9 = vld [vmem:[#allocation5 + $0x170] sm:$0xff] }
  0x56   :  { %8769 = vst [vmem:[#allocation54_spill] sm:$0xff] %v7377_v21  ;;  %8770 = vst [vmem:[#allocation55_spill] sm:$0xff] %v7382_v40  ;;  %v7384_v59 = vpack.c.bf16 %v534_v43, %v530_v35  ;;  %v7386_v63 = vpack.c.bf16 %v531_v47, %v527_v44  ;;  %v7389_v1 = vpack.c.bf16 %v533_v9, %v529_v7  ;;  %v540_v23 = vld [vmem:[#allocation5 + $0x1a8] sm:$0xff]  ;;  %v538_v32 = vld [vmem:[#allocation5 + $0x198] sm:$0xff] }
  0x57   :  { %4946 = vmatpush1.bf16.msra.mxu0 %v7349_v15  ;;  %4978 = vmatpush1.bf16.msra.mxu1 %v7353_v17  ;;  %v542_v35 = vld [vmem:[#allocation5 + $0x1b8] sm:$0xff]  ;;  %v535_v43 = vld [vmem:[#allocation5 + $0x180] sm:$0xff]  ;;  %v537_v7 = vld [vmem:[#allocation5 + $0x190] sm:$0xff] }
  0x58   :  { %4948 = vmatprep.subr.bf16.mxu0 %v7355_v19  ;;  %4980 = vmatprep.subr.bf16.mxu1 %v7358_v34  ;;  %8771 = vst [vmem:[#allocation56_spill] sm:$0xff] %v7384_v59  ;;  %8772 = vst [vmem:[#allocation57_spill] sm:$0xff] %v7386_v63  ;;  %v539_v44 = vld [vmem:[#allocation5 + $0x1a0] sm:$0xff]  ;;  %v7396_v47 = vpack.c.bf16 %v542_v35, %v538_v32  ;;  %v541_v9 = vld [vmem:[#allocation5 + $0x1b0] sm:$0xff] }
  0x59   :  { %8773 = vst [vmem:[#allocation58_spill] sm:$0xff] %v7389_v1  ;;  %v550_v32 = vld [vmem:[#allocation5 + $0x1f8] sm:$0xff]  ;;  %v543_v35 = vld [vmem:[#allocation5 + $0x1c0] sm:$0xff] }
  0x5a   :  { %8775 = vst [vmem:[#allocation60_spill] sm:$0xff] %v7396_v47 }
  0x5b   :  { %4950 = vmatpush1.bf16.msra.mxu0 %v7361_v48  ;;  %4982 = vmatpush1.bf16.msra.mxu1 %v7365_v55  ;;  %v476_v55 = vld [vmem:[#allocation3 + $0x1a8] sm:$0xff]  ;;  %v478_v48 = vld [vmem:[#allocation3 + $0x1b8] sm:$0xff] }
  0x5c   :  { %4952 = vmatprep.subr.bf16.mxu0 %v7367_v58  ;;  %4984 = vmatprep.subr.bf16.mxu1 %v7370_v0  ;;  %v7398_v0 = vpack.c.bf16 %v539_v44, %v535_v43  ;;  %v547_v43 = vld [vmem:[#allocation5 + $0x1e0] sm:$0xff] }
  0x5e   :  { %8776 = vst [vmem:[#allocation61_spill] sm:$0xff] %v7398_v0 }
  0x5f   :  { %4954 = vmatpush1.bf16.msra.mxu0 %v7373_v10  ;;  %4986 = vmatpush1.bf16.msra.mxu1 %v7377_v21  ;;  %v536_v21 = vld [vmem:[#allocation5 + $0x188] sm:$0xff] }
  0x60   :  { %4956 = vmatprep.subr.bf16.mxu0 %v7382_v40  ;;  %4988 = vmatprep.subr.bf16.mxu1 %v7384_v59  ;;  %v7394_v10 = vpack.c.bf16 %v540_v23, %v536_v21  ;;  %v7401_v59 = vpack.c.bf16 %v541_v9, %v537_v7  ;;  %v548_v21 = vld [vmem:[#allocation5 + $0x1e8] sm:$0xff]  ;;  %v546_v23 = vld [vmem:[#allocation5 + $0x1d8] sm:$0xff]  ;;  %v7410_v40 = vpack.c.bf16 %v547_v43, %v543_v35  ;;  %v545_v7 = vld [vmem:[#allocation5 + $0x1d0] sm:$0xff] }
  0x61   :  { %v7408_v44 = vpack.c.bf16 %v550_v32, %v546_v23  ;;  %v549_v9 = vld [vmem:[#allocation5 + $0x1f0] sm:$0xff]  ;;  %v430_v23 = vld [vmem:[#allocation3 + $0x38] sm:$0xff]  ;;  %v423_v32 = vld [vmem:[#allocation3] sm:$0xff] }
  0x62   :  { %8774 = vst [vmem:[#allocation59_spill] sm:$0xff] %v7394_v10  ;;  %8777 = vst [vmem:[#allocation62_spill] sm:$0xff] %v7401_v59  ;;  %v427_v35 = vld [vmem:[#allocation3 + $0x20] sm:$0xff] }
  0x63   :  { %4958 = vmatpush1.bf16.msra.mxu0 %v7386_v63  ;;  %4990 = vmatpush1.bf16.msra.mxu1 %v7389_v1  ;;  %v544_v1 = vld [vmem:[#allocation5 + $0x1c8] sm:$0xff]  ;;  %8779 = vst [vmem:[#allocation64_spill] sm:$0xff] %v7408_v44  ;;  %8780 = vst [vmem:[#allocation65_spill] sm:$0xff] %v7410_v40 }
  0x64   :  { %4960 = vmatprep.subr.bf16.mxu0 %v7394_v10  ;;  %4992 = vmatprep.subr.bf16.mxu1 %v7396_v47  ;;  %v7406_v63 = vpack.c.bf16 %v548_v21, %v544_v1  ;;  %v7413_v47 = vpack.c.bf16 %v549_v9, %v545_v7  ;;  %v428_v1 = vld [vmem:[#allocation3 + $0x28] sm:$0xff]  ;;  %v426_v21 = vld [vmem:[#allocation3 + $0x18] sm:$0xff]  ;;  %v7422_v10 = vpack.c.bf16 %v427_v35, %v423_v32  ;;  %v425_v7 = vld [vmem:[#allocation3 + $0x10] sm:$0xff] }
  0x65   :  { %v7420_v43 = vpack.c.bf16 %v430_v23, %v426_v21  ;;  %v429_v9 = vld [vmem:[#allocation3 + $0x30] sm:$0xff]  ;;  %v438_v23 = vld [vmem:[#allocation3 + $0x78] sm:$0xff]  ;;  %v431_v32 = vld [vmem:[#allocation3 + $0x40] sm:$0xff] }
  0x66   :  { %8778 = vst [vmem:[#allocation63_spill] sm:$0xff] %v7406_v63  ;;  %8781 = vst [vmem:[#allocation66_spill] sm:$0xff] %v7413_v47  ;;  %v435_v35 = vld [vmem:[#allocation3 + $0x60] sm:$0xff] }
  0x67   :  { %4962 = vmatpush1.bf16.msra.mxu0 %v7398_v0  ;;  %4994 = vmatpush1.bf16.msra.mxu1 %v7401_v59  ;;  %v424_v59 = vld [vmem:[#allocation3 + $0x8] sm:$0xff]  ;;  %8783 = vst [vmem:[#allocation68_spill] sm:$0xff] %v7420_v43  ;;  %8784 = vst [vmem:[#allocation69_spill] sm:$0xff] %v7422_v10 }
  0x68   :  { %4964 = vmatprep.subr.bf16.mxu0 %v7406_v63  ;;  %4996 = vmatprep.subr.bf16.mxu1 %v7408_v44  ;;  %v7418_v0 = vpack.c.bf16 %v428_v1, %v424_v59  ;;  %v8785_v44 = vmov 0.0   ;;  %v432_v59 = vld [vmem:[#allocation3 + $0x48] sm:$0xff] }
  0x69   :  { %v436_v1 = vld [vmem:[#allocation3 + $0x68] sm:$0xff] }
  0x6a   :  { %8782 = vst [vmem:[#allocation67_spill] sm:$0xff] %v7418_v0  ;;  %v7432_v21 = vpack.c.bf16 %v436_v1, %v432_v59  ;;  %v440_v59 = vld [vmem:[#allocation3 + $0x88] sm:$0xff] }
  0x6b   :  { %4966 = vmatpush1.bf16.msra.mxu0 %v7410_v40  ;;  %4998 = vmatpush1.bf16.msra.mxu1 %v7413_v47  ;;  %v7426_v40 = vpack.c.bf16 %v429_v9, %v425_v7  ;;  %v434_v47 = vld [vmem:[#allocation3 + $0x58] sm:$0xff]  ;;  %v7436_v7 = vpack.c.bf16 %v435_v35, %v431_v32  ;;  %v433_v9 = vld [vmem:[#allocation3 + $0x50] sm:$0xff]  ;;  %v444_v1 = vld [vmem:[#allocation3 + $0xa8] sm:$0xff] }
  0x6c   :  { %5000 = vmatprep.subr.bf16.mxu0 %v7418_v0  ;;  %5032 = vmatprep.subr.bf16.mxu1 %v7420_v43  ;;  %8787 = vst [vmem:[#allocation71_spill] sm:$0xff] %v7432_v21  ;;  %v7434_v0 = vpack.c.bf16 %v438_v23, %v434_v47  ;;  %v437_v43 = vld [vmem:[#allocation3 + $0x70] sm:$0xff]  ;;  %v7446_v47 = vpack.c.bf16 %v444_v1, %v440_v59  ;;  %v446_v23 = vld [vmem:[#allocation3 + $0xb8] sm:$0xff]  ;;  %v439_v32 = vld [vmem:[#allocation3 + $0x80] sm:$0xff] }
  0x6d   :  { %8786 = vst [vmem:[#allocation70_spill] sm:$0xff] %v7426_v40  ;;  %8789 = vst [vmem:[#allocation73_spill] sm:$0xff] %v7436_v7  ;;  %v443_v35 = vld [vmem:[#allocation3 + $0xa0] sm:$0xff] }
  0x6e   :  { %787 = vmatmul.mubr.f32.vlgmr.msra.gmra.mrb[16].mxu0 %v8785_v44  ;;  %858 = vmatmul.mubr.f32.vlgmr.msra.gmra.mrb[16].mxu1 %v8785_v44  ;;  %8788 = vst [vmem:[#allocation72_spill] sm:$0xff] %v7434_v0  ;;  %8791 = vst [vmem:[#allocation75_spill] sm:$0xff] %v7446_v47  ;;  %v7450_v58 = vpack.c.bf16 %v443_v35, %v439_v32  ;;  %v447_v1 = vld [vmem:[#allocation3 + $0xc0] sm:$0xff] }
  0x6f   :  { %5002 = vmatpush1.bf16.msra.mxu0 %v7422_v10  ;;  %5034 = vmatpush1.bf16.msra.mxu1 %v7426_v40  ;;  %v7441_v10 = vpack.c.bf16 %v437_v43, %v433_v9  ;;  %v442_v40 = vld [vmem:[#allocation3 + $0x98] sm:$0xff]  ;;  %v441_v43 = vld [vmem:[#allocation3 + $0x90] sm:$0xff] }
  0x70   :  { %928 = vmatprep.mubr.f32.mxu0 %v8785_v44  ;;  %999 = vmatprep.mubr.f32.mxu1 %v8785_v44  ;;  %v7448_v63 = vpack.c.bf16 %v446_v23, %v442_v40  ;;  %8793 = vst [vmem:[#allocation77_spill] sm:$0xff] %v7450_v58  ;;  %v445_v9 = vld [vmem:[#allocation3 + $0xb0] sm:$0xff]  ;;  %v454_v40 = vld [vmem:[#allocation3 + $0xf8] sm:$0xff]  ;;  %v451_v23 = vld [vmem:[#allocation3 + $0xe0] sm:$0xff] }
  0x71   :  { %5004 = vmatprep.subr.bf16.mxu0 %v7432_v21  ;;  %8790 = vst [vmem:[#allocation74_spill] sm:$0xff] %v7441_v10  ;;  %5036 = vmatprep.subr.bf16.mxu1 %v7434_v0  ;;  %v7453_v0 = vpack.c.bf16 %v445_v9, %v441_v43  ;;  %v452_v21 = vld [vmem:[#allocation3 + $0xe8] sm:$0xff]  ;;  %v7462_v35 = vpack.c.bf16 %v451_v23, %v447_v1  ;;  %v449_v43 = vld [vmem:[#allocation3 + $0xd0] sm:$0xff] }
  0x72   :  { %8792 = vst [vmem:[#allocation76_spill] sm:$0xff] %v7448_v63  ;;  %v453_v9 = vld [vmem:[#allocation3 + $0xf0] sm:$0xff] }
  0x73   :  { %5006 = vmatpush1.bf16.msra.mxu0 %v7436_v7  ;;  %5038 = vmatpush1.bf16.msra.mxu1 %v7441_v10  ;;  %8794 = vst [vmem:[#allocation78_spill] sm:$0xff] %v7453_v0  ;;  %v448_v7 = vld [vmem:[#allocation3 + $0xc8] sm:$0xff]  ;;  %v450_v10 = vld [vmem:[#allocation3 + $0xd8] sm:$0xff]  ;;  %8797 = vst [vmem:[#allocation81_spill] sm:$0xff] %v7462_v35 }
  0x74   :  { %5008 = vmatprep.subr.bf16.mxu0 %v7446_v47  ;;  %5040 = vmatprep.subr.bf16.mxu1 %v7448_v63  ;;  %v7458_v59 = vpack.c.bf16 %v452_v21, %v448_v7  ;;  %v7460_v32 = vpack.c.bf16 %v454_v40, %v450_v10  ;;  %v7465_v63 = vpack.c.bf16 %v453_v9, %v449_v43  ;;  %v460_v47 = vld [vmem:[#allocation3 + $0x128] sm:$0xff]  ;;  %v462_v10 = vld [vmem:[#allocation3 + $0x138] sm:$0xff]  ;;  %v455_v7 = vld [vmem:[#allocation3 + $0x100] sm:$0xff] }
  0x75   :  { %v459_v40 = vld [vmem:[#allocation3 + $0x120] sm:$0xff]  ;;  %v457_v43 = vld [vmem:[#allocation3 + $0x110] sm:$0xff] }
  0x76   :  { %8795 = vst [vmem:[#allocation79_spill] sm:$0xff] %v7458_v59  ;;  %8796 = vst [vmem:[#allocation80_spill] sm:$0xff] %v7460_v32  ;;  %v7474_v23 = vpack.c.bf16 %v459_v40, %v455_v7  ;;  %v461_v9 = vld [vmem:[#allocation3 + $0x130] sm:$0xff] }
  0x77   :  { %5010 = vmatpush1.bf16.msra.mxu0 %v7450_v58  ;;  %5042 = vmatpush1.bf16.msra.mxu1 %v7453_v0  ;;  %8798 = vst [vmem:[#allocation82_spill] sm:$0xff] %v7465_v63  ;;  %v456_v58 = vld [vmem:[#allocation3 + $0x108] sm:$0xff]  ;;  %v458_v0 = vld [vmem:[#allocation3 + $0x118] sm:$0xff] }
  0x78   :  { %5012 = vmatprep.subr.bf16.mxu0 %v7458_v59  ;;  %5044 = vmatprep.subr.bf16.mxu1 %v7460_v32  ;;  %v7470_v21 = vpack.c.bf16 %v460_v47, %v456_v58  ;;  %v7472_v1 = vpack.c.bf16 %v462_v10, %v458_v0  ;;  %8801 = vst [vmem:[#allocation85_spill] sm:$0xff] %v7474_v23  ;;  %v468_v59 = vld [vmem:[#allocation3 + $0x168] sm:$0xff]  ;;  %v470_v0 = vld [vmem:[#allocation3 + $0x178] sm:$0xff]  ;;  %v463_v47 = vld [vmem:[#allocation3 + $0x140] sm:$0xff] }
  0x79   :  { %v7477_v32 = vpack.c.bf16 %v461_v9, %v457_v43  ;;  %v467_v10 = vld [vmem:[#allocation3 + $0x160] sm:$0xff]  ;;  %v465_v43 = vld [vmem:[#allocation3 + $0x150] sm:$0xff] }
  0x7a   :  { %8799 = vst [vmem:[#allocation83_spill] sm:$0xff] %v7470_v21  ;;  %8800 = vst [vmem:[#allocation84_spill] sm:$0xff] %v7472_v1  ;;  %v7486_v40 = vpack.c.bf16 %v467_v10, %v463_v47  ;;  %v469_v9 = vld [vmem:[#allocation3 + $0x170] sm:$0xff] }
  0x7b   :  { %5014 = vmatpush1.bf16.msra.mxu0 %v7462_v35  ;;  %5046 = vmatpush1.bf16.msra.mxu1 %v7465_v63  ;;  %8802 = vst [vmem:[#allocation86_spill] sm:$0xff] %v7477_v32  ;;  %v464_v35 = vld [vmem:[#allocation3 + $0x148] sm:$0xff]  ;;  %v466_v63 = vld [vmem:[#allocation3 + $0x158] sm:$0xff]  ;;  %v473_v47 = vld [vmem:[#allocation3 + $0x190] sm:$0xff] }
  0x7c   :  { %5016 = vmatprep.subr.bf16.mxu0 %v7470_v21  ;;  %5048 = vmatprep.subr.bf16.mxu1 %v7472_v1  ;;  %v7482_v58 = vpack.c.bf16 %v468_v59, %v464_v35  ;;  %v7484_v7 = vpack.c.bf16 %v470_v0, %v466_v63  ;;  %8805 = vst [vmem:[#allocation89_spill] sm:$0xff] %v7486_v40  ;;  %v472_v21 = vld [vmem:[#allocation3 + $0x188] sm:$0xff]  ;;  %v471_v63 = vld [vmem:[#allocation3 + $0x180] sm:$0xff] }
  0x7d   :  { %v7489_v1 = vpack.c.bf16 %v469_v9, %v465_v43  ;;  %v7492_v59 = vpack.c.bf16 %v476_v55, %v472_v21  ;;  %v475_v0 = vld [vmem:[#allocation3 + $0x1a0] sm:$0xff]  ;;  %v477_v43 = vld [vmem:[#allocation3 + $0x1b0] sm:$0xff]  ;;  %v480_v9 = vld [vmem:[#allocation3 + $0x1c8] sm:$0xff] }
  0x7e   :  { %8803 = vst [vmem:[#allocation87_spill] sm:$0xff] %v7482_v58  ;;  %8804 = vst [vmem:[#allocation88_spill] sm:$0xff] %v7484_v7  ;;  %v7498_v10 = vpack.c.bf16 %v475_v0, %v471_v63  ;;  %v7502_v55 = vpack.c.bf16 %v477_v43, %v473_v47  ;;  %v482_v21 = vld [vmem:[#allocation3 + $0x1d8] sm:$0xff]  ;;  %v485_v63 = vld [vmem:[#allocation3 + $0x1f0] sm:$0xff] }
  0x7f   :  { %5018 = vmatpush1.bf16.msra.mxu0 %v7474_v23  ;;  %5050 = vmatpush1.bf16.msra.mxu1 %v7477_v32  ;;  %8806 = vst [vmem:[#allocation90_spill] sm:$0xff] %v7489_v1  ;;  %v474_v23 = vld [vmem:[#allocation3 + $0x198] sm:$0xff]  ;;  %8807 = vst [vmem:[#allocation91_spill] sm:$0xff] %v7492_v59 }
  0x80   :  { %5020 = vmatprep.subr.bf16.mxu0 %v7482_v58  ;;  %5052 = vmatprep.subr.bf16.mxu1 %v7484_v7  ;;  %v7494_v35 = vpack.c.bf16 %v478_v48, %v474_v23  ;;  %8809 = vst [vmem:[#allocation93_spill] sm:$0xff] %v7498_v10  ;;  %v484_v58 = vld [vmem:[#allocation3 + $0x1e8] sm:$0xff]  ;;  %8810 = vst [vmem:[#allocation94_spill] sm:$0xff] %v7502_v55  ;;  %v486_v23 = vld [vmem:[#allocation3 + $0x1f8] sm:$0xff] }
  0x81   :  { %v7504_v48 = vpack.c.bf16 %v484_v58, %v480_v9  ;;  %v479_v7 = vld [vmem:[#allocation3 + $0x1c0] sm:$0xff]  ;;  %v7506_v32 = vpack.c.bf16 %v486_v23, %v482_v21  ;;  %v88_v58 = vlaneseq }
  0x82   :  { %8808 = vst [vmem:[#allocation92_spill] sm:$0xff] %v7494_v35 }
  0x83   :  { %5022 = vmatpush1.bf16.msra.mxu0 %v7486_v40  ;;  %5054 = vmatpush1.bf16.msra.mxu1 %v7489_v1  ;;  %8811 = vst [vmem:[#allocation95_spill] sm:$0xff] %v7504_v48  ;;  %8812 = vst [vmem:[#allocation96_spill] sm:$0xff] %v7506_v32  ;;  %v483_v40 = vld [vmem:[#allocation3 + $0x1e0] sm:$0xff]  ;;  %v481_v1 = vld [vmem:[#allocation3 + $0x1d0] sm:$0xff]  ;;  %v7520_v47 = vshrl.u32 %v88_v58, 7 }
  0x84   :  { %5024 = vmatprep.subr.bf16.mxu0 %v7492_v59  ;;  %5056 = vmatprep.subr.bf16.mxu1 %v7494_v35  ;;  %v7510_v0 = vpack.c.bf16 %v483_v40, %v479_v7  ;;  %v7512_v59 = vpack.c.bf16 %v485_v63, %v481_v1  ;;  %v86_v1 = vld [vmem:[%s8512_s3] sm:$0xf] }
  0x85   :  { %v8621_v7 = vsub.s32 0, %v7520_v47  ;;  %v8622_v40 = vsub.s32 1, %v7520_v47  ;;  %v8629_v23 = vsub.s32 3, %v7520_v47 }
  0x86   :  { %8813 = vst [vmem:[#allocation97_spill] sm:$0xff] %v7510_v0  ;;  %8814 = vst [vmem:[#allocation98_spill] sm:$0xff] %v7512_v59 }
  0x87   :  { %5026 = vmatpush1.bf16.msra.mxu0 %v7498_v10  ;;  %5058 = vmatpush1.bf16.msra.mxu1 %v7502_v55  ;;  %v7529_v43 = vrot.slane %v86_v1, %v8621_v7  ;;  %v7533_v9 = vrot.slane %v86_v1, %v8622_v40  ;;  %v7540_v7 = vrot.slane %v86_v1, %v8629_v23  ;;  %v8638_v40 = vsub.s32 2, %v7520_v47 }
  0x88   :  { %5028 = vmatprep.subr.bf16.mxu0 %v7504_v48  ;;  %5060 = vmatprep.subr.bf16.mxu1 %v7506_v32 }
  0x89   :  { %8815 = vst [vmem:[#allocation99_spill] sm:$0xff] %v7529_v43  ;;  %8816 = vst [vmem:[#allocation100_spill] sm:$0xff] %v7533_v9 }
  0x8a   :  { %8817 = vst [vmem:[#allocation101_spill] sm:$0xff] %v7540_v7 }
  0x8b   :  { %5030 = vmatpush1.bf16.msra.mxu0 %v7510_v0  ;;  %5062 = vmatpush1.bf16.msra.mxu1 %v7512_v59 }
  0x8c   :  { %5064 = vmatprep.subr.bf16.mxu0 %v6991_v11  ;;  %5096 = vmatprep.subr.bf16.mxu1 %v6993_v12 }
 0x121   :  { %v618_v21 = vpop.f32.mrb[0].mxu0  ;;  %v689_v58 = vpop.f32.mrb[0].mxu1 }
 0x122   :  { %v6449_v63 = vadd.f32 %v618_v21, %v7529_v43  ;;  %v620_v12 = vpop.f32.mrb[1].mxu0  ;;  %v691_v59 = vpop.f32.mrb[1].mxu1  ;;  %v7546_v21 = vrot.slane %v86_v1, %v8638_v40  ;;  %v8833_v40 = vld [vmem:[#allocation64_spill] sm:$0xff] }
 0x123   :  { %v6450_v11 = vadd.f32 %v620_v12, %v7533_v9  ;;  %v6466_v48 = vadd.f32 %v691_v59, %v7540_v7 }
 0x124   :  { %v4722_v0 = vmul.f32 -1.442695, %v6449_v63  ;;  %v6465_v12 = vadd.f32 %v689_v58, %v7546_v21 }
 0x125   :  { %v4723_v32 = vmul.f32 -1.442695, %v6450_v11  ;;  %v4724_v55 = vmul.f32 -1.442695, %v6466_v48 }
 0x126   :  { %6552 = vpow2.f32 %v4722_v0 }
 0x127   :  { %6554 = vpow2.f32 %v4723_v32 }
 0x128   :  { %6556 = vpow2.f32 %v4724_v55  ;;  %v8819_v55 = vld [vmem:[#allocation50_spill] sm:$0xff] }
 0x129   :  { %6558 = vtanh.f32 %v6465_v12  ;;  %v8824_v12 = vld [vmem:[#allocation55_spill] sm:$0xff] }
 0x130   :  { %v6553_v10 = vpop.eup %6552 }
 0x131   :  { %v6555_v63 = vpop.eup %6554  ;;  %v701_v11 = vadd.f32 1.0, %v6553_v10 }
 0x132   :  { %v707_v23 = vadd.f32 1.0, %v6555_v63  ;;  %v6557_v0 = vpop.eup %6556  ;;  %v8825_v63 = vld [vmem:[#allocation56_spill] sm:$0xff] }
 0x133   :  { %6560 = vrcp.f32 %v701_v11  ;;  %v6559_v35 = vpop.eup %6558  ;;  %v714_v7 = vadd.f32 1.0, %v6557_v0  ;;  %v8826_v11 = vld [vmem:[#allocation57_spill] sm:$0xff]  ;;  %v8827_v0 = vld [vmem:[#allocation58_spill] sm:$0xff] }
 0x134   :  { %6562 = vrcp.f32 %v707_v23  ;;  %v8823_v23 = vld [vmem:[#allocation54_spill] sm:$0xff] }
 0x135   :  { %6564 = vrcp.f32 %v714_v7  ;;  %v8820_v7 = vld [vmem:[#allocation51_spill] sm:$0xff] }
 0x13d   :  { %v6561_v32 = vpop.eup %6560 }
 0x13e   :  { %v6563_v9 = vpop.eup %6562  ;;  %v718_v59 = vmul.f32 %v6561_v32, %v6559_v35  ;;  %v8818_v35 = vld [vmem:[#allocation49_spill] sm:$0xff]  ;;  %v8828_v32 = vld [vmem:[#allocation59_spill] sm:$0xff] }
 0x13f   :  { %v717_v43 = vmul.f32 0.0, %v6563_v9  ;;  %v6565_v48 = vpop.eup %6564  ;;  %v8822_v9 = vld [vmem:[#allocation53_spill] sm:$0xff] }
 0x141   :  { %v7549_v1 = vadd.f32 %v718_v59, %v717_v43  ;;  %v8821_v43 = vld [vmem:[#allocation52_spill] sm:$0xff] }
 0x142   :  { %v8829_v59 = vld [vmem:[#allocation60_spill] sm:$0xff] }
 0x143   :  { %6566 = vtanh.f32 %v7549_v1 }
 0x14d   :  { %v6567_v58 = vpop.eup %6566 }
 0x14e   :  { %v721_v10 = vmul.f32 %v6567_v58, %v6565_v48  ;;  %v8830_v48 = vld [vmem:[#allocation61_spill] sm:$0xff]  ;;  %v8831_v58 = vld [vmem:[#allocation62_spill] sm:$0xff] }
 0x150   :  { %929 = vmatmul.mubr.f32.vlgmr.msra.gmra.mrb[16].mxu0 %v721_v10  ;;  %1000 = vmatmul.mubr.f32.vlgmr.msra.gmra.mrb[16].mxu1 %v721_v10 }
 0x151   :  { %5066 = vmatpush1.bf16.msra.mxu0 %v7004_v16  ;;  %5098 = vmatpush1.bf16.msra.mxu1 %v7019_v20 }
 0x152   :  { %5068 = vmatprep.subr.bf16.mxu0 %v7031_v24  ;;  %5100 = vmatprep.subr.bf16.mxu1 %v7033_v25 }
 0x153   :  { %1119 = vmatprep.mubr.f32.mxu0 %v8785_v44  ;;  %1190 = vmatprep.mubr.f32.mxu1 %v8785_v44 }
 0x155   :  { %5070 = vmatpush1.bf16.msra.mxu0 %v7046_v29  ;;  %5102 = vmatpush1.bf16.msra.mxu1 %v7059_v33 }
 0x156   :  { %5072 = vmatprep.subr.bf16.mxu0 %v7072_v37  ;;  %5104 = vmatprep.subr.bf16.mxu1 %v7074_v38 }
 0x159   :  { %5074 = vmatpush1.bf16.msra.mxu0 %v7087_v42  ;;  %5106 = vmatpush1.bf16.msra.mxu1 %v7100_v46 }
 0x15a   :  { %5076 = vmatprep.subr.bf16.mxu0 %v7113_v50  ;;  %5108 = vmatprep.subr.bf16.mxu1 %v7126_v54 }
 0x15d   :  { %5078 = vmatpush1.bf16.msra.mxu0 %v7136_v57  ;;  %5110 = vmatpush1.bf16.msra.mxu1 %v7149_v61 }
 0x15e   :  { %5080 = vmatprep.subr.bf16.mxu0 %v7162_v2  ;;  %5112 = vmatprep.subr.bf16.mxu1 %v7172_v5 }
 0x161   :  { %5082 = vmatpush1.bf16.msra.mxu0 %v7182_v8  ;;  %5114 = vmatpush1.bf16.msra.mxu1 %v7192_v13 }
 0x162   :  { %5084 = vmatprep.subr.bf16.mxu0 %v7205_v18  ;;  %5116 = vmatprep.subr.bf16.mxu1 %v7215_v22 }
 0x165   :  { %5086 = vmatpush1.bf16.msra.mxu0 %v7225_v27  ;;  %5118 = vmatpush1.bf16.msra.mxu1 %v7235_v31 }
 0x166   :  { %5088 = vmatprep.subr.bf16.mxu0 %v7248_v36  ;;  %5120 = vmatprep.subr.bf16.mxu1 %v7258_v41 }
 0x169   :  { %5090 = vmatpush1.bf16.msra.mxu0 %v7268_v45  ;;  %5122 = vmatpush1.bf16.msra.mxu1 %v7281_v51 }
 0x16a   :  { %5092 = vmatprep.subr.bf16.mxu0 %v7294_v56  ;;  %5124 = vmatprep.subr.bf16.mxu1 %v7301_v62 }
 0x16d   :  { %5094 = vmatpush1.bf16.msra.mxu0 %v7305_v3  ;;  %5126 = vmatpush1.bf16.msra.mxu1 %v7309_v4 }
 0x16e   :  { %5128 = vmatprep.subr.bf16.mxu0 %v7311_v6  ;;  %5160 = vmatprep.subr.bf16.mxu1 %v7315_v14 }
 0x170   :  { %1120 = vmatmul.mubr.f32.vlgmr.msra.gmra.mrb[2].mxu0 %v721_v10  ;;  %1191 = vmatmul.mubr.f32.vlgmr.msra.gmra.mrb[2].mxu1 %v721_v10  ;;  %v8832_v10 = vld [vmem:[#allocation63_spill] sm:$0xff] }
 0x171   :  { %5130 = vmatpush1.bf16.msra.mxu0 %v7321_v26  ;;  %5162 = vmatpush1.bf16.msra.mxu1 %v7325_v28 }
 0x172   :  { %5132 = vmatprep.subr.bf16.mxu0 %v7327_v30  ;;  %5164 = vmatprep.subr.bf16.mxu1 %v7330_v39 }
 0x173   :  { %1289 = vmatprep.mubr.f32.mxu0 %v8785_v44  ;;  %1360 = vmatprep.mubr.f32.mxu1 %v8785_v44 }
 0x175   :  { %5134 = vmatpush1.bf16.msra.mxu0 %v7335_v49  ;;  %5166 = vmatpush1.bf16.msra.mxu1 %v7339_v52 }
 0x176   :  { %5136 = vmatprep.subr.bf16.mxu0 %v7341_v53  ;;  %5168 = vmatprep.subr.bf16.mxu1 %v7344_v60 }
 0x179   :  { %5138 = vmatpush1.bf16.msra.mxu0 %v7349_v15  ;;  %5170 = vmatpush1.bf16.msra.mxu1 %v7353_v17 }
 0x17a   :  { %5140 = vmatprep.subr.bf16.mxu0 %v7355_v19  ;;  %5172 = vmatprep.subr.bf16.mxu1 %v7358_v34 }
 0x17d   :  { %5142 = vmatpush1.bf16.msra.mxu0 %v8818_v35  ;;  %5174 = vmatpush1.bf16.msra.mxu1 %v8819_v55 }
 0x17e   :  { %5144 = vmatprep.subr.bf16.mxu0 %v8820_v7  ;;  %5176 = vmatprep.subr.bf16.mxu1 %v8821_v43  ;;  %v8842_v7 = vsub.s32 3, %v7520_v47 }
 0x181   :  { %5146 = vmatpush1.bf16.msra.mxu0 %v8822_v9  ;;  %5178 = vmatpush1.bf16.msra.mxu1 %v8823_v23  ;;  %v8834_v23 = vld [vmem:[#allocation65_spill] sm:$0xff] }
 0x182   :  { %5148 = vmatprep.subr.bf16.mxu0 %v8824_v12  ;;  %5180 = vmatprep.subr.bf16.mxu1 %v8825_v63  ;;  %v8835_v12 = vld [vmem:[#allocation66_spill] sm:$0xff]  ;;  %v8836_v63 = vld [vmem:[#allocation67_spill] sm:$0xff] }
 0x185   :  { %5150 = vmatpush1.bf16.msra.mxu0 %v8826_v11  ;;  %5182 = vmatpush1.bf16.msra.mxu1 %v8827_v0  ;;  %v8837_v11 = vld [vmem:[#allocation68_spill] sm:$0xff] }
 0x186   :  { %5152 = vmatprep.subr.bf16.mxu0 %v8828_v32  ;;  %5184 = vmatprep.subr.bf16.mxu1 %v8829_v59  ;;  %v551_v59 = vld [vmem:[%s8515_s6] sm:$0xf] }
 0x187   :  { %v7635_v55 = vrot.slane %v551_v59, %v8842_v7 }
 0x189   :  { %5154 = vmatpush1.bf16.msra.mxu0 %v8830_v48  ;;  %5186 = vmatpush1.bf16.msra.mxu1 %v8831_v58  ;;  %v8838_v48 = vsub.s32 0, %v7520_v47  ;;  %8843 = vst [vmem:[#allocation104_spill] sm:$0xff] %v7635_v55 }
 0x18a   :  { %5156 = vmatprep.subr.bf16.mxu0 %v8832_v10  ;;  %5188 = vmatprep.subr.bf16.mxu1 %v8833_v40  ;;  %v8840_v10 = vsub.s32 1, %v7520_v47 }
 0x18b   :  { %v7625_v32 = vrot.slane %v551_v59, %v8838_v48 }
 0x18c   :  { %v7629_v58 = vrot.slane %v551_v59, %v8840_v10  ;;  %v8844_v10 = vsub.s32 2, %v7520_v47 }
 0x18d   :  { %5158 = vmatpush1.bf16.msra.mxu0 %v8834_v23  ;;  %5190 = vmatpush1.bf16.msra.mxu1 %v8835_v12  ;;  %8839 = vst [vmem:[#allocation102_spill] sm:$0xff] %v7625_v32 }
 0x18e   :  { %5192 = vmatprep.subr.bf16.mxu0 %v8836_v63  ;;  %5224 = vmatprep.subr.bf16.mxu1 %v8837_v11  ;;  %8841 = vst [vmem:[#allocation103_spill] sm:$0xff] %v7629_v58  ;;  %v7640_v35 = vrot.slane %v551_v59, %v8844_v10 }
 0x190   :  { %8845 = vst [vmem:[#allocation105_spill] sm:$0xff] %v7640_v35 }
 0x223   :  { %v930_v40 = vpop.f32.mrb[16].mxu0  ;;  %v1001_v23 = vpop.f32.mrb[16].mxu1 }
 0x224   :  { %v1027_v12 = vadd.f32 %v7625_v32, %v930_v40  ;;  %v932_v0 = vpop.f32.mrb[17].mxu0  ;;  %v1003_v63 = vpop.f32.mrb[17].mxu1  ;;  %v1029_v40 = vadd.f32 %v7640_v35, %v1001_v23  ;;  %v8847_v23 = vld [vmem:[#allocation99_spill] sm:$0xff] }
 0x225   :  { %v1028_v11 = vadd.f32 %v7629_v58, %v932_v0  ;;  %v1030_v48 = vadd.f32 %v7635_v55, %v1003_v63 }
 0x226   :  { %v4725_v9 = vmul.f32 -1.442695, %v1027_v12 }
 0x227   :  { %v4726_v43 = vmul.f32 -1.442695, %v1028_v11  ;;  %v4727_v34 = vmul.f32 -1.442695, %v1030_v48 }
 0x228   :  { %6568 = vpow2.f32 %v4725_v9 }
 0x229   :  { %6570 = vpow2.f32 %v4726_v43 }
 0x22a   :  { %6572 = vpow2.f32 %v4727_v34 }
 0x22b   :  { %6574 = vtanh.f32 %v1029_v40 }
 0x232   :  { %v6569_v32 = vpop.eup %6568 }
 0x233   :  { %v6571_v19 = vpop.eup %6570  ;;  %v1034_v0 = vadd.f32 1.0, %v6569_v32 }
 0x234   :  { %v1040_v12 = vadd.f32 1.0, %v6571_v19  ;;  %v6573_v7 = vpop.eup %6572  ;;  %v8848_v19 = vld [vmem:[#allocation100_spill] sm:$0xff] }
 0x235   :  { %6576 = vrcp.f32 %v1034_v0  ;;  %v6575_v9 = vpop.eup %6574  ;;  %v1047_v55 = vadd.f32 1.0, %v6573_v7 }
 0x236   :  { %6578 = vrcp.f32 %v1040_v12 }
 0x237   :  { %6580 = vrcp.f32 %v1047_v55 }
 0x23f   :  { %v6577_v43 = vpop.eup %6576 }
 0x240   :  { %v6579_v11 = vpop.eup %6578  ;;  %v1051_v63 = vmul.f32 %v6577_v43, %v6575_v9  ;;  %v8849_v9 = vld [vmem:[#allocation101_spill] sm:$0xff] }
 0x241   :  { %v1050_v47 = vmul.f32 0.0, %v6579_v11  ;;  %v6581_v43 = vpop.eup %6580 }
 0x243   :  { %v7643_v59 = vadd.f32 %v1051_v63, %v1050_v47  ;;  %v1121_v48 = vpop.f32.mrb[2].mxu0  ;;  %v1192_v10 = vpop.f32.mrb[2].mxu1 }
 0x244   :  { %v6451_v35 = vadd.f32 %v1121_v48, %v8847_v23  ;;  %v1123_v32 = vpop.f32.mrb[3].mxu0  ;;  %v1194_v34 = vpop.f32.mrb[3].mxu1  ;;  %v6467_v47 = vadd.f32 %v1192_v10, %v7546_v21  ;;  %v8854_v10 = vld [vmem:[#allocation73_spill] sm:$0xff] }
 0x245   :  { %8846 = vst [vmem:[#allocation106_spill] sm:$0xff] %v7643_v59  ;;  %6582 = vtanh.f32 %v7643_v59  ;;  %v6452_v40 = vadd.f32 %v1123_v32, %v8848_v19  ;;  %v6468_v7 = vadd.f32 %v1194_v34, %v8849_v9  ;;  %v8850_v59 = vld [vmem:[#allocation69_spill] sm:$0xff]  ;;  %v8853_v34 = vld [vmem:[#allocation72_spill] sm:$0xff] }
 0x246   :  { %v4728_v0 = vmul.f32 -1.442695, %v6451_v35  ;;  %v8851_v35 = vld [vmem:[#allocation70_spill] sm:$0xff] }
 0x247   :  { %v4729_v12 = vmul.f32 -1.442695, %v6452_v40  ;;  %v4730_v63 = vmul.f32 -1.442695, %v6468_v7  ;;  %v8852_v40 = vld [vmem:[#allocation71_spill] sm:$0xff]  ;;  %v8858_v7 = vld [vmem:[#allocation77_spill] sm:$0xff] }
 0x248   :  { %6584 = vpow2.f32 %v4728_v0  ;;  %v8856_v0 = vld [vmem:[#allocation75_spill] sm:$0xff] }
 0x249   :  { %6586 = vpow2.f32 %v4729_v12  ;;  %v8857_v12 = vld [vmem:[#allocation76_spill] sm:$0xff] }
 0x24a   :  { %6588 = vpow2.f32 %v4730_v63 }
 0x24b   :  { %6590 = vtanh.f32 %v6467_v47 }
 0x24f   :  { %v6583_v11 = vpop.eup %6582 }
 0x250   :  { %v1054_v55 = vmul.f32 %v6583_v11, %v6581_v43  ;;  %v8859_v43 = vld [vmem:[#allocation78_spill] sm:$0xff]  ;;  %v8860_v11 = vld [vmem:[#allocation79_spill] sm:$0xff] }
 0x252   :  { %v6585_v58 = vpop.eup %6584  ;;  %1290 = vmatmul.mubr.f32.vlgmr.msra.gmra.mrb[18].mxu0 %v1054_v55  ;;  %1361 = vmatmul.mubr.f32.vlgmr.msra.gmra.mrb[18].mxu1 %v1054_v55 }
 0x253   :  { %v6587_v48 = vpop.eup %6586  ;;  %v1204_v23 = vadd.f32 1.0, %v6585_v58  ;;  %5194 = vmatpush1.bf16.msra.mxu0 %v8850_v59  ;;  %5226 = vmatpush1.bf16.msra.mxu1 %v8851_v35  ;;  %v8855_v58 = vld [vmem:[#allocation74_spill] sm:$0xff] }
 0x254   :  { %v1210_v32 = vadd.f32 1.0, %v6587_v48  ;;  %5196 = vmatprep.subr.bf16.mxu0 %v8852_v40  ;;  %5228 = vmatprep.subr.bf16.mxu1 %v8853_v34  ;;  %v6589_v63 = vpop.eup %6588  ;;  %v8862_v48 = vld [vmem:[#allocation81_spill] sm:$0xff]  ;;  %v8864_v34 = vld [vmem:[#allocation83_spill] sm:$0xff] }
 0x255   :  { %6592 = vrcp.f32 %v1204_v23  ;;  %1431 = vmatprep.mubr.f32.mxu0 %v8785_v44  ;;  %1502 = vmatprep.mubr.f32.mxu1 %v8785_v44  ;;  %v8861_v23 = vld [vmem:[#allocation80_spill] sm:$0xff]  ;;  %v6591_v47 = vpop.eup %6590  ;;  %v8868_v40 = vld [vmem:[#allocation87_spill] sm:$0xff] }
 0x256   :  { %6594 = vrcp.f32 %v1210_v32  ;;  %v8863_v32 = vld [vmem:[#allocation82_spill] sm:$0xff] }
 0x257   :  { %5198 = vmatpush1.bf16.msra.mxu0 %v8854_v10  ;;  %5230 = vmatpush1.bf16.msra.mxu1 %v8855_v58 }
 0x258   :  { %5200 = vmatprep.subr.bf16.mxu0 %v8856_v0  ;;  %5232 = vmatprep.subr.bf16.mxu1 %v8857_v12  ;;  %v1217_v0 = vadd.f32 1.0, %v6589_v63  ;;  %v8865_v12 = vld [vmem:[#allocation84_spill] sm:$0xff]  ;;  %v8870_v63 = vld [vmem:[#allocation89_spill] sm:$0xff] }
 0x25a   :  { %6596 = vrcp.f32 %v1217_v0  ;;  %v8877_v0 = vld [vmem:[#allocation96_spill] sm:$0xff] }
 0x25b   :  { %5202 = vmatpush1.bf16.msra.mxu0 %v8858_v7  ;;  %5234 = vmatpush1.bf16.msra.mxu1 %v8859_v43 }
 0x25c   :  { %5204 = vmatprep.subr.bf16.mxu0 %v8860_v11  ;;  %5236 = vmatprep.subr.bf16.mxu1 %v8861_v23  ;;  %v8866_v11 = vld [vmem:[#allocation85_spill] sm:$0xff]  ;;  %v8867_v23 = vld [vmem:[#allocation86_spill] sm:$0xff] }
 0x25f   :  { %v6593_v55 = vpop.eup %6592  ;;  %5206 = vmatpush1.bf16.msra.mxu0 %v8862_v48  ;;  %5238 = vmatpush1.bf16.msra.mxu1 %v8863_v32  ;;  %v8869_v48 = vld [vmem:[#allocation88_spill] sm:$0xff] }
 0x260   :  { %v6595_v58 = vpop.eup %6594  ;;  %v1221_v10 = vmul.f32 %v6593_v55, %v6591_v47  ;;  %5208 = vmatprep.subr.bf16.mxu0 %v8864_v34  ;;  %5240 = vmatprep.subr.bf16.mxu1 %v8865_v12  ;;  %v8871_v47 = vld [vmem:[#allocation90_spill] sm:$0xff]  ;;  %v8872_v55 = vld [vmem:[#allocation91_spill] sm:$0xff] }
 0x261   :  { %v1220_v43 = vmul.f32 %v6595_v58, %v7549_v1  ;;  %v8873_v1 = vld [vmem:[#allocation92_spill] sm:$0xff]  ;;  %v8875_v58 = vld [vmem:[#allocation94_spill] sm:$0xff] }
 0x263   :  { %v7669_v7 = vadd.f32 %v1221_v10, %v1220_v43  ;;  %5210 = vmatpush1.bf16.msra.mxu0 %v8866_v11  ;;  %5242 = vmatpush1.bf16.msra.mxu1 %v8867_v23  ;;  %v8874_v10 = vld [vmem:[#allocation93_spill] sm:$0xff]  ;;  %v8876_v43 = vld [vmem:[#allocation95_spill] sm:$0xff]  ;;  %v8879_v11 = vld [vmem:[#allocation98_spill] sm:$0xff] }
 0x264   :  { %5212 = vmatprep.subr.bf16.mxu0 %v8868_v40  ;;  %5244 = vmatprep.subr.bf16.mxu1 %v8869_v48  ;;  %v6597_v40 = vpop.eup %6596  ;;  %v8878_v23 = vld [vmem:[#allocation97_spill] sm:$0xff] }
 0x265   :  { %6598 = vtanh.f32 %v7669_v7 }
 0x267   :  { %5214 = vmatpush1.bf16.msra.mxu0 %v8870_v63  ;;  %5246 = vmatpush1.bf16.msra.mxu1 %v8871_v47  ;;  %v8880_v47 = vld [vmem:[#allocation9_spill] sm:$0xff] }
 0x268   :  { %5216 = vmatprep.subr.bf16.mxu0 %v8872_v55  ;;  %5248 = vmatprep.subr.bf16.mxu1 %v8873_v1  ;;  %v8881_v55 = vld [vmem:[#allocation10_spill] sm:$0xff] }
 0x26b   :  { %5218 = vmatpush1.bf16.msra.mxu0 %v8874_v10  ;;  %5250 = vmatpush1.bf16.msra.mxu1 %v8875_v58 }
 0x26c   :  { %5220 = vmatprep.subr.bf16.mxu0 %v8876_v43  ;;  %5252 = vmatprep.subr.bf16.mxu1 %v8877_v0 }
 0x26f   :  { %v6599_v48 = vpop.eup %6598  ;;  %5222 = vmatpush1.bf16.msra.mxu0 %v8878_v23  ;;  %5254 = vmatpush1.bf16.msra.mxu1 %v8879_v11 }
 0x270   :  { %v1224_v63 = vmul.f32 %v6599_v48, %v6597_v40  ;;  %5256 = vmatprep.subr.bf16.mxu0 %v8880_v47  ;;  %5288 = vmatprep.subr.bf16.mxu1 %v8881_v55  ;;  %v8882_v40 = vld [vmem:[#allocation47_spill] sm:$0xff]  ;;  %v8883_v48 = vld [vmem:[#allocation48_spill] sm:$0xff] }
 0x272   :  { %1432 = vmatmul.mubr.f32.vlgmr.msra.gmra.mrb[18].mxu0 %v1224_v63  ;;  %1503 = vmatmul.mubr.f32.vlgmr.msra.gmra.mrb[18].mxu1 %v1224_v63 }
 0x273   :  { %5258 = vmatpush1.bf16.msra.mxu0 %v7004_v16  ;;  %5290 = vmatpush1.bf16.msra.mxu1 %v7019_v20 }
 0x274   :  { %5260 = vmatprep.subr.bf16.mxu0 %v7031_v24  ;;  %5292 = vmatprep.subr.bf16.mxu1 %v7033_v25 }
 0x275   :  { %1601 = vmatprep.mubr.f32.mxu0 %v8785_v44  ;;  %1672 = vmatprep.mubr.f32.mxu1 %v8785_v44 }
 0x277   :  { %5262 = vmatpush1.bf16.msra.mxu0 %v7046_v29  ;;  %5294 = vmatpush1.bf16.msra.mxu1 %v7059_v33 }
 0x278   :  { %5264 = vmatprep.subr.bf16.mxu0 %v7072_v37  ;;  %5296 = vmatprep.subr.bf16.mxu1 %v7074_v38 }
 0x27b   :  { %5266 = vmatpush1.bf16.msra.mxu0 %v7087_v42  ;;  %5298 = vmatpush1.bf16.msra.mxu1 %v7100_v46 }
 0x27c   :  { %5268 = vmatprep.subr.bf16.mxu0 %v7113_v50  ;;  %5300 = vmatprep.subr.bf16.mxu1 %v7126_v54 }
 0x27f   :  { %5270 = vmatpush1.bf16.msra.mxu0 %v7136_v57  ;;  %5302 = vmatpush1.bf16.msra.mxu1 %v7149_v61 }
 0x280   :  { %5272 = vmatprep.subr.bf16.mxu0 %v7162_v2  ;;  %5304 = vmatprep.subr.bf16.mxu1 %v7172_v5 }
 0x283   :  { %5274 = vmatpush1.bf16.msra.mxu0 %v7182_v8  ;;  %5306 = vmatpush1.bf16.msra.mxu1 %v7192_v13 }
 0x284   :  { %5276 = vmatprep.subr.bf16.mxu0 %v7205_v18  ;;  %5308 = vmatprep.subr.bf16.mxu1 %v7215_v22 }
 0x287   :  { %5278 = vmatpush1.bf16.msra.mxu0 %v7225_v27  ;;  %5310 = vmatpush1.bf16.msra.mxu1 %v7235_v31 }
 0x288   :  { %5280 = vmatprep.subr.bf16.mxu0 %v7248_v36  ;;  %5312 = vmatprep.subr.bf16.mxu1 %v7258_v41 }
 0x28b   :  { %5282 = vmatpush1.bf16.msra.mxu0 %v7268_v45  ;;  %5314 = vmatpush1.bf16.msra.mxu1 %v7281_v51 }
 0x28c   :  { %5284 = vmatprep.subr.bf16.mxu0 %v7294_v56  ;;  %5316 = vmatprep.subr.bf16.mxu1 %v7301_v62 }
 0x28f   :  { %5286 = vmatpush1.bf16.msra.mxu0 %v7305_v3  ;;  %5318 = vmatpush1.bf16.msra.mxu1 %v7309_v4 }
 0x290   :  { %5320 = vmatprep.subr.bf16.mxu0 %v7311_v6  ;;  %5352 = vmatprep.subr.bf16.mxu1 %v7315_v14  ;;  %v8905_v14 = vld [vmem:[#allocation103_spill] sm:$0xff] }
 0x292   :  { %1602 = vmatmul.mubr.f32.vlgmr.msra.gmra.mrb[4].mxu0 %v1224_v63  ;;  %1673 = vmatmul.mubr.f32.vlgmr.msra.gmra.mrb[4].mxu1 %v1224_v63  ;;  %v8884_v63 = vld [vmem:[#allocation49_spill] sm:$0xff] }
 0x293   :  { %5322 = vmatpush1.bf16.msra.mxu0 %v7321_v26  ;;  %5354 = vmatpush1.bf16.msra.mxu1 %v7325_v28  ;;  %v8904_v28 = vld [vmem:[#allocation102_spill] sm:$0xff] }
 0x294   :  { %5324 = vmatprep.subr.bf16.mxu0 %v7327_v30  ;;  %5356 = vmatprep.subr.bf16.mxu1 %v7330_v39  ;;  %v8885_v39 = vld [vmem:[#allocation50_spill] sm:$0xff]  ;;  %v8886_v30 = vld [vmem:[#allocation51_spill] sm:$0xff] }
 0x295   :  { %1771 = vmatprep.mubr.f32.mxu0 %v8785_v44  ;;  %1842 = vmatprep.mubr.f32.mxu1 %v8785_v44 }
 0x297   :  { %5326 = vmatpush1.bf16.msra.mxu0 %v7335_v49  ;;  %5358 = vmatpush1.bf16.msra.mxu1 %v7339_v52  ;;  %v8887_v49 = vld [vmem:[#allocation52_spill] sm:$0xff]  ;;  %v8888_v52 = vld [vmem:[#allocation53_spill] sm:$0xff] }
 0x298   :  { %5328 = vmatprep.subr.bf16.mxu0 %v7341_v53  ;;  %5360 = vmatprep.subr.bf16.mxu1 %v7344_v60  ;;  %v8889_v53 = vld [vmem:[#allocation54_spill] sm:$0xff]  ;;  %v8890_v60 = vld [vmem:[#allocation55_spill] sm:$0xff] }
 0x29b   :  { %5330 = vmatpush1.bf16.msra.mxu0 %v7349_v15  ;;  %5362 = vmatpush1.bf16.msra.mxu1 %v7353_v17  ;;  %v8891_v15 = vld [vmem:[#allocation56_spill] sm:$0xff]  ;;  %v8892_v17 = vld [vmem:[#allocation57_spill] sm:$0xff] }
 0x29c   :  { %5332 = vmatprep.subr.bf16.mxu0 %v8882_v40  ;;  %5364 = vmatprep.subr.bf16.mxu1 %v8883_v48  ;;  %v8893_v40 = vld [vmem:[#allocation58_spill] sm:$0xff]  ;;  %v8894_v48 = vld [vmem:[#allocation59_spill] sm:$0xff] }
 0x29f   :  { %5334 = vmatpush1.bf16.msra.mxu0 %v8884_v63  ;;  %5366 = vmatpush1.bf16.msra.mxu1 %v8885_v39  ;;  %v8895_v63 = vld [vmem:[#allocation60_spill] sm:$0xff]  ;;  %v8896_v39 = vld [vmem:[#allocation61_spill] sm:$0xff] }
 0x2a0   :  { %5336 = vmatprep.subr.bf16.mxu0 %v8886_v30  ;;  %5368 = vmatprep.subr.bf16.mxu1 %v8887_v49  ;;  %v8897_v30 = vld [vmem:[#allocation62_spill] sm:$0xff]  ;;  %v8898_v49 = vld [vmem:[#allocation63_spill] sm:$0xff] }
 0x2a3   :  { %5338 = vmatpush1.bf16.msra.mxu0 %v8888_v52  ;;  %5370 = vmatpush1.bf16.msra.mxu1 %v8889_v53  ;;  %v8899_v52 = vld [vmem:[#allocation64_spill] sm:$0xff]  ;;  %v8900_v53 = vld [vmem:[#allocation65_spill] sm:$0xff] }
 0x2a4   :  { %5340 = vmatprep.subr.bf16.mxu0 %v8890_v60  ;;  %5372 = vmatprep.subr.bf16.mxu1 %v8891_v15  ;;  %v8901_v60 = vld [vmem:[#allocation66_spill] sm:$0xff]  ;;  %v8902_v15 = vld [vmem:[#allocation67_spill] sm:$0xff] }
 0x2a7   :  { %5342 = vmatpush1.bf16.msra.mxu0 %v8892_v17  ;;  %5374 = vmatpush1.bf16.msra.mxu1 %v8893_v40  ;;  %v8903_v17 = vld [vmem:[#allocation68_spill] sm:$0xff] }
 0x2a8   :  { %5344 = vmatprep.subr.bf16.mxu0 %v8894_v48  ;;  %5376 = vmatprep.subr.bf16.mxu1 %v8895_v63 }
 0x2ab   :  { %5346 = vmatpush1.bf16.msra.mxu0 %v8896_v39  ;;  %5378 = vmatpush1.bf16.msra.mxu1 %v8897_v30 }
 0x2ac   :  { %5348 = vmatprep.subr.bf16.mxu0 %v8898_v49  ;;  %5380 = vmatprep.subr.bf16.mxu1 %v8899_v52  ;;  %v8906_v52 = vld [vmem:[#allocation104_spill] sm:$0xff] }
 0x2af   :  { %5350 = vmatpush1.bf16.msra.mxu0 %v8900_v53  ;;  %5382 = vmatpush1.bf16.msra.mxu1 %v8901_v60  ;;  %v8907_v60 = vld [vmem:[#allocation105_spill] sm:$0xff] }
 0x2b0   :  { %5384 = vmatprep.subr.bf16.mxu0 %v8902_v15  ;;  %5416 = vmatprep.subr.bf16.mxu1 %v8903_v17 }
 0x345   :  { %v1433_v40 = vpop.f32.mrb[18].mxu0  ;;  %v1504_v48 = vpop.f32.mrb[18].mxu1 }
 0x346   :  { %v1509_v63 = vadd.f32 %v1433_v40, %v8904_v28  ;;  %v1435_v26 = vpop.f32.mrb[19].mxu0  ;;  %v1506_v39 = vpop.f32.mrb[19].mxu1  ;;  %v1511_v3 = vadd.f32 %v1504_v48, %v8907_v60  ;;  %v8909_v60 = vld [vmem:[#allocation99_spill] sm:$0xff] }
 0x347   :  { %v1510_v30 = vadd.f32 %v1435_v26, %v8905_v14  ;;  %v1512_v53 = vadd.f32 %v1506_v39, %v8906_v52 }
 0x348   :  { %v4731_v6 = vmul.f32 -1.442695, %v1509_v63 }
 0x349   :  { %v4732_v49 = vmul.f32 -1.442695, %v1510_v30  ;;  %v4733_v4 = vmul.f32 -1.442695, %v1512_v53 }
 0x34a   :  { %6600 = vpow2.f32 %v4731_v6 }
 0x34b   :  { %6602 = vpow2.f32 %v4732_v49  ;;  %v8908_v49 = vld [vmem:[#allocation106_spill] sm:$0xff] }
 0x34c   :  { %6604 = vpow2.f32 %v4733_v4 }
 0x34d   :  { %6606 = vtanh.f32 %v1511_v3 }
 0x354   :  { %v6601_v15 = vpop.eup %6600 }
 0x355   :  { %v6603_v62 = vpop.eup %6602  ;;  %v1516_v17 = vadd.f32 1.0, %v6601_v15 }
 0x356   :  { %v1522_v56 = vadd.f32 1.0, %v6603_v62  ;;  %v6605_v40 = vpop.eup %6604 }
 0x357   :  { %6608 = vrcp.f32 %v1516_v17  ;;  %v6607_v28 = vpop.eup %6606  ;;  %v1529_v6 = vadd.f32 1.0, %v6605_v40 }
 0x358   :  { %6610 = vrcp.f32 %v1522_v56 }
 0x359   :  { %6612 = vrcp.f32 %v1529_v6 }
 0x361   :  { %v6609_v26 = vpop.eup %6608 }
 0x362   :  { %v6611_v63 = vpop.eup %6610  ;;  %v1533_v30 = vmul.f32 %v6609_v26, %v6607_v28 }
 0x363   :  { %v1532_v14 = vmul.f32 %v6611_v63, %v8908_v49  ;;  %v6613_v40 = vpop.eup %6612 }
 0x365   :  { %v7761_v39 = vadd.f32 %v1533_v30, %v1532_v14  ;;  %v1603_v53 = vpop.f32.mrb[4].mxu0  ;;  %v1674_v48 = vpop.f32.mrb[4].mxu1 }
 0x366   :  { %v6453_v15 = vadd.f32 %v1603_v53, %v8909_v60  ;;  %v1605_v4 = vpop.f32.mrb[5].mxu0  ;;  %v1676_v3 = vpop.f32.mrb[5].mxu1  ;;  %v6469_v63 = vadd.f32 %v1674_v48, %v7546_v21  ;;  %v8912_v48 = vld [vmem:[#allocation73_spill] sm:$0xff] }
 0x367   :  { %v6454_v62 = vadd.f32 %v1605_v4, %v8848_v19  ;;  %6614 = vtanh.f32 %v7761_v39  ;;  %v6470_v28 = vadd.f32 %v1676_v3, %v8849_v9  ;;  %v8910_v4 = vld [vmem:[#allocation71_spill] sm:$0xff]  ;;  %v8911_v3 = vld [vmem:[#allocation72_spill] sm:$0xff] }
 0x368   :  { %v4734_v56 = vmul.f32 -1.442695, %v6453_v15 }
 0x369   :  { %v4735_v17 = vmul.f32 -1.442695, %v6454_v62  ;;  %v4736_v26 = vmul.f32 -1.442695, %v6470_v28  ;;  %v8913_v62 = vld [vmem:[#allocation74_spill] sm:$0xff]  ;;  %v8916_v28 = vld [vmem:[#allocation77_spill] sm:$0xff] }
 0x36a   :  { %6616 = vpow2.f32 %v4734_v56  ;;  %v8914_v56 = vld [vmem:[#allocation75_spill] sm:$0xff] }
 0x36b   :  { %6618 = vpow2.f32 %v4735_v17  ;;  %v8915_v17 = vld [vmem:[#allocation76_spill] sm:$0xff] }
 0x36c   :  { %6620 = vpow2.f32 %v4736_v26  ;;  %v8919_v26 = vld [vmem:[#allocation80_spill] sm:$0xff] }
 0x36d   :  { %6622 = vtanh.f32 %v6469_v63 }
 0x371   :  { %v6615_v14 = vpop.eup %6614 }
 0x372   :  { %v1536_v30 = vmul.f32 %v6615_v14, %v6613_v40  ;;  %v8917_v40 = vld [vmem:[#allocation78_spill] sm:$0xff]  ;;  %v8918_v14 = vld [vmem:[#allocation79_spill] sm:$0xff] }
 0x374   :  { %v6617_v6 = vpop.eup %6616  ;;  %1772 = vmatmul.mubr.f32.vlgmr.msra.gmra.mrb[20].mxu0 %v1536_v30  ;;  %1843 = vmatmul.mubr.f32.vlgmr.msra.gmra.mrb[20].mxu1 %v1536_v30 }
 0x375   :  { %v6619_v49 = vpop.eup %6618  ;;  %v1686_v53 = vadd.f32 1.0, %v6617_v6  ;;  %5386 = vmatpush1.bf16.msra.mxu0 %v8850_v59  ;;  %5418 = vmatpush1.bf16.msra.mxu1 %v8851_v35 }
 0x376   :  { %v1692_v15 = vadd.f32 1.0, %v6619_v49  ;;  %5388 = vmatprep.subr.bf16.mxu0 %v8910_v4  ;;  %5420 = vmatprep.subr.bf16.mxu1 %v8911_v3  ;;  %v6621_v63 = vpop.eup %6620  ;;  %v8920_v49 = vld [vmem:[#allocation81_spill] sm:$0xff] }
 0x377   :  { %6624 = vrcp.f32 %v1686_v53  ;;  %1913 = vmatprep.mubr.f32.mxu0 %v8785_v44  ;;  %1984 = vmatprep.mubr.f32.mxu1 %v8785_v44  ;;  %v6623_v30 = vpop.eup %6622 }
 0x378   :  { %6626 = vrcp.f32 %v1692_v15 }
 0x379   :  { %5390 = vmatpush1.bf16.msra.mxu0 %v8912_v48  ;;  %5422 = vmatpush1.bf16.msra.mxu1 %v8913_v62 }
 0x37a   :  { %5392 = vmatprep.subr.bf16.mxu0 %v8914_v56  ;;  %5424 = vmatprep.subr.bf16.mxu1 %v8915_v17  ;;  %v1699_v56 = vadd.f32 1.0, %v6621_v63  ;;  %v8923_v17 = vld [vmem:[#allocation87_spill] sm:$0xff]  ;;  %v8925_v63 = vld [vmem:[#allocation89_spill] sm:$0xff] }
 0x37c   :  { %6628 = vrcp.f32 %v1699_v56 }
 0x37d   :  { %5394 = vmatpush1.bf16.msra.mxu0 %v8916_v28  ;;  %5426 = vmatpush1.bf16.msra.mxu1 %v8917_v40 }
 0x37e   :  { %5396 = vmatprep.subr.bf16.mxu0 %v8918_v14  ;;  %5428 = vmatprep.subr.bf16.mxu1 %v8919_v26  ;;  %v8921_v14 = vld [vmem:[#allocation85_spill] sm:$0xff]  ;;  %v8922_v26 = vld [vmem:[#allocation86_spill] sm:$0xff] }
 0x381   :  { %v6625_v6 = vpop.eup %6624  ;;  %5398 = vmatpush1.bf16.msra.mxu0 %v8920_v49  ;;  %5430 = vmatpush1.bf16.msra.mxu1 %v8863_v32  ;;  %v8924_v49 = vld [vmem:[#allocation88_spill] sm:$0xff] }
 0x382   :  { %v6627_v53 = vpop.eup %6626  ;;  %v1703_v15 = vmul.f32 %v6625_v6, %v6623_v30  ;;  %5400 = vmatprep.subr.bf16.mxu0 %v8864_v34  ;;  %5432 = vmatprep.subr.bf16.mxu1 %v8865_v12  ;;  %v8926_v30 = vld [vmem:[#allocation90_spill] sm:$0xff]  ;;  %v8927_v6 = vld [vmem:[#allocation91_spill] sm:$0xff] }
 0x383   :  { %v1702_v40 = vmul.f32 %v6627_v53, %v7669_v7  ;;  %v8928_v53 = vld [vmem:[#allocation31_spill] sm:$0xff] }
 0x385   :  { %v7787_v28 = vadd.f32 %v1703_v15, %v1702_v40  ;;  %5402 = vmatpush1.bf16.msra.mxu0 %v8921_v14  ;;  %5434 = vmatpush1.bf16.msra.mxu1 %v8922_v26  ;;  %v8929_v15 = vld [vmem:[#allocation32_spill] sm:$0xff] }
 0x386   :  { %5404 = vmatprep.subr.bf16.mxu0 %v8923_v17  ;;  %5436 = vmatprep.subr.bf16.mxu1 %v8924_v49  ;;  %v6629_v7 = vpop.eup %6628 }
 0x387   :  { %6630 = vtanh.f32 %v7787_v28 }
 0x389   :  { %5406 = vmatpush1.bf16.msra.mxu0 %v8925_v63  ;;  %5438 = vmatpush1.bf16.msra.mxu1 %v8926_v30 }
 0x38a   :  { %5408 = vmatprep.subr.bf16.mxu0 %v8927_v6  ;;  %5440 = vmatprep.subr.bf16.mxu1 %v8873_v1 }
 0x38d   :  { %5410 = vmatpush1.bf16.msra.mxu0 %v8874_v10  ;;  %5442 = vmatpush1.bf16.msra.mxu1 %v8875_v58 }
 0x38e   :  { %5412 = vmatprep.subr.bf16.mxu0 %v8876_v43  ;;  %5444 = vmatprep.subr.bf16.mxu1 %v8877_v0 }
 0x391   :  { %v6631_v56 = vpop.eup %6630  ;;  %5414 = vmatpush1.bf16.msra.mxu0 %v8878_v23  ;;  %5446 = vmatpush1.bf16.msra.mxu1 %v8879_v11 }
 0x392   :  { %5448 = vmatprep.subr.bf16.mxu0 %v8880_v47  ;;  %5480 = vmatprep.subr.bf16.mxu1 %v8881_v55  ;;  %v1706_v40 = vmul.f32 %v6631_v56, %v6629_v7  ;;  %v8930_v7 = vld [vmem:[#allocation33_spill] sm:$0xff]  ;;  %v8931_v56 = vld [vmem:[#allocation34_spill] sm:$0xff] }
 0x394   :  { %1914 = vmatmul.mubr.f32.vlgmr.msra.gmra.mrb[20].mxu0 %v1706_v40  ;;  %1985 = vmatmul.mubr.f32.vlgmr.msra.gmra.mrb[20].mxu1 %v1706_v40 }
 0x395   :  { %5450 = vmatpush1.bf16.msra.mxu0 %v7004_v16  ;;  %5482 = vmatpush1.bf16.msra.mxu1 %v7019_v20 }
 0x396   :  { %5452 = vmatprep.subr.bf16.mxu0 %v7031_v24  ;;  %5484 = vmatprep.subr.bf16.mxu1 %v7033_v25 }
 0x397   :  { %2083 = vmatprep.mubr.f32.mxu0 %v8785_v44  ;;  %2154 = vmatprep.mubr.f32.mxu1 %v8785_v44 }
 0x399   :  { %5454 = vmatpush1.bf16.msra.mxu0 %v7046_v29  ;;  %5486 = vmatpush1.bf16.msra.mxu1 %v7059_v33 }
 0x39a   :  { %5456 = vmatprep.subr.bf16.mxu0 %v7072_v37  ;;  %5488 = vmatprep.subr.bf16.mxu1 %v7074_v38 }
 0x39d   :  { %5458 = vmatpush1.bf16.msra.mxu0 %v7087_v42  ;;  %5490 = vmatpush1.bf16.msra.mxu1 %v7100_v46 }
 0x39e   :  { %5460 = vmatprep.subr.bf16.mxu0 %v7113_v50  ;;  %5492 = vmatprep.subr.bf16.mxu1 %v7126_v54 }
 0x3a1   :  { %5462 = vmatpush1.bf16.msra.mxu0 %v7136_v57  ;;  %5494 = vmatpush1.bf16.msra.mxu1 %v7149_v61 }
 0x3a2   :  { %5464 = vmatprep.subr.bf16.mxu0 %v7162_v2  ;;  %5496 = vmatprep.subr.bf16.mxu1 %v7172_v5 }
 0x3a5   :  { %5466 = vmatpush1.bf16.msra.mxu0 %v7182_v8  ;;  %5498 = vmatpush1.bf16.msra.mxu1 %v7192_v13  ;;  %v8967_v13 = vld [vmem:[#allocation103_spill] sm:$0xff] }
 0x3a6   :  { %5468 = vmatprep.subr.bf16.mxu0 %v7205_v18  ;;  %5500 = vmatprep.subr.bf16.mxu1 %v7215_v22  ;;  %v8932_v22 = vld [vmem:[#allocation35_spill] sm:$0xff] }
 0x3a9   :  { %5470 = vmatpush1.bf16.msra.mxu0 %v7225_v27  ;;  %5502 = vmatpush1.bf16.msra.mxu1 %v7235_v31  ;;  %v8933_v27 = vld [vmem:[#allocation36_spill] sm:$0xff]  ;;  %v8966_v31 = vld [vmem:[#allocation102_spill] sm:$0xff] }
 0x3aa   :  { %5472 = vmatprep.subr.bf16.mxu0 %v7248_v36  ;;  %5504 = vmatprep.subr.bf16.mxu1 %v7258_v41  ;;  %v8934_v36 = vld [vmem:[#allocation37_spill] sm:$0xff]  ;;  %v8935_v41 = vld [vmem:[#allocation38_spill] sm:$0xff] }
 0x3ad   :  { %5474 = vmatpush1.bf16.msra.mxu0 %v7268_v45  ;;  %5506 = vmatpush1.bf16.msra.mxu1 %v7281_v51  ;;  %v8936_v45 = vld [vmem:[#allocation39_spill] sm:$0xff]  ;;  %v8937_v51 = vld [vmem:[#allocation40_spill] sm:$0xff] }
 0x3ae   :  { %5476 = vmatprep.subr.bf16.mxu0 %v8928_v53  ;;  %5508 = vmatprep.subr.bf16.mxu1 %v8929_v15  ;;  %v8947_v15 = vld [vmem:[#allocation50_spill] sm:$0xff]  ;;  %v8948_v53 = vld [vmem:[#allocation51_spill] sm:$0xff] }
 0x3b1   :  { %5478 = vmatpush1.bf16.msra.mxu0 %v8930_v7  ;;  %5510 = vmatpush1.bf16.msra.mxu1 %v8931_v56  ;;  %v8938_v7 = vld [vmem:[#allocation41_spill] sm:$0xff]  ;;  %v8939_v56 = vld [vmem:[#allocation42_spill] sm:$0xff] }
 0x3b2   :  { %5512 = vmatprep.subr.bf16.mxu0 %v8932_v22  ;;  %5544 = vmatprep.subr.bf16.mxu1 %v8933_v27  ;;  %v8940_v22 = vld [vmem:[#allocation43_spill] sm:$0xff]  ;;  %v8941_v27 = vld [vmem:[#allocation44_spill] sm:$0xff] }
 0x3b4   :  { %2084 = vmatmul.mubr.f32.vlgmr.msra.gmra.mrb[6].mxu0 %v1706_v40  ;;  %2155 = vmatmul.mubr.f32.vlgmr.msra.gmra.mrb[6].mxu1 %v1706_v40  ;;  %v8942_v40 = vld [vmem:[#allocation45_spill] sm:$0xff] }
 0x3b5   :  { %5514 = vmatpush1.bf16.msra.mxu0 %v8934_v36  ;;  %5546 = vmatpush1.bf16.msra.mxu1 %v8935_v41  ;;  %v8943_v36 = vld [vmem:[#allocation46_spill] sm:$0xff]  ;;  %v8944_v41 = vld [vmem:[#allocation47_spill] sm:$0xff] }
 0x3b6   :  { %5516 = vmatprep.subr.bf16.mxu0 %v8936_v45  ;;  %5548 = vmatprep.subr.bf16.mxu1 %v8937_v51  ;;  %v8945_v45 = vld [vmem:[#allocation48_spill] sm:$0xff]  ;;  %v8946_v51 = vld [vmem:[#allocation49_spill] sm:$0xff] }
 0x3b7   :  { %2253 = vmatprep.mubr.f32.mxu0 %v8785_v44  ;;  %2324 = vmatprep.mubr.f32.mxu1 %v8785_v44 }
 0x3b9   :  { %5518 = vmatpush1.bf16.msra.mxu0 %v8938_v7  ;;  %5550 = vmatpush1.bf16.msra.mxu1 %v8939_v56  ;;  %v8949_v7 = vld [vmem:[#allocation52_spill] sm:$0xff]  ;;  %v8950_v56 = vld [vmem:[#allocation53_spill] sm:$0xff] }
 0x3ba   :  { %5520 = vmatprep.subr.bf16.mxu0 %v8940_v22  ;;  %5552 = vmatprep.subr.bf16.mxu1 %v8941_v27  ;;  %v8951_v22 = vld [vmem:[#allocation54_spill] sm:$0xff]  ;;  %v8952_v27 = vld [vmem:[#allocation55_spill] sm:$0xff] }
 0x3bd   :  { %5522 = vmatpush1.bf16.msra.mxu0 %v8942_v40  ;;  %5554 = vmatpush1.bf16.msra.mxu1 %v8943_v36  ;;  %v8953_v40 = vld [vmem:[#allocation56_spill] sm:$0xff]  ;;  %v8954_v36 = vld [vmem:[#allocation57_spill] sm:$0xff] }
 0x3be   :  { %5524 = vmatprep.subr.bf16.mxu0 %v8944_v41  ;;  %5556 = vmatprep.subr.bf16.mxu1 %v8945_v45  ;;  %v8955_v41 = vld [vmem:[#allocation58_spill] sm:$0xff]  ;;  %v8956_v45 = vld [vmem:[#allocation59_spill] sm:$0xff] }
 0x3c1   :  { %5526 = vmatpush1.bf16.msra.mxu0 %v8946_v51  ;;  %5558 = vmatpush1.bf16.msra.mxu1 %v8947_v15  ;;  %v8957_v51 = vld [vmem:[#allocation60_spill] sm:$0xff]  ;;  %v8958_v15 = vld [vmem:[#allocation61_spill] sm:$0xff] }
 0x3c2   :  { %5528 = vmatprep.subr.bf16.mxu0 %v8948_v53  ;;  %5560 = vmatprep.subr.bf16.mxu1 %v8949_v7  ;;  %v8959_v53 = vld [vmem:[#allocation62_spill] sm:$0xff]  ;;  %v8960_v7 = vld [vmem:[#allocation63_spill] sm:$0xff] }
 0x3c5   :  { %5530 = vmatpush1.bf16.msra.mxu0 %v8950_v56  ;;  %5562 = vmatpush1.bf16.msra.mxu1 %v8951_v22  ;;  %v8961_v56 = vld [vmem:[#allocation64_spill] sm:$0xff]  ;;  %v8962_v22 = vld [vmem:[#allocation65_spill] sm:$0xff] }
 0x3c6   :  { %5532 = vmatprep.subr.bf16.mxu0 %v8952_v27  ;;  %5564 = vmatprep.subr.bf16.mxu1 %v8953_v40  ;;  %v8963_v27 = vld [vmem:[#allocation66_spill] sm:$0xff]  ;;  %v8964_v40 = vld [vmem:[#allocation67_spill] sm:$0xff] }
 0x3c9   :  { %5534 = vmatpush1.bf16.msra.mxu0 %v8954_v36  ;;  %5566 = vmatpush1.bf16.msra.mxu1 %v8955_v41  ;;  %v8965_v36 = vld [vmem:[#allocation68_spill] sm:$0xff] }
 0x3ca   :  { %5536 = vmatprep.subr.bf16.mxu0 %v8956_v45  ;;  %5568 = vmatprep.subr.bf16.mxu1 %v8957_v51 }
 0x3cd   :  { %5538 = vmatpush1.bf16.msra.mxu0 %v8958_v15  ;;  %5570 = vmatpush1.bf16.msra.mxu1 %v8959_v53 }
 0x3ce   :  { %5540 = vmatprep.subr.bf16.mxu0 %v8960_v7  ;;  %5572 = vmatprep.subr.bf16.mxu1 %v8961_v56 }
 0x3d1   :  { %5542 = vmatpush1.bf16.msra.mxu0 %v8962_v22  ;;  %5574 = vmatpush1.bf16.msra.mxu1 %v8963_v27  ;;  %v8968_v27 = vld [vmem:[#allocation105_spill] sm:$0xff] }
 0x3d2   :  { %5576 = vmatprep.subr.bf16.mxu0 %v8964_v40  ;;  %5608 = vmatprep.subr.bf16.mxu1 %v8965_v36 }
 0x467   :  { %v1915_v41 = vpop.f32.mrb[20].mxu0  ;;  %v1986_v45 = vpop.f32.mrb[20].mxu1 }
 0x468   :  { %v1991_v51 = vadd.f32 %v1915_v41, %v8966_v31  ;;  %v1917_v18 = vpop.f32.mrb[21].mxu0  ;;  %v1988_v15 = vpop.f32.mrb[21].mxu1  ;;  %v1993_v5 = vadd.f32 %v1986_v45, %v8968_v27 }
 0x469   :  { %v1992_v53 = vadd.f32 %v1917_v18, %v8967_v13  ;;  %v1994_v22 = vadd.f32 %v1988_v15, %v8906_v52 }
 0x46a   :  { %v4737_v8 = vmul.f32 -1.442695, %v1991_v51 }
 0x46b   :  { %v4738_v7 = vmul.f32 -1.442695, %v1992_v53  ;;  %v4739_v56 = vmul.f32 -1.442695, %v1994_v22 }
 0x46c   :  { %6632 = vpow2.f32 %v4737_v8 }
 0x46d   :  { %6634 = vpow2.f32 %v4738_v7 }
 0x46e   :  { %6636 = vpow2.f32 %v4739_v56 }
 0x46f   :  { %6638 = vtanh.f32 %v1993_v5 }
 0x476   :  { %v6633_v40 = vpop.eup %6632 }
 0x477   :  { %v6635_v2 = vpop.eup %6634  ;;  %v1998_v36 = vadd.f32 1.0, %v6633_v40 }
 0x478   :  { %v2004_v61 = vadd.f32 1.0, %v6635_v2  ;;  %v6637_v41 = vpop.eup %6636 }
 0x479   :  { %6640 = vrcp.f32 %v1998_v36  ;;  %v6639_v31 = vpop.eup %6638  ;;  %v2011_v8 = vadd.f32 1.0, %v6637_v41 }
 0x47a   :  { %6642 = vrcp.f32 %v2004_v61 }
 0x47b   :  { %6644 = vrcp.f32 %v2011_v8 }
 0x483   :  { %v6641_v18 = vpop.eup %6640 }
 0x484   :  { %v6643_v51 = vpop.eup %6642  ;;  %v2015_v53 = vmul.f32 %v6641_v18, %v6639_v31 }
 0x485   :  { %v2014_v7 = vmul.f32 %v6643_v51, %v7761_v39  ;;  %v6645_v39 = vpop.eup %6644 }
 0x487   :  { %v7879_v15 = vadd.f32 %v2015_v53, %v2014_v7  ;;  %v2085_v22 = vpop.f32.mrb[6].mxu0  ;;  %v2156_v45 = vpop.f32.mrb[6].mxu1 }
 0x488   :  { %v6455_v40 = vadd.f32 %v2085_v22, %v8909_v60  ;;  %v2087_v56 = vpop.f32.mrb[7].mxu0  ;;  %v2158_v5 = vpop.f32.mrb[7].mxu1  ;;  %v6471_v51 = vadd.f32 %v2156_v45, %v7546_v21  ;;  %v8969_v45 = vld [vmem:[#allocation75_spill] sm:$0xff] }
 0x489   :  { %v6456_v2 = vadd.f32 %v2087_v56, %v8848_v19  ;;  %6646 = vtanh.f32 %v7879_v15  ;;  %v6472_v31 = vadd.f32 %v2158_v5, %v8849_v9  ;;  %v8970_v56 = vld [vmem:[#allocation76_spill] sm:$0xff]  ;;  %v8971_v5 = vld [vmem:[#allocation77_spill] sm:$0xff] }
 0x48a   :  { %v4740_v61 = vmul.f32 -1.442695, %v6455_v40 }
 0x48b   :  { %v4741_v36 = vmul.f32 -1.442695, %v6456_v2  ;;  %v4742_v18 = vmul.f32 -1.442695, %v6472_v31  ;;  %v8972_v2 = vld [vmem:[#allocation78_spill] sm:$0xff] }
 0x48c   :  { %6648 = vpow2.f32 %v4740_v61  ;;  %v8973_v61 = vld [vmem:[#allocation79_spill] sm:$0xff] }
 0x48d   :  { %6650 = vpow2.f32 %v4741_v36  ;;  %v8974_v36 = vld [vmem:[#allocation80_spill] sm:$0xff] }
 0x48e   :  { %6652 = vpow2.f32 %v4742_v18  ;;  %v8975_v18 = vld [vmem:[#allocation81_spill] sm:$0xff] }
 0x48f   :  { %6654 = vtanh.f32 %v6471_v51 }
 0x493   :  { %v6647_v41 = vpop.eup %6646 }
 0x494   :  { %v2018_v53 = vmul.f32 %v6647_v41, %v6645_v39 }
 0x496   :  { %v6649_v8 = vpop.eup %6648  ;;  %2254 = vmatmul.mubr.f32.vlgmr.msra.gmra.mrb[22].mxu0 %v2018_v53  ;;  %2325 = vmatmul.mubr.f32.vlgmr.msra.gmra.mrb[22].mxu1 %v2018_v53 }
 0x497   :  { %v6651_v7 = vpop.eup %6650  ;;  %v2168_v22 = vadd.f32 1.0, %v6649_v8  ;;  %5578 = vmatpush1.bf16.msra.mxu0 %v8850_v59  ;;  %5610 = vmatpush1.bf16.msra.mxu1 %v8851_v35 }
 0x498   :  { %v2174_v40 = vadd.f32 1.0, %v6651_v7  ;;  %5580 = vmatprep.subr.bf16.mxu0 %v8910_v4  ;;  %5612 = vmatprep.subr.bf16.mxu1 %v8911_v3  ;;  %v6653_v31 = vpop.eup %6652 }
 0x499   :  { %6656 = vrcp.f32 %v2168_v22  ;;  %2395 = vmatprep.mubr.f32.mxu0 %v8785_v44  ;;  %2466 = vmatprep.mubr.f32.mxu1 %v8785_v44  ;;  %v6655_v39 = vpop.eup %6654  ;;  %v2181_v8 = vadd.f32 1.0, %v6653_v31 }
 0x49a   :  { %6658 = vrcp.f32 %v2174_v40 }
 0x49b   :  { %5582 = vmatpush1.bf16.msra.mxu0 %v8912_v48  ;;  %5614 = vmatpush1.bf16.msra.mxu1 %v8913_v62  ;;  %6660 = vrcp.f32 %v2181_v8  ;;  %v8980_v8 = vld [vmem:[#allocation22_spill] sm:$0xff] }
 0x49c   :  { %5584 = vmatprep.subr.bf16.mxu0 %v8969_v45  ;;  %5616 = vmatprep.subr.bf16.mxu1 %v8970_v56 }
 0x49f   :  { %5586 = vmatpush1.bf16.msra.mxu0 %v8971_v5  ;;  %5618 = vmatpush1.bf16.msra.mxu1 %v8972_v2 }
 0x4a0   :  { %5588 = vmatprep.subr.bf16.mxu0 %v8973_v61  ;;  %5620 = vmatprep.subr.bf16.mxu1 %v8974_v36 }
 0x4a3   :  { %v6657_v41 = vpop.eup %6656  ;;  %5590 = vmatpush1.bf16.msra.mxu0 %v8975_v18  ;;  %5622 = vmatpush1.bf16.msra.mxu1 %v8863_v32 }
 0x4a4   :  { %v6659_v51 = vpop.eup %6658  ;;  %v2185_v53 = vmul.f32 %v6657_v41, %v6655_v39  ;;  %5592 = vmatprep.subr.bf16.mxu0 %v8864_v34  ;;  %5624 = vmatprep.subr.bf16.mxu1 %v8865_v12  ;;  %v8976_v39 = vld [vmem:[#allocation18_spill] sm:$0xff]  ;;  %v8977_v41 = vld [vmem:[#allocation19_spill] sm:$0xff] }
 0x4a5   :  { %v2184_v7 = vmul.f32 %v6659_v51, %v7787_v28  ;;  %v6661_v28 = vpop.eup %6660  ;;  %v8978_v51 = vld [vmem:[#allocation20_spill] sm:$0xff] }
 0x4a7   :  { %v7905_v22 = vadd.f32 %v2185_v53, %v2184_v7  ;;  %5594 = vmatpush1.bf16.msra.mxu0 %v8921_v14  ;;  %5626 = vmatpush1.bf16.msra.mxu1 %v8922_v26  ;;  %v8979_v53 = vld [vmem:[#allocation21_spill] sm:$0xff]  ;;  %v8981_v7 = vld [vmem:[#allocation23_spill] sm:$0xff] }
 0x4a8   :  { %5596 = vmatprep.subr.bf16.mxu0 %v8923_v17  ;;  %5628 = vmatprep.subr.bf16.mxu1 %v8924_v49 }
 0x4a9   :  { %6662 = vtanh.f32 %v7905_v22 }
 0x4ab   :  { %5598 = vmatpush1.bf16.msra.mxu0 %v8925_v63  ;;  %5630 = vmatpush1.bf16.msra.mxu1 %v8926_v30 }
 0x4ac   :  { %5600 = vmatprep.subr.bf16.mxu0 %v8927_v6  ;;  %5632 = vmatprep.subr.bf16.mxu1 %v8873_v1 }
 0x4af   :  { %5602 = vmatpush1.bf16.msra.mxu0 %v8874_v10  ;;  %5634 = vmatpush1.bf16.msra.mxu1 %v8875_v58 }
 0x4b0   :  { %5604 = vmatprep.subr.bf16.mxu0 %v8876_v43  ;;  %5636 = vmatprep.subr.bf16.mxu1 %v8877_v0 }
 0x4b3   :  { %v6663_v40 = vpop.eup %6662  ;;  %5606 = vmatpush1.bf16.msra.mxu0 %v8878_v23  ;;  %5638 = vmatpush1.bf16.msra.mxu1 %v8879_v11 }
 0x4b4   :  { %v2188_v31 = vmul.f32 %v6663_v40, %v6661_v28  ;;  %5640 = vmatprep.subr.bf16.mxu0 %v8880_v47  ;;  %5672 = vmatprep.subr.bf16.mxu1 %v8881_v55  ;;  %v8982_v28 = vld [vmem:[#allocation24_spill] sm:$0xff]  ;;  %v8983_v40 = vld [vmem:[#allocation25_spill] sm:$0xff] }
 0x4b6   :  { %2396 = vmatmul.mubr.f32.vlgmr.msra.gmra.mrb[22].mxu0 %v2188_v31  ;;  %2467 = vmatmul.mubr.f32.vlgmr.msra.gmra.mrb[22].mxu1 %v2188_v31 }
 0x4b7   :  { %5642 = vmatpush1.bf16.msra.mxu0 %v7004_v16  ;;  %5674 = vmatpush1.bf16.msra.mxu1 %v7019_v20 }
 0x4b8   :  { %5644 = vmatprep.subr.bf16.mxu0 %v7031_v24  ;;  %5676 = vmatprep.subr.bf16.mxu1 %v7033_v25 }
 0x4b9   :  { %2565 = vmatprep.mubr.f32.mxu0 %v8785_v44  ;;  %2636 = vmatprep.mubr.f32.mxu1 %v8785_v44 }
 0x4bb   :  { %5646 = vmatpush1.bf16.msra.mxu0 %v7046_v29  ;;  %5678 = vmatpush1.bf16.msra.mxu1 %v7059_v33 }
 0x4bc   :  { %5648 = vmatprep.subr.bf16.mxu0 %v7072_v37  ;;  %5680 = vmatprep.subr.bf16.mxu1 %v7074_v38 }
 0x4bf   :  { %5650 = vmatpush1.bf16.msra.mxu0 %v7087_v42  ;;  %5682 = vmatpush1.bf16.msra.mxu1 %v7100_v46 }
 0x4c0   :  { %5652 = vmatprep.subr.bf16.mxu0 %v7113_v50  ;;  %5684 = vmatprep.subr.bf16.mxu1 %v7126_v54  ;;  %v8984_v50 = vld [vmem:[#allocation26_spill] sm:$0xff]  ;;  %v8985_v54 = vld [vmem:[#allocation27_spill] sm:$0xff] }
 0x4c3   :  { %5654 = vmatpush1.bf16.msra.mxu0 %v7136_v57  ;;  %5686 = vmatpush1.bf16.msra.mxu1 %v8976_v39  ;;  %v8986_v57 = vld [vmem:[#allocation28_spill] sm:$0xff]  ;;  %v8987_v39 = vld [vmem:[#allocation29_spill] sm:$0xff] }
 0x4c4   :  { %5656 = vmatprep.subr.bf16.mxu0 %v8977_v41  ;;  %5688 = vmatprep.subr.bf16.mxu1 %v8978_v51  ;;  %v8988_v41 = vld [vmem:[#allocation30_spill] sm:$0xff]  ;;  %v8989_v51 = vld [vmem:[#allocation31_spill] sm:$0xff] }
 0x4c7   :  { %5658 = vmatpush1.bf16.msra.mxu0 %v8979_v53  ;;  %5690 = vmatpush1.bf16.msra.mxu1 %v8980_v8  ;;  %v8990_v53 = vld [vmem:[#allocation32_spill] sm:$0xff]  ;;  %v8991_v8 = vld [vmem:[#allocation33_spill] sm:$0xff] }
 0x4c8   :  { %5660 = vmatprep.subr.bf16.mxu0 %v8981_v7  ;;  %5692 = vmatprep.subr.bf16.mxu1 %v8982_v28  ;;  %v8992_v7 = vld [vmem:[#allocation34_spill] sm:$0xff]  ;;  %v8993_v28 = vld [vmem:[#allocation35_spill] sm:$0xff] }
 0x4cb   :  { %5662 = vmatpush1.bf16.msra.mxu0 %v8983_v40  ;;  %5694 = vmatpush1.bf16.msra.mxu1 %v8984_v50  ;;  %v8994_v40 = vld [vmem:[#allocation36_spill] sm:$0xff]  ;;  %v9027_v50 = vld [vmem:[#allocation102_spill] sm:$0xff] }
 0x4cc   :  { %5664 = vmatprep.subr.bf16.mxu0 %v8985_v54  ;;  %5696 = vmatprep.subr.bf16.mxu1 %v8986_v57  ;;  %v8995_v54 = vld [vmem:[#allocation37_spill] sm:$0xff]  ;;  %v8996_v57 = vld [vmem:[#allocation38_spill] sm:$0xff] }
 0x4cf   :  { %5666 = vmatpush1.bf16.msra.mxu0 %v8987_v39  ;;  %5698 = vmatpush1.bf16.msra.mxu1 %v8988_v41  ;;  %v8997_v39 = vld [vmem:[#allocation39_spill] sm:$0xff]  ;;  %v8998_v41 = vld [vmem:[#allocation40_spill] sm:$0xff] }
 0x4d0   :  { %5668 = vmatprep.subr.bf16.mxu0 %v8989_v51  ;;  %5700 = vmatprep.subr.bf16.mxu1 %v8990_v53  ;;  %v9008_v53 = vld [vmem:[#allocation50_spill] sm:$0xff]  ;;  %v9009_v51 = vld [vmem:[#allocation51_spill] sm:$0xff] }
 0x4d3   :  { %5670 = vmatpush1.bf16.msra.mxu0 %v8991_v8  ;;  %5702 = vmatpush1.bf16.msra.mxu1 %v8992_v7  ;;  %v8999_v8 = vld [vmem:[#allocation41_spill] sm:$0xff]  ;;  %v9000_v7 = vld [vmem:[#allocation42_spill] sm:$0xff] }
 0x4d4   :  { %5704 = vmatprep.subr.bf16.mxu0 %v8993_v28  ;;  %5736 = vmatprep.subr.bf16.mxu1 %v8994_v40  ;;  %v9001_v28 = vld [vmem:[#allocation43_spill] sm:$0xff]  ;;  %v9002_v40 = vld [vmem:[#allocation44_spill] sm:$0xff] }
 0x4d6   :  { %2566 = vmatmul.mubr.f32.vlgmr.msra.gmra.mrb[8].mxu0 %v2188_v31  ;;  %2637 = vmatmul.mubr.f32.vlgmr.msra.gmra.mrb[8].mxu1 %v2188_v31  ;;  %v9003_v31 = vld [vmem:[#allocation45_spill] sm:$0xff] }
 0x4d7   :  { %5706 = vmatpush1.bf16.msra.mxu0 %v8995_v54  ;;  %5738 = vmatpush1.bf16.msra.mxu1 %v8996_v57  ;;  %v9004_v54 = vld [vmem:[#allocation46_spill] sm:$0xff]  ;;  %v9005_v57 = vld [vmem:[#allocation47_spill] sm:$0xff] }
 0x4d8   :  { %5708 = vmatprep.subr.bf16.mxu0 %v8997_v39  ;;  %5740 = vmatprep.subr.bf16.mxu1 %v8998_v41  ;;  %v9006_v39 = vld [vmem:[#allocation48_spill] sm:$0xff]  ;;  %v9007_v41 = vld [vmem:[#allocation49_spill] sm:$0xff] }
 0x4d9   :  { %2735 = vmatprep.mubr.f32.mxu0 %v8785_v44  ;;  %2806 = vmatprep.mubr.f32.mxu1 %v8785_v44 }
 0x4db   :  { %5710 = vmatpush1.bf16.msra.mxu0 %v8999_v8  ;;  %5742 = vmatpush1.bf16.msra.mxu1 %v9000_v7  ;;  %v9010_v8 = vld [vmem:[#allocation52_spill] sm:$0xff]  ;;  %v9011_v7 = vld [vmem:[#allocation53_spill] sm:$0xff] }
 0x4dc   :  { %5712 = vmatprep.subr.bf16.mxu0 %v9001_v28  ;;  %5744 = vmatprep.subr.bf16.mxu1 %v9002_v40  ;;  %v9012_v28 = vld [vmem:[#allocation54_spill] sm:$0xff]  ;;  %v9013_v40 = vld [vmem:[#allocation55_spill] sm:$0xff] }
 0x4df   :  { %5714 = vmatpush1.bf16.msra.mxu0 %v9003_v31  ;;  %5746 = vmatpush1.bf16.msra.mxu1 %v9004_v54  ;;  %v9014_v31 = vld [vmem:[#allocation56_spill] sm:$0xff]  ;;  %v9015_v54 = vld [vmem:[#allocation57_spill] sm:$0xff] }
 0x4e0   :  { %5716 = vmatprep.subr.bf16.mxu0 %v9005_v57  ;;  %5748 = vmatprep.subr.bf16.mxu1 %v9006_v39  ;;  %v9016_v57 = vld [vmem:[#allocation58_spill] sm:$0xff]  ;;  %v9017_v39 = vld [vmem:[#allocation59_spill] sm:$0xff] }
 0x4e3   :  { %5718 = vmatpush1.bf16.msra.mxu0 %v9007_v41  ;;  %5750 = vmatpush1.bf16.msra.mxu1 %v9008_v53  ;;  %v9018_v41 = vld [vmem:[#allocation60_spill] sm:$0xff]  ;;  %v9019_v53 = vld [vmem:[#allocation61_spill] sm:$0xff] }
 0x4e4   :  { %5720 = vmatprep.subr.bf16.mxu0 %v9009_v51  ;;  %5752 = vmatprep.subr.bf16.mxu1 %v9010_v8  ;;  %v9020_v51 = vld [vmem:[#allocation62_spill] sm:$0xff]  ;;  %v9021_v8 = vld [vmem:[#allocation63_spill] sm:$0xff] }
 0x4e7   :  { %5722 = vmatpush1.bf16.msra.mxu0 %v9011_v7  ;;  %5754 = vmatpush1.bf16.msra.mxu1 %v9012_v28  ;;  %v9022_v7 = vld [vmem:[#allocation64_spill] sm:$0xff]  ;;  %v9023_v28 = vld [vmem:[#allocation65_spill] sm:$0xff] }
 0x4e8   :  { %5724 = vmatprep.subr.bf16.mxu0 %v9013_v40  ;;  %5756 = vmatprep.subr.bf16.mxu1 %v9014_v31  ;;  %v9024_v40 = vld [vmem:[#allocation66_spill] sm:$0xff]  ;;  %v9025_v31 = vld [vmem:[#allocation67_spill] sm:$0xff] }
 0x4eb   :  { %5726 = vmatpush1.bf16.msra.mxu0 %v9015_v54  ;;  %5758 = vmatpush1.bf16.msra.mxu1 %v9016_v57  ;;  %v9026_v54 = vld [vmem:[#allocation68_spill] sm:$0xff] }
 0x4ec   :  { %5728 = vmatprep.subr.bf16.mxu0 %v9017_v39  ;;  %5760 = vmatprep.subr.bf16.mxu1 %v9018_v41 }
 0x4ef   :  { %5730 = vmatpush1.bf16.msra.mxu0 %v9019_v53  ;;  %5762 = vmatpush1.bf16.msra.mxu1 %v9020_v51 }
 0x4f0   :  { %5732 = vmatprep.subr.bf16.mxu0 %v9021_v8  ;;  %5764 = vmatprep.subr.bf16.mxu1 %v9022_v7 }
 0x4f3   :  { %5734 = vmatpush1.bf16.msra.mxu0 %v9023_v28  ;;  %5766 = vmatpush1.bf16.msra.mxu1 %v9024_v40 }
 0x4f4   :  { %5768 = vmatprep.subr.bf16.mxu0 %v9025_v31  ;;  %5800 = vmatprep.subr.bf16.mxu1 %v9026_v54 }
 0x589   :  { %v2397_v57 = vpop.f32.mrb[22].mxu0  ;;  %v2468_v39 = vpop.f32.mrb[22].mxu1 }
 0x58a   :  { %v2473_v41 = vadd.f32 %v2397_v57, %v9027_v50  ;;  %v2399_v46 = vpop.f32.mrb[23].mxu0  ;;  %v2470_v53 = vpop.f32.mrb[23].mxu1  ;;  %v2475_v40 = vadd.f32 %v2468_v39, %v8968_v27 }
 0x58b   :  { %v2474_v51 = vadd.f32 %v2399_v46, %v8967_v13  ;;  %v2476_v28 = vadd.f32 %v2470_v53, %v8906_v52 }
 0x58c   :  { %v4743_v42 = vmul.f32 -1.442695, %v2473_v41 }
 0x58d   :  { %v4744_v8 = vmul.f32 -1.442695, %v2474_v51  ;;  %v4745_v7 = vmul.f32 -1.442695, %v2476_v28 }
 0x58e   :  { %6664 = vpow2.f32 %v4743_v42 }
 0x58f   :  { %6666 = vpow2.f32 %v4744_v8 }
 0x590   :  { %6668 = vpow2.f32 %v4745_v7 }
 0x591   :  { %6670 = vtanh.f32 %v2475_v40 }
 0x598   :  { %v6665_v31 = vpop.eup %6664 }
 0x599   :  { %v6667_v38 = vpop.eup %6666  ;;  %v2480_v54 = vadd.f32 1.0, %v6665_v31 }
 0x59a   :  { %v2486_v37 = vadd.f32 1.0, %v6667_v38  ;;  %v6669_v57 = vpop.eup %6668 }
 0x59b   :  { %6672 = vrcp.f32 %v2480_v54  ;;  %v6671_v50 = vpop.eup %6670  ;;  %v2493_v42 = vadd.f32 1.0, %v6669_v57 }
 0x59c   :  { %6674 = vrcp.f32 %v2486_v37 }
 0x59d   :  { %6676 = vrcp.f32 %v2493_v42 }
 0x5a5   :  { %v6673_v46 = vpop.eup %6672 }
 0x5a6   :  { %v6675_v41 = vpop.eup %6674  ;;  %v2497_v51 = vmul.f32 %v6673_v46, %v6671_v50 }
 0x5a7   :  { %v2496_v8 = vmul.f32 %v6675_v41, %v7879_v15  ;;  %v6677_v15 = vpop.eup %6676 }
 0x5a9   :  { %v7997_v53 = vadd.f32 %v2497_v51, %v2496_v8  ;;  %v2567_v28 = vpop.f32.mrb[8].mxu0  ;;  %v2638_v39 = vpop.f32.mrb[8].mxu1 }
 0x5aa   :  { %v6457_v31 = vadd.f32 %v2567_v28, %v8909_v60  ;;  %v2569_v7 = vpop.f32.mrb[9].mxu0  ;;  %v2640_v40 = vpop.f32.mrb[9].mxu1  ;;  %v6473_v41 = vadd.f32 %v2638_v39, %v7546_v21 }
 0x5ab   :  { %v6458_v38 = vadd.f32 %v2569_v7, %v8848_v19  ;;  %6678 = vtanh.f32 %v7997_v53  ;;  %v6474_v50 = vadd.f32 %v2640_v40, %v8849_v9 }
 0x5ac   :  { %v4746_v37 = vmul.f32 -1.442695, %v6457_v31 }
 0x5ad   :  { %v4747_v54 = vmul.f32 -1.442695, %v6458_v38  ;;  %v4748_v46 = vmul.f32 -1.442695, %v6474_v50 }
 0x5ae   :  { %6680 = vpow2.f32 %v4746_v37 }
 0x5af   :  { %6682 = vpow2.f32 %v4747_v54 }
 0x5b0   :  { %6684 = vpow2.f32 %v4748_v46 }
 0x5b1   :  { %6686 = vtanh.f32 %v6473_v41  ;;  %v9028_v41 = vld [vmem:[#allocation11_spill] sm:$0xff] }
 0x5b5   :  { %v6679_v57 = vpop.eup %6678 }
 0x5b6   :  { %v2500_v51 = vmul.f32 %v6679_v57, %v6677_v15 }
 0x5b8   :  { %v6681_v42 = vpop.eup %6680  ;;  %2736 = vmatmul.mubr.f32.vlgmr.msra.gmra.mrb[24].mxu0 %v2500_v51  ;;  %2807 = vmatmul.mubr.f32.vlgmr.msra.gmra.mrb[24].mxu1 %v2500_v51  ;;  %v9029_v51 = vld [vmem:[#allocation12_spill] sm:$0xff] }
 0x5b9   :  { %v6683_v8 = vpop.eup %6682  ;;  %v2650_v28 = vadd.f32 1.0, %v6681_v42  ;;  %5770 = vmatpush1.bf16.msra.mxu0 %v8850_v59  ;;  %5802 = vmatpush1.bf16.msra.mxu1 %v8851_v35  ;;  %v9030_v42 = vld [vmem:[#allocation13_spill] sm:$0xff] }
 0x5ba   :  { %v2656_v31 = vadd.f32 1.0, %v6683_v8  ;;  %5772 = vmatprep.subr.bf16.mxu0 %v8910_v4  ;;  %5804 = vmatprep.subr.bf16.mxu1 %v8911_v3  ;;  %v6685_v39 = vpop.eup %6684  ;;  %v9031_v8 = vld [vmem:[#allocation14_spill] sm:$0xff] }
 0x5bb   :  { %6688 = vrcp.f32 %v2650_v28  ;;  %2877 = vmatprep.mubr.f32.mxu0 %v8785_v44  ;;  %2948 = vmatprep.mubr.f32.mxu1 %v8785_v44  ;;  %v6687_v7 = vpop.eup %6686  ;;  %v2663_v54 = vadd.f32 1.0, %v6685_v39  ;;  %v9032_v28 = vld [vmem:[#allocation15_spill] sm:$0xff]  ;;  %v9034_v39 = vld [vmem:[#allocation17_spill] sm:$0xff] }
 0x5bc   :  { %6690 = vrcp.f32 %v2656_v31  ;;  %v9033_v31 = vld [vmem:[#allocation16_spill] sm:$0xff] }
 0x5bd   :  { %5774 = vmatpush1.bf16.msra.mxu0 %v8912_v48  ;;  %5806 = vmatpush1.bf16.msra.mxu1 %v8913_v62  ;;  %6692 = vrcp.f32 %v2663_v54  ;;  %v9039_v54 = vld [vmem:[#allocation22_spill] sm:$0xff] }
 0x5be   :  { %5776 = vmatprep.subr.bf16.mxu0 %v8969_v45  ;;  %5808 = vmatprep.subr.bf16.mxu1 %v8970_v56 }
 0x5c1   :  { %5778 = vmatpush1.bf16.msra.mxu0 %v8971_v5  ;;  %5810 = vmatpush1.bf16.msra.mxu1 %v8972_v2 }
 0x5c2   :  { %5780 = vmatprep.subr.bf16.mxu0 %v8973_v61  ;;  %5812 = vmatprep.subr.bf16.mxu1 %v8974_v36 }
 0x5c5   :  { %v6689_v40 = vpop.eup %6688  ;;  %5782 = vmatpush1.bf16.msra.mxu0 %v8975_v18  ;;  %5814 = vmatpush1.bf16.msra.mxu1 %v8863_v32 }
 0x5c6   :  { %v6691_v38 = vpop.eup %6690  ;;  %v2667_v37 = vmul.f32 %v6689_v40, %v6687_v7  ;;  %5784 = vmatprep.subr.bf16.mxu0 %v8864_v34  ;;  %5816 = vmatprep.subr.bf16.mxu1 %v8865_v12  ;;  %v9035_v7 = vld [vmem:[#allocation18_spill] sm:$0xff]  ;;  %v9036_v40 = vld [vmem:[#allocation19_spill] sm:$0xff] }
 0x5c7   :  { %v2666_v50 = vmul.f32 %v6691_v38, %v7905_v22  ;;  %v6693_v22 = vpop.eup %6692  ;;  %v9037_v38 = vld [vmem:[#allocation20_spill] sm:$0xff] }
 0x5c9   :  { %v8023_v15 = vadd.f32 %v2667_v37, %v2666_v50  ;;  %5786 = vmatpush1.bf16.msra.mxu0 %v8921_v14  ;;  %5818 = vmatpush1.bf16.msra.mxu1 %v8922_v26  ;;  %v9038_v37 = vld [vmem:[#allocation21_spill] sm:$0xff]  ;;  %v9040_v50 = vld [vmem:[#allocation23_spill] sm:$0xff] }
 0x5ca   :  { %5788 = vmatprep.subr.bf16.mxu0 %v8923_v17  ;;  %5820 = vmatprep.subr.bf16.mxu1 %v8924_v49 }
 0x5cb   :  { %6694 = vtanh.f32 %v8023_v15 }
 0x5cd   :  { %5790 = vmatpush1.bf16.msra.mxu0 %v8925_v63  ;;  %5822 = vmatpush1.bf16.msra.mxu1 %v8926_v30 }
 0x5ce   :  { %5792 = vmatprep.subr.bf16.mxu0 %v8927_v6  ;;  %5824 = vmatprep.subr.bf16.mxu1 %v8873_v1 }
 0x5d1   :  { %5794 = vmatpush1.bf16.msra.mxu0 %v8874_v10  ;;  %5826 = vmatpush1.bf16.msra.mxu1 %v8875_v58 }
 0x5d2   :  { %5796 = vmatprep.subr.bf16.mxu0 %v8876_v43  ;;  %5828 = vmatprep.subr.bf16.mxu1 %v8877_v0 }
 0x5d5   :  { %v6695_v57 = vpop.eup %6694  ;;  %5798 = vmatpush1.bf16.msra.mxu0 %v8878_v23  ;;  %5830 = vmatpush1.bf16.msra.mxu1 %v8879_v11 }
 0x5d6   :  { %5832 = vmatprep.subr.bf16.mxu0 %v8880_v47  ;;  %5864 = vmatprep.subr.bf16.mxu1 %v8881_v55  ;;  %v2670_v46 = vmul.f32 %v6695_v57, %v6693_v22  ;;  %v9041_v22 = vld [vmem:[#allocation24_spill] sm:$0xff]  ;;  %v9042_v57 = vld [vmem:[#allocation25_spill] sm:$0xff] }
 0x5d8   :  { %2878 = vmatmul.mubr.f32.vlgmr.msra.gmra.mrb[24].mxu0 %v2670_v46  ;;  %2949 = vmatmul.mubr.f32.vlgmr.msra.gmra.mrb[24].mxu1 %v2670_v46 }
 0x5d9   :  { %5834 = vmatpush1.bf16.msra.mxu0 %v7004_v16  ;;  %5866 = vmatpush1.bf16.msra.mxu1 %v7019_v20 }
 0x5da   :  { %5836 = vmatprep.subr.bf16.mxu0 %v7031_v24  ;;  %5868 = vmatprep.subr.bf16.mxu1 %v7033_v25 }
 0x5db   :  { %3047 = vmatprep.mubr.f32.mxu0 %v8785_v44  ;;  %3118 = vmatprep.mubr.f32.mxu1 %v8785_v44 }
 0x5dd   :  { %5838 = vmatpush1.bf16.msra.mxu0 %v7046_v29  ;;  %5870 = vmatpush1.bf16.msra.mxu1 %v7059_v33 }
 0x5de   :  { %5840 = vmatprep.subr.bf16.mxu0 %v9028_v41  ;;  %5872 = vmatprep.subr.bf16.mxu1 %v9029_v51 }
 0x5e1   :  { %5842 = vmatpush1.bf16.msra.mxu0 %v9030_v42  ;;  %5874 = vmatpush1.bf16.msra.mxu1 %v9031_v8 }
 0x5e2   :  { %5844 = vmatprep.subr.bf16.mxu0 %v9032_v28  ;;  %5876 = vmatprep.subr.bf16.mxu1 %v9033_v31  ;;  %v9043_v28 = vld [vmem:[#allocation26_spill] sm:$0xff]  ;;  %v9044_v31 = vld [vmem:[#allocation27_spill] sm:$0xff] }
 0x5e5   :  { %5846 = vmatpush1.bf16.msra.mxu0 %v9034_v39  ;;  %5878 = vmatpush1.bf16.msra.mxu1 %v9035_v7  ;;  %v9045_v39 = vld [vmem:[#allocation28_spill] sm:$0xff]  ;;  %v9046_v7 = vld [vmem:[#allocation29_spill] sm:$0xff] }
 0x5e6   :  { %5848 = vmatprep.subr.bf16.mxu0 %v9036_v40  ;;  %5880 = vmatprep.subr.bf16.mxu1 %v9037_v38  ;;  %v9047_v40 = vld [vmem:[#allocation30_spill] sm:$0xff]  ;;  %v9048_v38 = vld [vmem:[#allocation31_spill] sm:$0xff] }
 0x5e9   :  { %5850 = vmatpush1.bf16.msra.mxu0 %v9038_v37  ;;  %5882 = vmatpush1.bf16.msra.mxu1 %v9039_v54  ;;  %v9049_v37 = vld [vmem:[#allocation32_spill] sm:$0xff]  ;;  %v9050_v54 = vld [vmem:[#allocation33_spill] sm:$0xff] }
 0x5ea   :  { %5852 = vmatprep.subr.bf16.mxu0 %v9040_v50  ;;  %5884 = vmatprep.subr.bf16.mxu1 %v9041_v22  ;;  %v9051_v50 = vld [vmem:[#allocation34_spill] sm:$0xff]  ;;  %v9052_v22 = vld [vmem:[#allocation35_spill] sm:$0xff] }
 0x5ed   :  { %5854 = vmatpush1.bf16.msra.mxu0 %v9042_v57  ;;  %5886 = vmatpush1.bf16.msra.mxu1 %v9043_v28  ;;  %v9053_v57 = vld [vmem:[#allocation36_spill] sm:$0xff]  ;;  %v9086_v28 = vld [vmem:[#allocation102_spill] sm:$0xff] }
 0x5ee   :  { %5856 = vmatprep.subr.bf16.mxu0 %v9044_v31  ;;  %5888 = vmatprep.subr.bf16.mxu1 %v9045_v39  ;;  %v9054_v31 = vld [vmem:[#allocation37_spill] sm:$0xff]  ;;  %v9055_v39 = vld [vmem:[#allocation38_spill] sm:$0xff] }
 0x5f1   :  { %5858 = vmatpush1.bf16.msra.mxu0 %v9046_v7  ;;  %5890 = vmatpush1.bf16.msra.mxu1 %v9047_v40  ;;  %v9056_v7 = vld [vmem:[#allocation39_spill] sm:$0xff]  ;;  %v9057_v40 = vld [vmem:[#allocation40_spill] sm:$0xff] }
 0x5f2   :  { %5860 = vmatprep.subr.bf16.mxu0 %v9048_v38  ;;  %5892 = vmatprep.subr.bf16.mxu1 %v9049_v37  ;;  %v9067_v37 = vld [vmem:[#allocation50_spill] sm:$0xff]  ;;  %v9068_v38 = vld [vmem:[#allocation51_spill] sm:$0xff] }
 0x5f5   :  { %5862 = vmatpush1.bf16.msra.mxu0 %v9050_v54  ;;  %5894 = vmatpush1.bf16.msra.mxu1 %v9051_v50  ;;  %v9058_v54 = vld [vmem:[#allocation41_spill] sm:$0xff]  ;;  %v9059_v50 = vld [vmem:[#allocation42_spill] sm:$0xff] }
 0x5f6   :  { %5896 = vmatprep.subr.bf16.mxu0 %v9052_v22  ;;  %5928 = vmatprep.subr.bf16.mxu1 %v9053_v57  ;;  %v9060_v22 = vld [vmem:[#allocation43_spill] sm:$0xff]  ;;  %v9061_v57 = vld [vmem:[#allocation44_spill] sm:$0xff] }
 0x5f8   :  { %3048 = vmatmul.mubr.f32.vlgmr.msra.gmra.mrb[10].mxu0 %v2670_v46  ;;  %3119 = vmatmul.mubr.f32.vlgmr.msra.gmra.mrb[10].mxu1 %v2670_v46  ;;  %v9062_v46 = vld [vmem:[#allocation45_spill] sm:$0xff] }
 0x5f9   :  { %5898 = vmatpush1.bf16.msra.mxu0 %v9054_v31  ;;  %5930 = vmatpush1.bf16.msra.mxu1 %v9055_v39  ;;  %v9063_v31 = vld [vmem:[#allocation46_spill] sm:$0xff]  ;;  %v9064_v39 = vld [vmem:[#allocation47_spill] sm:$0xff] }
 0x5fa   :  { %5900 = vmatprep.subr.bf16.mxu0 %v9056_v7  ;;  %5932 = vmatprep.subr.bf16.mxu1 %v9057_v40  ;;  %v9065_v7 = vld [vmem:[#allocation48_spill] sm:$0xff]  ;;  %v9066_v40 = vld [vmem:[#allocation49_spill] sm:$0xff] }
 0x5fb   :  { %3217 = vmatprep.mubr.f32.mxu0 %v8785_v44  ;;  %3288 = vmatprep.mubr.f32.mxu1 %v8785_v44 }
 0x5fd   :  { %5902 = vmatpush1.bf16.msra.mxu0 %v9058_v54  ;;  %5934 = vmatpush1.bf16.msra.mxu1 %v9059_v50  ;;  %v9069_v54 = vld [vmem:[#allocation52_spill] sm:$0xff]  ;;  %v9070_v50 = vld [vmem:[#allocation53_spill] sm:$0xff] }
 0x5fe   :  { %5904 = vmatprep.subr.bf16.mxu0 %v9060_v22  ;;  %5936 = vmatprep.subr.bf16.mxu1 %v9061_v57  ;;  %v9071_v22 = vld [vmem:[#allocation54_spill] sm:$0xff]  ;;  %v9072_v57 = vld [vmem:[#allocation55_spill] sm:$0xff] }
 0x601   :  { %5906 = vmatpush1.bf16.msra.mxu0 %v9062_v46  ;;  %5938 = vmatpush1.bf16.msra.mxu1 %v9063_v31  ;;  %v9073_v46 = vld [vmem:[#allocation56_spill] sm:$0xff]  ;;  %v9074_v31 = vld [vmem:[#allocation57_spill] sm:$0xff] }
 0x602   :  { %5908 = vmatprep.subr.bf16.mxu0 %v9064_v39  ;;  %5940 = vmatprep.subr.bf16.mxu1 %v9065_v7  ;;  %v9075_v39 = vld [vmem:[#allocation58_spill] sm:$0xff]  ;;  %v9076_v7 = vld [vmem:[#allocation59_spill] sm:$0xff] }
 0x605   :  { %5910 = vmatpush1.bf16.msra.mxu0 %v9066_v40  ;;  %5942 = vmatpush1.bf16.msra.mxu1 %v9067_v37  ;;  %v9077_v40 = vld [vmem:[#allocation60_spill] sm:$0xff]  ;;  %v9078_v37 = vld [vmem:[#allocation61_spill] sm:$0xff] }
 0x606   :  { %5912 = vmatprep.subr.bf16.mxu0 %v9068_v38  ;;  %5944 = vmatprep.subr.bf16.mxu1 %v9069_v54  ;;  %v9079_v38 = vld [vmem:[#allocation62_spill] sm:$0xff]  ;;  %v9080_v54 = vld [vmem:[#allocation63_spill] sm:$0xff] }
 0x609   :  { %5914 = vmatpush1.bf16.msra.mxu0 %v9070_v50  ;;  %5946 = vmatpush1.bf16.msra.mxu1 %v9071_v22  ;;  %v9081_v50 = vld [vmem:[#allocation64_spill] sm:$0xff]  ;;  %v9082_v22 = vld [vmem:[#allocation65_spill] sm:$0xff] }
 0x60a   :  { %5916 = vmatprep.subr.bf16.mxu0 %v9072_v57  ;;  %5948 = vmatprep.subr.bf16.mxu1 %v9073_v46  ;;  %v9083_v57 = vld [vmem:[#allocation66_spill] sm:$0xff]  ;;  %v9084_v46 = vld [vmem:[#allocation67_spill] sm:$0xff] }
 0x60d   :  { %5918 = vmatpush1.bf16.msra.mxu0 %v9074_v31  ;;  %5950 = vmatpush1.bf16.msra.mxu1 %v9075_v39  ;;  %v9085_v31 = vld [vmem:[#allocation68_spill] sm:$0xff] }
 0x60e   :  { %5920 = vmatprep.subr.bf16.mxu0 %v9076_v7  ;;  %5952 = vmatprep.subr.bf16.mxu1 %v9077_v40 }
 0x611   :  { %5922 = vmatpush1.bf16.msra.mxu0 %v9078_v37  ;;  %5954 = vmatpush1.bf16.msra.mxu1 %v9079_v38 }
 0x612   :  { %5924 = vmatprep.subr.bf16.mxu0 %v9080_v54  ;;  %5956 = vmatprep.subr.bf16.mxu1 %v9081_v50 }
 0x615   :  { %5926 = vmatpush1.bf16.msra.mxu0 %v9082_v22  ;;  %5958 = vmatpush1.bf16.msra.mxu1 %v9083_v57 }
 0x616   :  { %5960 = vmatprep.subr.bf16.mxu0 %v9084_v46  ;;  %5992 = vmatprep.subr.bf16.mxu1 %v9085_v31 }
 0x6ab   :  { %v2879_v39 = vpop.f32.mrb[24].mxu0  ;;  %v2950_v7 = vpop.f32.mrb[24].mxu1 }
 0x6ac   :  { %v2955_v40 = vadd.f32 %v2879_v39, %v9086_v28  ;;  %v2881_v8 = vpop.f32.mrb[25].mxu0  ;;  %v2952_v37 = vpop.f32.mrb[25].mxu1  ;;  %v2957_v57 = vadd.f32 %v2950_v7, %v8968_v27 }
 0x6ad   :  { %v2956_v38 = vadd.f32 %v2881_v8, %v8967_v13  ;;  %v2958_v22 = vadd.f32 %v2952_v37, %v8906_v52 }
 0x6ae   :  { %v4749_v42 = vmul.f32 -1.442695, %v2955_v40 }
 0x6af   :  { %v4750_v54 = vmul.f32 -1.442695, %v2956_v38  ;;  %v4751_v50 = vmul.f32 -1.442695, %v2958_v22 }
 0x6b0   :  { %6696 = vpow2.f32 %v4749_v42 }
 0x6b1   :  { %6698 = vpow2.f32 %v4750_v54 }
 0x6b2   :  { %6700 = vpow2.f32 %v4751_v50 }
 0x6b3   :  { %6702 = vtanh.f32 %v2957_v57 }
 0x6ba   :  { %v6697_v46 = vpop.eup %6696 }
 0x6bb   :  { %v6699_v51 = vpop.eup %6698  ;;  %v2962_v31 = vadd.f32 1.0, %v6697_v46 }
 0x6bc   :  { %v2968_v41 = vadd.f32 1.0, %v6699_v51  ;;  %v6701_v39 = vpop.eup %6700 }
 0x6bd   :  { %6704 = vrcp.f32 %v2962_v31  ;;  %v6703_v28 = vpop.eup %6702  ;;  %v2975_v42 = vadd.f32 1.0, %v6701_v39 }
 0x6be   :  { %6706 = vrcp.f32 %v2968_v41 }
 0x6bf   :  { %6708 = vrcp.f32 %v2975_v42 }
 0x6c7   :  { %v6705_v8 = vpop.eup %6704 }
 0x6c8   :  { %v6707_v40 = vpop.eup %6706  ;;  %v2979_v38 = vmul.f32 %v6705_v8, %v6703_v28 }
 0x6c9   :  { %v2978_v54 = vmul.f32 %v6707_v40, %v7997_v53  ;;  %v6709_v53 = vpop.eup %6708 }
 0x6cb   :  { %v8115_v37 = vadd.f32 %v2979_v38, %v2978_v54  ;;  %v3049_v22 = vpop.f32.mrb[10].mxu0  ;;  %v3120_v7 = vpop.f32.mrb[10].mxu1 }
 0x6cc   :  { %v6459_v46 = vadd.f32 %v3049_v22, %v8909_v60  ;;  %v3051_v50 = vpop.f32.mrb[11].mxu0  ;;  %v3122_v57 = vpop.f32.mrb[11].mxu1  ;;  %v6475_v40 = vadd.f32 %v3120_v7, %v7546_v21 }
 0x6cd   :  { %v6460_v51 = vadd.f32 %v3051_v50, %v8848_v19  ;;  %6710 = vtanh.f32 %v8115_v37  ;;  %v6476_v28 = vadd.f32 %v3122_v57, %v8849_v9 }
 0x6ce   :  { %v4752_v41 = vmul.f32 -1.442695, %v6459_v46 }
 0x6cf   :  { %v4753_v31 = vmul.f32 -1.442695, %v6460_v51  ;;  %v4754_v8 = vmul.f32 -1.442695, %v6476_v28 }
 0x6d0   :  { %6712 = vpow2.f32 %v4752_v41 }
 0x6d1   :  { %6714 = vpow2.f32 %v4753_v31 }
 0x6d2   :  { %6716 = vpow2.f32 %v4754_v8 }
 0x6d3   :  { %6718 = vtanh.f32 %v6475_v40  ;;  %v9087_v40 = vld [vmem:[#allocation11_spill] sm:$0xff] }
 0x6d7   :  { %v6711_v39 = vpop.eup %6710 }
 0x6d8   :  { %v2982_v38 = vmul.f32 %v6711_v39, %v6709_v53 }
 0x6da   :  { %v6713_v42 = vpop.eup %6712  ;;  %3218 = vmatmul.mubr.f32.vlgmr.msra.gmra.mrb[26].mxu0 %v2982_v38  ;;  %3289 = vmatmul.mubr.f32.vlgmr.msra.gmra.mrb[26].mxu1 %v2982_v38  ;;  %v9088_v38 = vld [vmem:[#allocation12_spill] sm:$0xff] }
 0x6db   :  { %v6715_v54 = vpop.eup %6714  ;;  %v3132_v22 = vadd.f32 1.0, %v6713_v42  ;;  %5962 = vmatpush1.bf16.msra.mxu0 %v8850_v59  ;;  %5994 = vmatpush1.bf16.msra.mxu1 %v8851_v35  ;;  %v9089_v42 = vld [vmem:[#allocation13_spill] sm:$0xff] }
 0x6dc   :  { %v3138_v46 = vadd.f32 1.0, %v6715_v54  ;;  %5964 = vmatprep.subr.bf16.mxu0 %v8910_v4  ;;  %5996 = vmatprep.subr.bf16.mxu1 %v8911_v3  ;;  %v6717_v7 = vpop.eup %6716  ;;  %v9090_v54 = vld [vmem:[#allocation14_spill] sm:$0xff] }
 0x6dd   :  { %6720 = vrcp.f32 %v3132_v22  ;;  %3359 = vmatprep.mubr.f32.mxu0 %v8785_v44  ;;  %3430 = vmatprep.mubr.f32.mxu1 %v8785_v44  ;;  %v6719_v50 = vpop.eup %6718  ;;  %v3145_v31 = vadd.f32 1.0, %v6717_v7  ;;  %v9091_v22 = vld [vmem:[#allocation15_spill] sm:$0xff]  ;;  %v9093_v7 = vld [vmem:[#allocation17_spill] sm:$0xff] }
 0x6de   :  { %6722 = vrcp.f32 %v3138_v46  ;;  %v9092_v46 = vld [vmem:[#allocation16_spill] sm:$0xff] }
 0x6df   :  { %5966 = vmatpush1.bf16.msra.mxu0 %v8912_v48  ;;  %5998 = vmatpush1.bf16.msra.mxu1 %v8913_v62  ;;  %6724 = vrcp.f32 %v3145_v31  ;;  %v9098_v31 = vld [vmem:[#allocation22_spill] sm:$0xff] }
 0x6e0   :  { %5968 = vmatprep.subr.bf16.mxu0 %v8969_v45  ;;  %6000 = vmatprep.subr.bf16.mxu1 %v8970_v56 }
 0x6e3   :  { %5970 = vmatpush1.bf16.msra.mxu0 %v8971_v5  ;;  %6002 = vmatpush1.bf16.msra.mxu1 %v8972_v2 }
 0x6e4   :  { %5972 = vmatprep.subr.bf16.mxu0 %v8973_v61  ;;  %6004 = vmatprep.subr.bf16.mxu1 %v8974_v36 }
 0x6e7   :  { %v6721_v57 = vpop.eup %6720  ;;  %5974 = vmatpush1.bf16.msra.mxu0 %v8975_v18  ;;  %6006 = vmatpush1.bf16.msra.mxu1 %v8863_v32 }
 0x6e8   :  { %v6723_v51 = vpop.eup %6722  ;;  %v3149_v41 = vmul.f32 %v6721_v57, %v6719_v50  ;;  %5976 = vmatprep.subr.bf16.mxu0 %v8864_v34  ;;  %6008 = vmatprep.subr.bf16.mxu1 %v8865_v12  ;;  %v9094_v50 = vld [vmem:[#allocation18_spill] sm:$0xff]  ;;  %v9095_v57 = vld [vmem:[#allocation19_spill] sm:$0xff] }
 0x6e9   :  { %v3148_v28 = vmul.f32 %v6723_v51, %v8023_v15  ;;  %v6725_v15 = vpop.eup %6724  ;;  %v9096_v51 = vld [vmem:[#allocation20_spill] sm:$0xff] }
 0x6eb   :  { %v8141_v53 = vadd.f32 %v3149_v41, %v3148_v28  ;;  %5978 = vmatpush1.bf16.msra.mxu0 %v8921_v14  ;;  %6010 = vmatpush1.bf16.msra.mxu1 %v8922_v26  ;;  %v9097_v41 = vld [vmem:[#allocation21_spill] sm:$0xff]  ;;  %v9099_v28 = vld [vmem:[#allocation23_spill] sm:$0xff] }
 0x6ec   :  { %5980 = vmatprep.subr.bf16.mxu0 %v8923_v17  ;;  %6012 = vmatprep.subr.bf16.mxu1 %v8924_v49 }
 0x6ed   :  { %6726 = vtanh.f32 %v8141_v53 }
 0x6ef   :  { %5982 = vmatpush1.bf16.msra.mxu0 %v8925_v63  ;;  %6014 = vmatpush1.bf16.msra.mxu1 %v8926_v30 }
 0x6f0   :  { %5984 = vmatprep.subr.bf16.mxu0 %v8927_v6  ;;  %6016 = vmatprep.subr.bf16.mxu1 %v8873_v1 }
 0x6f3   :  { %5986 = vmatpush1.bf16.msra.mxu0 %v8874_v10  ;;  %6018 = vmatpush1.bf16.msra.mxu1 %v8875_v58 }
 0x6f4   :  { %5988 = vmatprep.subr.bf16.mxu0 %v8876_v43  ;;  %6020 = vmatprep.subr.bf16.mxu1 %v8877_v0 }
 0x6f7   :  { %v6727_v39 = vpop.eup %6726  ;;  %5990 = vmatpush1.bf16.msra.mxu0 %v8878_v23  ;;  %6022 = vmatpush1.bf16.msra.mxu1 %v8879_v11 }
 0x6f8   :  { %v3152_v8 = vmul.f32 %v6727_v39, %v6725_v15  ;;  %6024 = vmatprep.subr.bf16.mxu0 %v8880_v47  ;;  %6056 = vmatprep.subr.bf16.mxu1 %v8881_v55  ;;  %v9100_v15 = vld [vmem:[#allocation24_spill] sm:$0xff]  ;;  %v9101_v39 = vld [vmem:[#allocation25_spill] sm:$0xff] }
 0x6fa   :  { %3360 = vmatmul.mubr.f32.vlgmr.msra.gmra.mrb[26].mxu0 %v3152_v8  ;;  %3431 = vmatmul.mubr.f32.vlgmr.msra.gmra.mrb[26].mxu1 %v3152_v8 }
 0x6fb   :  { %6026 = vmatpush1.bf16.msra.mxu0 %v7004_v16  ;;  %6058 = vmatpush1.bf16.msra.mxu1 %v7019_v20 }
 0x6fc   :  { %6028 = vmatprep.subr.bf16.mxu0 %v7031_v24  ;;  %6060 = vmatprep.subr.bf16.mxu1 %v7033_v25 }
 0x6fd   :  { %3529 = vmatprep.mubr.f32.mxu0 %v8785_v44  ;;  %3600 = vmatprep.mubr.f32.mxu1 %v8785_v44 }
 0x6ff   :  { %6030 = vmatpush1.bf16.msra.mxu0 %v7046_v29  ;;  %6062 = vmatpush1.bf16.msra.mxu1 %v7059_v33 }
 0x700   :  { %6032 = vmatprep.subr.bf16.mxu0 %v9087_v40  ;;  %6064 = vmatprep.subr.bf16.mxu1 %v9088_v38 }
 0x703   :  { %6034 = vmatpush1.bf16.msra.mxu0 %v9089_v42  ;;  %6066 = vmatpush1.bf16.msra.mxu1 %v9090_v54 }
 0x704   :  { %6036 = vmatprep.subr.bf16.mxu0 %v9091_v22  ;;  %6068 = vmatprep.subr.bf16.mxu1 %v9092_v46  ;;  %v9102_v22 = vld [vmem:[#allocation26_spill] sm:$0xff]  ;;  %v9103_v46 = vld [vmem:[#allocation27_spill] sm:$0xff] }
 0x707   :  { %6038 = vmatpush1.bf16.msra.mxu0 %v9093_v7  ;;  %6070 = vmatpush1.bf16.msra.mxu1 %v9094_v50  ;;  %v9104_v7 = vld [vmem:[#allocation28_spill] sm:$0xff]  ;;  %v9105_v50 = vld [vmem:[#allocation29_spill] sm:$0xff] }
 0x708   :  { %6040 = vmatprep.subr.bf16.mxu0 %v9095_v57  ;;  %6072 = vmatprep.subr.bf16.mxu1 %v9096_v51  ;;  %v9106_v57 = vld [vmem:[#allocation30_spill] sm:$0xff]  ;;  %v9107_v51 = vld [vmem:[#allocation31_spill] sm:$0xff] }
 0x70b   :  { %6042 = vmatpush1.bf16.msra.mxu0 %v9097_v41  ;;  %6074 = vmatpush1.bf16.msra.mxu1 %v9098_v31  ;;  %v9108_v41 = vld [vmem:[#allocation32_spill] sm:$0xff]  ;;  %v9109_v31 = vld [vmem:[#allocation33_spill] sm:$0xff] }
 0x70c   :  { %6044 = vmatprep.subr.bf16.mxu0 %v9099_v28  ;;  %6076 = vmatprep.subr.bf16.mxu1 %v9100_v15  ;;  %v9110_v28 = vld [vmem:[#allocation34_spill] sm:$0xff]  ;;  %v9111_v15 = vld [vmem:[#allocation35_spill] sm:$0xff] }
 0x70f   :  { %6046 = vmatpush1.bf16.msra.mxu0 %v9101_v39  ;;  %6078 = vmatpush1.bf16.msra.mxu1 %v9102_v22  ;;  %v9112_v39 = vld [vmem:[#allocation36_spill] sm:$0xff]  ;;  %v9145_v22 = vld [vmem:[#allocation102_spill] sm:$0xff] }
 0x710   :  { %6048 = vmatprep.subr.bf16.mxu0 %v9103_v46  ;;  %6080 = vmatprep.subr.bf16.mxu1 %v9104_v7  ;;  %v9113_v46 = vld [vmem:[#allocation37_spill] sm:$0xff]  ;;  %v9114_v7 = vld [vmem:[#allocation38_spill] sm:$0xff] }
 0x713   :  { %6050 = vmatpush1.bf16.msra.mxu0 %v9105_v50  ;;  %6082 = vmatpush1.bf16.msra.mxu1 %v9106_v57  ;;  %v9115_v50 = vld [vmem:[#allocation39_spill] sm:$0xff]  ;;  %v9116_v57 = vld [vmem:[#allocation40_spill] sm:$0xff] }
 0x714   :  { %6052 = vmatprep.subr.bf16.mxu0 %v9107_v51  ;;  %6084 = vmatprep.subr.bf16.mxu1 %v9108_v41  ;;  %v9126_v41 = vld [vmem:[#allocation50_spill] sm:$0xff]  ;;  %v9127_v51 = vld [vmem:[#allocation51_spill] sm:$0xff] }
 0x717   :  { %6054 = vmatpush1.bf16.msra.mxu0 %v9109_v31  ;;  %6086 = vmatpush1.bf16.msra.mxu1 %v9110_v28  ;;  %v9117_v31 = vld [vmem:[#allocation41_spill] sm:$0xff]  ;;  %v9118_v28 = vld [vmem:[#allocation42_spill] sm:$0xff] }
 0x718   :  { %6088 = vmatprep.subr.bf16.mxu0 %v9111_v15  ;;  %6120 = vmatprep.subr.bf16.mxu1 %v9112_v39  ;;  %v9119_v15 = vld [vmem:[#allocation43_spill] sm:$0xff]  ;;  %v9120_v39 = vld [vmem:[#allocation44_spill] sm:$0xff] }
 0x71a   :  { %3530 = vmatmul.mubr.f32.vlgmr.msra.gmra.mrb[12].mxu0 %v3152_v8  ;;  %3601 = vmatmul.mubr.f32.vlgmr.msra.gmra.mrb[12].mxu1 %v3152_v8  ;;  %v9121_v8 = vld [vmem:[#allocation45_spill] sm:$0xff] }
 0x71b   :  { %6090 = vmatpush1.bf16.msra.mxu0 %v9113_v46  ;;  %6122 = vmatpush1.bf16.msra.mxu1 %v9114_v7  ;;  %v9122_v46 = vld [vmem:[#allocation46_spill] sm:$0xff]  ;;  %v9123_v7 = vld [vmem:[#allocation47_spill] sm:$0xff] }
 0x71c   :  { %6092 = vmatprep.subr.bf16.mxu0 %v9115_v50  ;;  %6124 = vmatprep.subr.bf16.mxu1 %v9116_v57  ;;  %v9124_v50 = vld [vmem:[#allocation48_spill] sm:$0xff]  ;;  %v9125_v57 = vld [vmem:[#allocation49_spill] sm:$0xff] }
 0x71d   :  { %3699 = vmatprep.mubr.f32.mxu0 %v8785_v44  ;;  %3770 = vmatprep.mubr.f32.mxu1 %v8785_v44 }
 0x71f   :  { %6094 = vmatpush1.bf16.msra.mxu0 %v9117_v31  ;;  %6126 = vmatpush1.bf16.msra.mxu1 %v9118_v28  ;;  %v9128_v31 = vld [vmem:[#allocation52_spill] sm:$0xff]  ;;  %v9129_v28 = vld [vmem:[#allocation53_spill] sm:$0xff] }
 0x720   :  { %6096 = vmatprep.subr.bf16.mxu0 %v9119_v15  ;;  %6128 = vmatprep.subr.bf16.mxu1 %v9120_v39  ;;  %v9130_v15 = vld [vmem:[#allocation54_spill] sm:$0xff]  ;;  %v9131_v39 = vld [vmem:[#allocation55_spill] sm:$0xff] }
 0x723   :  { %6098 = vmatpush1.bf16.msra.mxu0 %v9121_v8  ;;  %6130 = vmatpush1.bf16.msra.mxu1 %v9122_v46  ;;  %v9132_v8 = vld [vmem:[#allocation56_spill] sm:$0xff]  ;;  %v9133_v46 = vld [vmem:[#allocation57_spill] sm:$0xff] }
 0x724   :  { %6100 = vmatprep.subr.bf16.mxu0 %v9123_v7  ;;  %6132 = vmatprep.subr.bf16.mxu1 %v9124_v50  ;;  %v9134_v7 = vld [vmem:[#allocation58_spill] sm:$0xff]  ;;  %v9135_v50 = vld [vmem:[#allocation59_spill] sm:$0xff] }
 0x727   :  { %6102 = vmatpush1.bf16.msra.mxu0 %v9125_v57  ;;  %6134 = vmatpush1.bf16.msra.mxu1 %v9126_v41  ;;  %v9136_v57 = vld [vmem:[#allocation60_spill] sm:$0xff]  ;;  %v9137_v41 = vld [vmem:[#allocation61_spill] sm:$0xff] }
 0x728   :  { %6104 = vmatprep.subr.bf16.mxu0 %v9127_v51  ;;  %6136 = vmatprep.subr.bf16.mxu1 %v9128_v31  ;;  %v9138_v51 = vld [vmem:[#allocation62_spill] sm:$0xff]  ;;  %v9139_v31 = vld [vmem:[#allocation63_spill] sm:$0xff] }
 0x72b   :  { %6106 = vmatpush1.bf16.msra.mxu0 %v9129_v28  ;;  %6138 = vmatpush1.bf16.msra.mxu1 %v9130_v15  ;;  %v9140_v28 = vld [vmem:[#allocation64_spill] sm:$0xff]  ;;  %v9141_v15 = vld [vmem:[#allocation65_spill] sm:$0xff] }
 0x72c   :  { %6108 = vmatprep.subr.bf16.mxu0 %v9131_v39  ;;  %6140 = vmatprep.subr.bf16.mxu1 %v9132_v8  ;;  %v9142_v39 = vld [vmem:[#allocation66_spill] sm:$0xff]  ;;  %v9143_v8 = vld [vmem:[#allocation67_spill] sm:$0xff] }
 0x72f   :  { %6110 = vmatpush1.bf16.msra.mxu0 %v9133_v46  ;;  %6142 = vmatpush1.bf16.msra.mxu1 %v9134_v7  ;;  %v9144_v46 = vld [vmem:[#allocation68_spill] sm:$0xff] }
 0x730   :  { %6112 = vmatprep.subr.bf16.mxu0 %v9135_v50  ;;  %6144 = vmatprep.subr.bf16.mxu1 %v9136_v57 }
 0x733   :  { %6114 = vmatpush1.bf16.msra.mxu0 %v9137_v41  ;;  %6146 = vmatpush1.bf16.msra.mxu1 %v9138_v51 }
 0x734   :  { %6116 = vmatprep.subr.bf16.mxu0 %v9139_v31  ;;  %6148 = vmatprep.subr.bf16.mxu1 %v9140_v28 }
 0x737   :  { %6118 = vmatpush1.bf16.msra.mxu0 %v9141_v15  ;;  %6150 = vmatpush1.bf16.msra.mxu1 %v9142_v39 }
 0x738   :  { %6152 = vmatprep.subr.bf16.mxu0 %v9143_v8  ;;  %6184 = vmatprep.subr.bf16.mxu1 %v9144_v46 }
 0x7cd   :  { %v3361_v7 = vpop.f32.mrb[26].mxu0  ;;  %v3432_v50 = vpop.f32.mrb[26].mxu1 }
 0x7ce   :  { %v3437_v57 = vadd.f32 %v3361_v7, %v9145_v22  ;;  %v3363_v54 = vpop.f32.mrb[27].mxu0  ;;  %v3434_v41 = vpop.f32.mrb[27].mxu1  ;;  %v3439_v39 = vadd.f32 %v3432_v50, %v8968_v27 }
 0x7cf   :  { %v3438_v51 = vadd.f32 %v3363_v54, %v8967_v13  ;;  %v3440_v15 = vadd.f32 %v3434_v41, %v8906_v52 }
 0x7d0   :  { %v4755_v42 = vmul.f32 -1.442695, %v3437_v57 }
 0x7d1   :  { %v4756_v31 = vmul.f32 -1.442695, %v3438_v51  ;;  %v4757_v28 = vmul.f32 -1.442695, %v3440_v15 }
 0x7d2   :  { %6728 = vpow2.f32 %v4755_v42 }
 0x7d3   :  { %6730 = vpow2.f32 %v4756_v31 }
 0x7d4   :  { %6732 = vpow2.f32 %v4757_v28 }
 0x7d5   :  { %6734 = vtanh.f32 %v3439_v39 }
 0x7dc   :  { %v6729_v8 = vpop.eup %6728 }
 0x7dd   :  { %v6731_v38 = vpop.eup %6730  ;;  %v3444_v46 = vadd.f32 1.0, %v6729_v8 }
 0x7de   :  { %v3450_v40 = vadd.f32 1.0, %v6731_v38  ;;  %v6733_v7 = vpop.eup %6732 }
 0x7df   :  { %6736 = vrcp.f32 %v3444_v46  ;;  %v6735_v22 = vpop.eup %6734  ;;  %v3457_v42 = vadd.f32 1.0, %v6733_v7 }
 0x7e0   :  { %6738 = vrcp.f32 %v3450_v40 }
 0x7e1   :  { %6740 = vrcp.f32 %v3457_v42 }
 0x7e9   :  { %v6737_v54 = vpop.eup %6736 }
 0x7ea   :  { %v6739_v57 = vpop.eup %6738  ;;  %v3461_v51 = vmul.f32 %v6737_v54, %v6735_v22 }
 0x7eb   :  { %v3460_v31 = vmul.f32 %v6739_v57, %v8115_v37  ;;  %v6741_v37 = vpop.eup %6740 }
 0x7ed   :  { %v8233_v41 = vadd.f32 %v3461_v51, %v3460_v31  ;;  %v3531_v15 = vpop.f32.mrb[12].mxu0  ;;  %v3602_v50 = vpop.f32.mrb[12].mxu1 }
 0x7ee   :  { %v6461_v8 = vadd.f32 %v3531_v15, %v8909_v60  ;;  %v3533_v28 = vpop.f32.mrb[13].mxu0  ;;  %v3604_v39 = vpop.f32.mrb[13].mxu1  ;;  %v6477_v57 = vadd.f32 %v3602_v50, %v7546_v21 }
 0x7ef   :  { %v6462_v38 = vadd.f32 %v3533_v28, %v8848_v19  ;;  %6742 = vtanh.f32 %v8233_v41  ;;  %v6478_v22 = vadd.f32 %v3604_v39, %v8849_v9 }
 0x7f0   :  { %v4758_v40 = vmul.f32 -1.442695, %v6461_v8 }
 0x7f1   :  { %v4759_v46 = vmul.f32 -1.442695, %v6462_v38  ;;  %v4760_v54 = vmul.f32 -1.442695, %v6478_v22 }
 0x7f2   :  { %6744 = vpow2.f32 %v4758_v40 }
 0x7f3   :  { %6746 = vpow2.f32 %v4759_v46 }
 0x7f4   :  { %6748 = vpow2.f32 %v4760_v54 }
 0x7f5   :  { %6750 = vtanh.f32 %v6477_v57  ;;  %v9148_v57 = vld [vmem:[#allocation13_spill] sm:$0xff] }
 0x7f9   :  { %v6743_v7 = vpop.eup %6742 }
 0x7fa   :  { %v3464_v51 = vmul.f32 %v6743_v7, %v6741_v37 }
 0x7fc   :  { %v6745_v42 = vpop.eup %6744  ;;  %3700 = vmatmul.mubr.f32.vlgmr.msra.gmra.mrb[28].mxu0 %v3464_v51  ;;  %3771 = vmatmul.mubr.f32.vlgmr.msra.gmra.mrb[28].mxu1 %v3464_v51  ;;  %v9153_v51 = vld [vmem:[#allocation18_spill] sm:$0xff] }
 0x7fd   :  { %v6747_v31 = vpop.eup %6746  ;;  %v3614_v15 = vadd.f32 1.0, %v6745_v42  ;;  %6154 = vmatpush1.bf16.msra.mxu0 %v8850_v59  ;;  %6186 = vmatpush1.bf16.msra.mxu1 %v8851_v35  ;;  %v9154_v42 = vld [vmem:[#allocation19_spill] sm:$0xff] }
 0x7fe   :  { %v3620_v8 = vadd.f32 1.0, %v6747_v31  ;;  %6156 = vmatprep.subr.bf16.mxu0 %v8910_v4  ;;  %6188 = vmatprep.subr.bf16.mxu1 %v8911_v3  ;;  %v6749_v50 = vpop.eup %6748  ;;  %v9157_v31 = vld [vmem:[#allocation22_spill] sm:$0xff] }
 0x7ff   :  { %6752 = vrcp.f32 %v3614_v15  ;;  %3841 = vmatprep.mubr.f32.mxu0 %v8785_v44  ;;  %3912 = vmatprep.mubr.f32.mxu1 %v8785_v44  ;;  %v6751_v28 = vpop.eup %6750  ;;  %v3627_v46 = vadd.f32 1.0, %v6749_v50  ;;  %v9158_v15 = vld [vmem:[#allocation23_spill] sm:$0xff]  ;;  %v9160_v50 = vld [vmem:[#allocation25_spill] sm:$0xff] }
 0x800   :  { %6754 = vrcp.f32 %v3620_v8  ;;  %v9159_v8 = vld [vmem:[#allocation24_spill] sm:$0xff] }
 0x801   :  { %6158 = vmatpush1.bf16.msra.mxu0 %v8912_v48  ;;  %6190 = vmatpush1.bf16.msra.mxu1 %v8913_v62  ;;  %6756 = vrcp.f32 %v3627_v46  ;;  %v9165_v46 = vld [vmem:[#allocation30_spill] sm:$0xff] }
 0x802   :  { %6160 = vmatprep.subr.bf16.mxu0 %v8969_v45  ;;  %6192 = vmatprep.subr.bf16.mxu1 %v8970_v56 }
 0x805   :  { %6162 = vmatpush1.bf16.msra.mxu0 %v8971_v5  ;;  %6194 = vmatpush1.bf16.msra.mxu1 %v8972_v2 }
 0x806   :  { %6164 = vmatprep.subr.bf16.mxu0 %v8973_v61  ;;  %6196 = vmatprep.subr.bf16.mxu1 %v8974_v36 }
 0x809   :  { %v6753_v39 = vpop.eup %6752  ;;  %6166 = vmatpush1.bf16.msra.mxu0 %v8975_v18  ;;  %6198 = vmatpush1.bf16.msra.mxu1 %v8863_v32 }
 0x80a   :  { %v6755_v38 = vpop.eup %6754  ;;  %v3631_v40 = vmul.f32 %v6753_v39, %v6751_v28  ;;  %6168 = vmatprep.subr.bf16.mxu0 %v8864_v34  ;;  %6200 = vmatprep.subr.bf16.mxu1 %v8865_v12  ;;  %v9161_v28 = vld [vmem:[#allocation26_spill] sm:$0xff]  ;;  %v9162_v39 = vld [vmem:[#allocation27_spill] sm:$0xff] }
 0x80b   :  { %v3630_v22 = vmul.f32 %v6755_v38, %v8141_v53  ;;  %v6757_v53 = vpop.eup %6756  ;;  %v9163_v38 = vld [vmem:[#allocation28_spill] sm:$0xff] }
 0x80d   :  { %v8259_v37 = vadd.f32 %v3631_v40, %v3630_v22  ;;  %6170 = vmatpush1.bf16.msra.mxu0 %v8921_v14  ;;  %6202 = vmatpush1.bf16.msra.mxu1 %v8922_v26  ;;  %v9164_v40 = vld [vmem:[#allocation29_spill] sm:$0xff]  ;;  %v9166_v22 = vld [vmem:[#allocation31_spill] sm:$0xff] }
 0x80e   :  { %6172 = vmatprep.subr.bf16.mxu0 %v8923_v17  ;;  %6204 = vmatprep.subr.bf16.mxu1 %v8924_v49 }
 0x80f   :  { %6758 = vtanh.f32 %v8259_v37 }
 0x811   :  { %6174 = vmatpush1.bf16.msra.mxu0 %v8925_v63  ;;  %6206 = vmatpush1.bf16.msra.mxu1 %v8926_v30 }
 0x812   :  { %6176 = vmatprep.subr.bf16.mxu0 %v8927_v6  ;;  %6208 = vmatprep.subr.bf16.mxu1 %v8873_v1 }
 0x815   :  { %6178 = vmatpush1.bf16.msra.mxu0 %v8874_v10  ;;  %6210 = vmatpush1.bf16.msra.mxu1 %v8875_v58 }
 0x816   :  { %6180 = vmatprep.subr.bf16.mxu0 %v8876_v43  ;;  %6212 = vmatprep.subr.bf16.mxu1 %v8877_v0 }
 0x819   :  { %v6759_v7 = vpop.eup %6758  ;;  %6182 = vmatpush1.bf16.msra.mxu0 %v8878_v23  ;;  %6214 = vmatpush1.bf16.msra.mxu1 %v8879_v11 }
 0x81a   :  { %6216 = vmatprep.subr.bf16.mxu0 %v8880_v47  ;;  %6248 = vmatprep.subr.bf16.mxu1 %v8881_v55  ;;  %v3634_v54 = vmul.f32 %v6759_v7, %v6757_v53  ;;  %v9146_v47 = vld [vmem:[#allocation11_spill] sm:$0xff]  ;;  %v9147_v55 = vld [vmem:[#allocation12_spill] sm:$0xff]  ;;  %v9168_v7 = vld [vmem:[#allocation33_spill] sm:$0xff] }
 0x81b   :  { %v9167_v53 = vld [vmem:[#allocation32_spill] sm:$0xff] }
 0x81c   :  { %3842 = vmatmul.mubr.f32.vlgmr.msra.gmra.mrb[28].mxu0 %v3634_v54  ;;  %3913 = vmatmul.mubr.f32.vlgmr.msra.gmra.mrb[28].mxu1 %v3634_v54 }
 0x81d   :  { %6218 = vmatpush1.bf16.msra.mxu0 %v7004_v16  ;;  %6250 = vmatpush1.bf16.msra.mxu1 %v7019_v20  ;;  %v9149_v16 = vld [vmem:[#allocation14_spill] sm:$0xff]  ;;  %v9150_v20 = vld [vmem:[#allocation15_spill] sm:$0xff] }
 0x81e   :  { %6220 = vmatprep.subr.bf16.mxu0 %v7031_v24  ;;  %6252 = vmatprep.subr.bf16.mxu1 %v7033_v25  ;;  %v9151_v24 = vld [vmem:[#allocation16_spill] sm:$0xff]  ;;  %v9152_v25 = vld [vmem:[#allocation17_spill] sm:$0xff] }
 0x81f   :  { %4011 = vmatprep.mubr.f32.mxu0 %v8785_v44  ;;  %4082 = vmatprep.mubr.f32.mxu1 %v8785_v44 }
 0x821   :  { %6222 = vmatpush1.bf16.msra.mxu0 %v7046_v29  ;;  %6254 = vmatpush1.bf16.msra.mxu1 %v7059_v33  ;;  %v9155_v29 = vld [vmem:[#allocation20_spill] sm:$0xff]  ;;  %v9156_v33 = vld [vmem:[#allocation21_spill] sm:$0xff] }
 0x822   :  { %6224 = vmatprep.subr.bf16.mxu0 %v9146_v47  ;;  %6256 = vmatprep.subr.bf16.mxu1 %v9147_v55  ;;  %v9169_v47 = vld [vmem:[#allocation34_spill] sm:$0xff]  ;;  %v9170_v55 = vld [vmem:[#allocation35_spill] sm:$0xff] }
 0x825   :  { %6226 = vmatpush1.bf16.msra.mxu0 %v9148_v57  ;;  %6258 = vmatpush1.bf16.msra.mxu1 %v9149_v16  ;;  %v9171_v57 = vld [vmem:[#allocation36_spill] sm:$0xff]  ;;  %v9172_v16 = vld [vmem:[#allocation37_spill] sm:$0xff] }
 0x826   :  { %6228 = vmatprep.subr.bf16.mxu0 %v9150_v20  ;;  %6260 = vmatprep.subr.bf16.mxu1 %v9151_v24  ;;  %v9173_v20 = vld [vmem:[#allocation38_spill] sm:$0xff]  ;;  %v9174_v24 = vld [vmem:[#allocation39_spill] sm:$0xff] }
 0x829   :  { %6230 = vmatpush1.bf16.msra.mxu0 %v9152_v25  ;;  %6262 = vmatpush1.bf16.msra.mxu1 %v9153_v51  ;;  %v9175_v25 = vld [vmem:[#allocation40_spill] sm:$0xff]  ;;  %v9176_v51 = vld [vmem:[#allocation41_spill] sm:$0xff] }
 0x82a   :  { %6232 = vmatprep.subr.bf16.mxu0 %v9154_v42  ;;  %6264 = vmatprep.subr.bf16.mxu1 %v9155_v29  ;;  %v9177_v42 = vld [vmem:[#allocation42_spill] sm:$0xff]  ;;  %v9178_v29 = vld [vmem:[#allocation43_spill] sm:$0xff] }
 0x82d   :  { %6234 = vmatpush1.bf16.msra.mxu0 %v9156_v33  ;;  %6266 = vmatpush1.bf16.msra.mxu1 %v9157_v31  ;;  %v9179_v33 = vld [vmem:[#allocation44_spill] sm:$0xff]  ;;  %v9181_v31 = vld [vmem:[#allocation46_spill] sm:$0xff] }
 0x82e   :  { %6236 = vmatprep.subr.bf16.mxu0 %v9158_v15  ;;  %6268 = vmatprep.subr.bf16.mxu1 %v9159_v8  ;;  %v9182_v15 = vld [vmem:[#allocation47_spill] sm:$0xff]  ;;  %v9183_v8 = vld [vmem:[#allocation48_spill] sm:$0xff] }
 0x831   :  { %6238 = vmatpush1.bf16.msra.mxu0 %v9160_v50  ;;  %6270 = vmatpush1.bf16.msra.mxu1 %v9161_v28  ;;  %v9184_v50 = vld [vmem:[#allocation49_spill] sm:$0xff]  ;;  %v9185_v28 = vld [vmem:[#allocation50_spill] sm:$0xff] }
 0x832   :  { %6240 = vmatprep.subr.bf16.mxu0 %v9162_v39  ;;  %6272 = vmatprep.subr.bf16.mxu1 %v9163_v38  ;;  %v9186_v39 = vld [vmem:[#allocation51_spill] sm:$0xff]  ;;  %v9187_v38 = vld [vmem:[#allocation52_spill] sm:$0xff] }
 0x835   :  { %6242 = vmatpush1.bf16.msra.mxu0 %v9164_v40  ;;  %6274 = vmatpush1.bf16.msra.mxu1 %v9165_v46  ;;  %v9188_v40 = vld [vmem:[#allocation53_spill] sm:$0xff]  ;;  %v9189_v46 = vld [vmem:[#allocation54_spill] sm:$0xff] }
 0x836   :  { %6244 = vmatprep.subr.bf16.mxu0 %v9166_v22  ;;  %6276 = vmatprep.subr.bf16.mxu1 %v9167_v53  ;;  %v9190_v22 = vld [vmem:[#allocation55_spill] sm:$0xff]  ;;  %v9191_v53 = vld [vmem:[#allocation56_spill] sm:$0xff] }
 0x839   :  { %6246 = vmatpush1.bf16.msra.mxu0 %v9168_v7  ;;  %6278 = vmatpush1.bf16.msra.mxu1 %v9169_v47  ;;  %v9192_v7 = vld [vmem:[#allocation57_spill] sm:$0xff]  ;;  %v9193_v47 = vld [vmem:[#allocation58_spill] sm:$0xff] }
 0x83a   :  { %6280 = vmatprep.subr.bf16.mxu0 %v9170_v55  ;;  %6312 = vmatprep.subr.bf16.mxu1 %v9171_v57  ;;  %v9194_v55 = vld [vmem:[#allocation59_spill] sm:$0xff]  ;;  %v9195_v57 = vld [vmem:[#allocation60_spill] sm:$0xff] }
 0x83c   :  { %4012 = vmatmul.mubr.f32.vlgmr.msra.gmra.mrb[14].mxu0 %v3634_v54  ;;  %4083 = vmatmul.mubr.f32.vlgmr.msra.gmra.mrb[14].mxu1 %v3634_v54  ;;  %v9180_v54 = vld [vmem:[#allocation45_spill] sm:$0xff] }
 0x83d   :  { %6282 = vmatpush1.bf16.msra.mxu0 %v9172_v16  ;;  %6314 = vmatpush1.bf16.msra.mxu1 %v9173_v20  ;;  %v9196_v16 = vld [vmem:[#allocation61_spill] sm:$0xff]  ;;  %v9197_v20 = vld [vmem:[#allocation62_spill] sm:$0xff] }
 0x83e   :  { %6284 = vmatprep.subr.bf16.mxu0 %v9174_v24  ;;  %6316 = vmatprep.subr.bf16.mxu1 %v9175_v25  ;;  %v9198_v24 = vld [vmem:[#allocation63_spill] sm:$0xff]  ;;  %v9199_v25 = vld [vmem:[#allocation64_spill] sm:$0xff] }
 0x83f   :  { %4181 = vmatprep.mubr.f32.mxu0 %v8785_v44  ;;  %4252 = vmatprep.mubr.f32.mxu1 %v8785_v44 }
 0x841   :  { %6286 = vmatpush1.bf16.msra.mxu0 %v9176_v51  ;;  %6318 = vmatpush1.bf16.msra.mxu1 %v9177_v42  ;;  %v9200_v51 = vld [vmem:[#allocation65_spill] sm:$0xff]  ;;  %v9201_v42 = vld [vmem:[#allocation66_spill] sm:$0xff] }
 0x842   :  { %6288 = vmatprep.subr.bf16.mxu0 %v9178_v29  ;;  %6320 = vmatprep.subr.bf16.mxu1 %v9179_v33  ;;  %v9202_v29 = vld [vmem:[#allocation67_spill] sm:$0xff]  ;;  %v9203_v33 = vld [vmem:[#allocation68_spill] sm:$0xff] }
 0x845   :  { %6290 = vmatpush1.bf16.msra.mxu0 %v9180_v54  ;;  %6322 = vmatpush1.bf16.msra.mxu1 %v9181_v31 }
 0x846   :  { %6292 = vmatprep.subr.bf16.mxu0 %v9182_v15  ;;  %6324 = vmatprep.subr.bf16.mxu1 %v9183_v8  ;;  %v9204_v15 = vld [vmem:[#allocation102_spill] sm:$0xff] }
 0x849   :  { %6294 = vmatpush1.bf16.msra.mxu0 %v9184_v50  ;;  %6326 = vmatpush1.bf16.msra.mxu1 %v9185_v28 }
 0x84a   :  { %6296 = vmatprep.subr.bf16.mxu0 %v9186_v39  ;;  %6328 = vmatprep.subr.bf16.mxu1 %v9187_v38 }
 0x84d   :  { %6298 = vmatpush1.bf16.msra.mxu0 %v9188_v40  ;;  %6330 = vmatpush1.bf16.msra.mxu1 %v9189_v46 }
 0x84e   :  { %6300 = vmatprep.subr.bf16.mxu0 %v9190_v22  ;;  %6332 = vmatprep.subr.bf16.mxu1 %v9191_v53 }
 0x851   :  { %6302 = vmatpush1.bf16.msra.mxu0 %v9192_v7  ;;  %6334 = vmatpush1.bf16.msra.mxu1 %v9193_v47 }
 0x852   :  { %6304 = vmatprep.subr.bf16.mxu0 %v9194_v55  ;;  %6336 = vmatprep.subr.bf16.mxu1 %v9195_v57 }
 0x855   :  { %6306 = vmatpush1.bf16.msra.mxu0 %v9196_v16  ;;  %6338 = vmatpush1.bf16.msra.mxu1 %v9197_v20 }
 0x856   :  { %6308 = vmatprep.subr.bf16.mxu0 %v9198_v24  ;;  %6340 = vmatprep.subr.bf16.mxu1 %v9199_v25 }
 0x859   :  { %6310 = vmatpush1.bf16.msra.mxu0 %v9200_v51  ;;  %6342 = vmatpush1.bf16.msra.mxu1 %v9201_v42 }
 0x85a   :  { %6344 = vmatprep.subr.bf16.mxu0 %v9202_v29  ;;  %6376 = vmatprep.subr.bf16.mxu1 %v9203_v33 }
 0x8ef   :  { %v3843_v54 = vpop.f32.mrb[28].mxu0  ;;  %v3914_v31 = vpop.f32.mrb[28].mxu1 }
 0x8f0   :  { %v3919_v8 = vadd.f32 %v3843_v54, %v9204_v15  ;;  %v3845_v50 = vpop.f32.mrb[29].mxu0  ;;  %v3916_v28 = vpop.f32.mrb[29].mxu1  ;;  %v3921_v53 = vadd.f32 %v3914_v31, %v8968_v27 }
 0x8f1   :  { %v3920_v39 = vadd.f32 %v3845_v50, %v8967_v13  ;;  %v3922_v46 = vadd.f32 %v3916_v28, %v8906_v52 }
 0x8f2   :  { %v4761_v38 = vmul.f32 -1.442695, %v3919_v8 }
 0x8f3   :  { %v4762_v40 = vmul.f32 -1.442695, %v3920_v39  ;;  %v4763_v22 = vmul.f32 -1.442695, %v3922_v46 }
 0x8f4   :  { %6760 = vpow2.f32 %v4761_v38 }
 0x8f5   :  { %6762 = vpow2.f32 %v4762_v40 }
 0x8f6   :  { %6764 = vpow2.f32 %v4763_v22 }
 0x8f7   :  { %6766 = vtanh.f32 %v3921_v53 }
 0x8fe   :  { %v6761_v7 = vpop.eup %6760 }
 0x8ff   :  { %v6763_v47 = vpop.eup %6762  ;;  %v3926_v55 = vadd.f32 1.0, %v6761_v7 }
 0x900   :  { %v3932_v57 = vadd.f32 1.0, %v6763_v47  ;;  %v6765_v16 = vpop.eup %6764 }
 0x901   :  { %6768 = vrcp.f32 %v3926_v55  ;;  %v6767_v20 = vpop.eup %6766  ;;  %v3939_v42 = vadd.f32 1.0, %v6765_v16  ;;  %v4443_v16 = vld [vmem:[%s8516_s7 + $0x70] sm:$0xff] }
 0x902   :  { %6770 = vrcp.f32 %v3932_v57 }
 0x903   :  { %6772 = vrcp.f32 %v3939_v42  ;;  %v4525_v42 = vld [vmem:[%s8518_s9 + $0x10] sm:$0xff] }
 0x90b   :  { %v6769_v24 = vpop.eup %6768 }
 0x90c   :  { %v6771_v25 = vpop.eup %6770  ;;  %v3943_v51 = vmul.f32 %v6769_v24, %v6767_v20  ;;  %v4444_v20 = vld [vmem:[%s8516_s7 + $0x78] sm:$0xff] }
 0x90d   :  { %v3942_v29 = vmul.f32 %v6771_v25, %v8233_v41  ;;  %v6773_v41 = vpop.eup %6772  ;;  %v6429_v24 = vpack.c.bf16 %v4444_v20, %v4443_v16  ;;  %v4523_v25 = vld [vmem:[%s8518_s9] sm:$0xff] }
 0x90f   :  { %v8351_v33 = vadd.f32 %v3943_v51, %v3942_v29  ;;  %v4013_v54 = vpop.f32.mrb[14].mxu0  ;;  %v4084_v31 = vpop.f32.mrb[14].mxu1  ;;  %v4524_v51 = vld [vmem:[%s8518_s9 + $0x8] sm:$0xff] }
 0x910   :  { %v6463_v8 = vadd.f32 %v4013_v54, %v8909_v60  ;;  %v4015_v50 = vpop.f32.mrb[15].mxu0  ;;  %v4086_v28 = vpop.f32.mrb[15].mxu1  ;;  %v6479_v7 = vadd.f32 %v4084_v31, %v7546_v21  ;;  %v6432_v29 = vpack.c.bf16 %v4524_v51, %v4523_v25  ;;  %v4526_v54 = vld [vmem:[%s8518_s9 + $0x18] sm:$0xff] }
 0x911   :  { %v6464_v39 = vadd.f32 %v4015_v50, %v8848_v19  ;;  %6774 = vtanh.f32 %v8351_v33  ;;  %v6480_v46 = vadd.f32 %v4086_v28, %v8849_v9  ;;  %v6435_v31 = vpack.c.bf16 %v4526_v54, %v4525_v42  ;;  %v4528_v50 = vld [vmem:[%s8518_s9 + $0x28] sm:$0xff] }
 0x912   :  { %v4764_v38 = vmul.f32 -1.442695, %v6463_v8  ;;  %v4527_v8 = vld [vmem:[%s8518_s9 + $0x20] sm:$0xff] }
 0x913   :  { %v4765_v40 = vmul.f32 -1.442695, %v6464_v39  ;;  %v4766_v53 = vmul.f32 -1.442695, %v6480_v46  ;;  %v6438_v28 = vpack.c.bf16 %v4528_v50, %v4527_v8 }
 0x914   :  { %6776 = vpow2.f32 %v4764_v38 }
 0x915   :  { %6778 = vpow2.f32 %v4765_v40 }
 0x916   :  { %6780 = vpow2.f32 %v4766_v53 }
 0x917   :  { %6782 = vtanh.f32 %v6479_v7 }
 0x91b   :  { %v6775_v22 = vpop.eup %6774 }
 0x91c   :  { %v3946_v47 = vmul.f32 %v6775_v22, %v6773_v41 }
 0x91e   :  { %v6777_v55 = vpop.eup %6776  ;;  %4182 = vmatmul.mubr.f32.vlgmr.msra.gmra.mrb[30].mxu0 %v3946_v47  ;;  %4253 = vmatmul.mubr.f32.vlgmr.msra.gmra.mrb[30].mxu1 %v3946_v47 }
 0x91f   :  { %v6779_v60 = vpop.eup %6778  ;;  %v4096_v57 = vadd.f32 1.0, %v6777_v55  ;;  %6346 = vmatpush1.bf16.msra.mxu0 %v8850_v59  ;;  %6378 = vmatpush1.bf16.msra.mxu1 %v8851_v35 }
 0x920   :  { %v4102_v19 = vadd.f32 1.0, %v6779_v60  ;;  %6348 = vmatprep.subr.bf16.mxu0 %v8910_v4  ;;  %6380 = vmatprep.subr.bf16.mxu1 %v8911_v3  ;;  %v6781_v21 = vpop.eup %6780 }
 0x921   :  { %6784 = vrcp.f32 %v4096_v57  ;;  %4323 = vmatprep.mubr.f32.mxu0 %v8785_v44  ;;  %4394 = vmatprep.mubr.f32.mxu1 %v8785_v44  ;;  %v6783_v59 = vpop.eup %6782  ;;  %v4109_v3 = vadd.f32 1.0, %v6781_v21 }
 0x922   :  { %6786 = vrcp.f32 %v4102_v19 }
 0x923   :  { %6350 = vmatpush1.bf16.msra.mxu0 %v8912_v48  ;;  %6382 = vmatpush1.bf16.msra.mxu1 %v8913_v62  ;;  %6788 = vrcp.f32 %v4109_v3 }
 0x924   :  { %6352 = vmatprep.subr.bf16.mxu0 %v8969_v45  ;;  %6384 = vmatprep.subr.bf16.mxu1 %v8970_v56  ;;  %v4438_v45 = vld [vmem:[%s8516_s7 + $0x48] sm:$0xff] }
 0x927   :  { %6354 = vmatpush1.bf16.msra.mxu0 %v8971_v5  ;;  %6386 = vmatpush1.bf16.msra.mxu1 %v8972_v2  ;;  %v4439_v5 = vld [vmem:[%s8516_s7 + $0x50] sm:$0xff]  ;;  %v4440_v2 = vld [vmem:[%s8516_s7 + $0x58] sm:$0xff] }
 0x928   :  { %6356 = vmatprep.subr.bf16.mxu0 %v8973_v61  ;;  %6388 = vmatprep.subr.bf16.mxu1 %v8974_v36  ;;  %v4441_v61 = vld [vmem:[%s8516_s7 + $0x60] sm:$0xff]  ;;  %v6423_v36 = vpack.c.bf16 %v4440_v2, %v4439_v5 }
 0x92b   :  { %v6785_v9 = vpop.eup %6784  ;;  %6358 = vmatpush1.bf16.msra.mxu0 %v8975_v18  ;;  %6390 = vmatpush1.bf16.msra.mxu1 %v8863_v32  ;;  %v4442_v18 = vld [vmem:[%s8516_s7 + $0x68] sm:$0xff] }
 0x92c   :  { %v6787_v35 = vpop.eup %6786  ;;  %v4113_v4 = vmul.f32 %v6785_v9, %v6783_v59  ;;  %6360 = vmatprep.subr.bf16.mxu0 %v8864_v34  ;;  %6392 = vmatprep.subr.bf16.mxu1 %v8865_v12 }
 0x92d   :  { %v4112_v48 = vmul.f32 %v6787_v35, %v8259_v37  ;;  %v6789_v34 = vpop.eup %6788  ;;  %v6426_v37 = vpack.c.bf16 %v4442_v18, %v4441_v61 }
 0x92f   :  { %v4114_v62 = vadd.f32 %v4113_v4, %v4112_v48  ;;  %6362 = vmatpush1.bf16.msra.mxu0 %v8921_v14  ;;  %6394 = vmatpush1.bf16.msra.mxu1 %v8922_v26  ;;  %v4434_v14 = vld [vmem:[%s8516_s7 + $0x28] sm:$0xff] }
 0x930   :  { %6364 = vmatprep.subr.bf16.mxu0 %v8923_v17  ;;  %6396 = vmatprep.subr.bf16.mxu1 %v8924_v49  ;;  %v4433_v17 = vld [vmem:[%s8516_s7 + $0x20] sm:$0xff]  ;;  %v4435_v49 = vld [vmem:[%s8516_s7 + $0x30] sm:$0xff] }
 0x931   :  { %6790 = vtanh.f32 %v4114_v62  ;;  %v6414_v26 = vpack.c.bf16 %v4434_v14, %v4433_v17 }
 0x933   :  { %6366 = vmatpush1.bf16.msra.mxu0 %v8925_v63  ;;  %6398 = vmatpush1.bf16.msra.mxu1 %v8926_v30  ;;  %v4436_v63 = vld [vmem:[%s8516_s7 + $0x38] sm:$0xff] }
 0x934   :  { %6368 = vmatprep.subr.bf16.mxu0 %v8927_v6  ;;  %6400 = vmatprep.subr.bf16.mxu1 %v8873_v1  ;;  %v4429_v1 = vld [vmem:[%s8516_s7] sm:$0xff]  ;;  %v6417_v30 = vpack.c.bf16 %v4436_v63, %v4435_v49  ;;  %v4616_v49 = vld [vmem:[%s8520_s11 + $0x18] sm:$0xff] }
 0x935   :  { %v4437_v6 = vld [vmem:[%s8516_s7 + $0x40] sm:$0xff] }
 0x936   :  { %v6420_v56 = vpack.c.bf16 %v4438_v45, %v4437_v6 }
 0x937   :  { %6370 = vmatpush1.bf16.msra.mxu0 %v8874_v10  ;;  %6402 = vmatpush1.bf16.msra.mxu1 %v8875_v58  ;;  %v4430_v10 = vld [vmem:[%s8516_s7 + $0x8] sm:$0xff] }
 0x938   :  { %6372 = vmatprep.subr.bf16.mxu0 %v8876_v43  ;;  %6404 = vmatprep.subr.bf16.mxu1 %v8877_v0  ;;  %v6408_v58 = vpack.c.bf16 %v4430_v10, %v4429_v1  ;;  %v6861_v43 = vmov 0.0|0.0   ;;  %v4613_v10 = vld [vmem:[%s8520_s11] sm:$0xff] }
 0x93b   :  { %v6791_v12 = vpop.eup %6790  ;;  %6374 = vmatpush1.bf16.msra.mxu0 %v8878_v23  ;;  %6406 = vmatpush1.bf16.msra.mxu1 %v8879_v11  ;;  %v4431_v11 = vld [vmem:[%s8516_s7 + $0x10] sm:$0xff]  ;;  %v4432_v23 = vld [vmem:[%s8516_s7 + $0x18] sm:$0xff] }
 0x93c   :  { %v4116_v32 = vmul.f32 %v6791_v12, %v6789_v34  ;;  %6407 = vmatprep.subr.bf16.mxu0 %v6861_v43  ;;  %6431 = vmatprep.subr.bf16.mxu1 %v6861_v43  ;;  %v6411_v0 = vpack.c.bf16 %v4432_v23, %v4431_v11  ;;  %v4529_v12 = vld [vmem:[%s8518_s9 + $0x30] sm:$0xff] }
 0x93e   :  { %4324 = vmatmul.mubr.f32.vlgmr.msra.gmra.mrb[30].mxu0 %v4116_v32  ;;  %4395 = vmatmul.mubr.f32.vlgmr.msra.gmra.mrb[30].mxu1 %v4116_v32  ;;  %v4530_v32 = vld [vmem:[%s8518_s9 + $0x38] sm:$0xff] }
 0x93f   :  { %6409 = vmatpush3.bf16.msra.mxu0 %v6408_v58  ;;  %4838 = vmatprep.mubr.msk.f32.mxu0 %vm6862_vm1, %v8785_v44  ;;  %v6441_v1 = vpack.c.bf16 %v4530_v32, %v4529_v12  ;;  %v4614_v58 = vld [vmem:[%s8520_s11 + $0x8] sm:$0xff] }
 0x940   :  { %6410 = vmatprep.subr.bf16.mxu0 %v6861_v43  ;;  %4857 = vmatprep.mubr.msk.f32.mxu1 %vm6862_vm1, %v8785_v44  ;;  %v6444_v17 = vpack.c.bf16 %v4614_v58, %v4613_v10 }
 0x941   :  { %6433 = vmatpush3.bf16.msra.mxu1 %v6432_v29 }
 0x942   :  { %6434 = vmatprep.subr.bf16.mxu1 %v6861_v43 }
 0x943   :  { %6412 = vmatpush3.bf16.msra.mxu0 %v6411_v0 }
 0x944   :  { %6413 = vmatprep.subr.bf16.mxu0 %v6861_v43 }
 0x945   :  { %6436 = vmatpush3.bf16.msra.mxu1 %v6435_v31 }
 0x946   :  { %6437 = vmatprep.subr.bf16.mxu1 %v6861_v43 }
 0x947   :  { %6415 = vmatpush3.bf16.msra.mxu0 %v6414_v26  ;;  %v4615_v26 = vld [vmem:[%s8520_s11 + $0x10] sm:$0xff] }
 0x948   :  { %6416 = vmatprep.subr.bf16.mxu0 %v6861_v43  ;;  %v6447_v63 = vpack.c.bf16 %v4616_v49, %v4615_v26 }
 0x949   :  { %6439 = vmatpush3.bf16.msra.mxu1 %v6438_v28 }
 0x94a   :  { %6440 = vmatprep.subr.bf16.mxu1 %v6861_v43 }
 0x94b   :  { %6418 = vmatpush3.bf16.msra.mxu0 %v6417_v30  ;;  %v4771_v30 = vld [vmem:[%s8519_s10] ss:$0 sm:$0xff] }
 0x94c   :  { %6419 = vmatprep.subr.bf16.mxu0 %v6861_v43 }
 0x94d   :  { %6442 = vmatpush3.bf16.msra.mxu1 %v6441_v1 }
 0x94e   :  { %6443 = vmatprep.subr.bf16.mxu1 %v6861_v43 }
 0x94f   :  { %6421 = vmatpush3.bf16.msra.mxu0 %v6420_v56 }
 0x950   :  { %6422 = vmatprep.subr.bf16.mxu0 %v6861_v43 }
 0x953   :  { %6424 = vmatpush3.bf16.msra.mxu0 %v6423_v36 }
 0x954   :  { %6425 = vmatprep.subr.bf16.mxu0 %v6861_v43 }
 0x957   :  { %6427 = vmatpush3.bf16.msra.mxu0 %v6426_v37 }
 0x958   :  { %6428 = vmatprep.subr.bf16.mxu0 %v6861_v43 }
 0x95b   :  { %6430 = vmatpush3.bf16.msra.mxu0 %v6429_v24 }
 0xa11   :  { %v4325_v39 = vpop.f32.mrb[30].mxu0  ;;  %v4396_v38 = vpop.f32.mrb[30].mxu1 }
 0xa12   :  { %v4401_v40 = vadd.f32 %v4325_v39, %v9204_v15  ;;  %v4327_v46 = vpop.f32.mrb[31].mxu0  ;;  %v4398_v41 = vpop.f32.mrb[31].mxu1  ;;  %v4403_v60 = vadd.f32 %v4396_v38, %v8968_v27 }
 0xa13   :  { %v4402_v22 = vadd.f32 %v4327_v46, %v8967_v13  ;;  %v4404_v47 = vadd.f32 %v4398_v41, %v8906_v52 }
 0xa14   :  { %v4767_v53 = vmul.f32 -1.442695, %v4401_v40 }
 0xa15   :  { %v4768_v7 = vmul.f32 -1.442695, %v4402_v22  ;;  %v4769_v55 = vmul.f32 -1.442695, %v4404_v47 }
 0xa16   :  { %6792 = vpow2.f32 %v4767_v53 }
 0xa17   :  { %6794 = vpow2.f32 %v4768_v7 }
 0xa18   :  { %6796 = vpow2.f32 %v4769_v55 }
 0xa19   :  { %6798 = vtanh.f32 %v4403_v60 }
 0xa20   :  { %v6793_v57 = vpop.eup %6792 }
 0xa21   :  { %v6795_v19 = vpop.eup %6794  ;;  %v4408_v21 = vadd.f32 1.0, %v6793_v57 }
 0xa22   :  { %v4414_v59 = vadd.f32 1.0, %v6795_v19  ;;  %v6797_v15 = vpop.eup %6796 }
 0xa23   :  { %6800 = vrcp.f32 %v4408_v21  ;;  %v6799_v9 = vpop.eup %6798  ;;  %v4421_v3 = vadd.f32 1.0, %v6797_v15 }
 0xa24   :  { %6802 = vrcp.f32 %v4414_v59 }
 0xa25   :  { %6804 = vrcp.f32 %v4421_v3 }
 0xa2d   :  { %v6801_v13 = vpop.eup %6800 }
 0xa2e   :  { %v6803_v35 = vpop.eup %6802  ;;  %v4425_v4 = vmul.f32 %v6801_v13, %v6799_v9 }
 0xa2f   :  { %v4424_v48 = vmul.f32 %v6803_v35, %v8351_v33  ;;  %v6805_v27 = vpop.eup %6804  ;;  %v4770_v33 = vld [vmem:[%s8517_s8] ss:$0 sm:$0xff] }
 0xa31   :  { %v4426_v52 = vadd.f32 %v4425_v4, %v4424_v48 }
 0xa33   :  { %6806 = vtanh.f32 %v4426_v52 }
 0xa3d   :  { %v6807_v62 = vpop.eup %6806 }
 0xa3e   :  { %v4428_v34 = vmul.f32 %v6807_v62, %v6805_v27 }
 0xa40   :  { %4839 = vmatmul.mubr.f32.vlgmr.msra.gmra.mrb[32].mxu0 %v4428_v34 }
 0xb13   :  { %v4518_v11 = vpop.f32.mrb[32].mxu0 }
 0xb14   :  { %v4519_v23 = vadd.f32 %v4770_v33, %v4518_v11  ;;  %v4840_v0 = vpop.f32.mrb[33].mxu0 }
 0xb16   :  { %v4522_v14 = vmax.f32 %v4519_v23, 0.0 }
 0xb18   :  { %4858 = vmatmul.mubr.msk.f32.vlgmr.msra.gmra.mrb[32].mxu1 %vm4538_vm2, %v4522_v14 }
 0xb19   :  { %6445 = vmatpush3.bf16.msra.mxu1 %v6444_v17  ;;  %4868 = vmatprep.mubr.msk.f32.mxu1 %vm6862_vm1, %v8785_v44 }
 0xb1a   :  { %6446 = vmatprep.subr.bf16.mxu1 %v6861_v43  ;;  %v4773_v43 = vld [vmem:[#allocation2] ss:$0 sm:$0xff] }
 0xb1d   :  { %6448 = vmatpush3.bf16.msra.mxu1 %v6447_v63 }
 0xbeb   :  { %v4608_v6 = vpop.f32.mrb[32].mxu1 }
 0xbec   :  { %v4609_v45 = vadd.f32 %v4771_v30, %v4608_v6  ;;  %v4859_v56 = vpop.f32.mrb[33].mxu1 }
 0xbee   :  { %v4612_v44 = vmax.f32 %v4609_v45, 0.0 }
 0xbf0   :  { %4869 = vmatmul.mubr.msk.f32.vlgmr.msra.gmra.mrb[34].mxu1 %vm4624_vm3, %v4612_v44 }
 0xcc3   :  { %v4694_v5 = vpop.f32.mrb[34].mxu1 }
 0xcc4   :  { %v4695_v2 = vadd.f32 %v4773_v43, %v4694_v5  ;;  %v4870_v61 = vpop.f32.mrb[35].mxu1 }
 0xcc6   :  { %4699 = vst.msk [vmem:[%s8522_s13] sm:$0xff] %vm4698_vm4, %v4695_v2 }
 0xcc7   :  { %4704 = vsyncpa [#allocation4], 1 }
 0xcc8   :  { %4705 = vsyncpa [#allocation6], 1 }

</bundles_post_ra>
